<compile_context>
chip_gen: v6e
topology: v6e:2x2x1
jax: 0.10.0
libtpu: 0.0.40
codegen_flags: <defaults>
</compile_context>

<pallas_src>
import functools
import math

import jax
import jax.numpy as jnp
from jax.experimental import pallas as pl
from jax.experimental.pallas import tpu as pltpu


def _layer_norm(x, gamma, beta, eps=1e-5):
    mu = jnp.mean(x, axis=-1, keepdims=True)
    var = jnp.mean((x - mu) ** 2, axis=-1, keepdims=True)
    return (x - mu) * jax.lax.rsqrt(var + eps) * gamma + beta


# ----------------------------------------------------------------------------
# Kernel: one grid step == (one batch element, one DecoderLayer).  The running
# activation x is carried in the resident output block across the layer axis.
# ----------------------------------------------------------------------------
def _decoder_layer_kernel(num_heads, collect_weights, *refs):
    (x_ref, state_ref,
     wq1, bq1, wk1, bk1, wv1, bv1, wo1, bo1,
     wq2, bq2, wk2, bk2, wv2, bv2, wo2, bo2,
     wf1, bf1, wf2, bf2,
     g1, be1, g2, be2, g3, be3) = refs[:28]
    x_out_ref = refs[28]
    self_w_ref = refs[29] if collect_weights else None
    cross_w_ref = refs[30] if collect_weights else None

    layer = pl.program_id(1)

    # Seed the carried activation with the kernel input on the first layer.
    @pl.when(layer == 0)
    def _():
        x_out_ref[...] = x_ref[...]

    x = x_out_ref[0]            # (S1, E)  carried across the layer axis
    state = state_ref[0]        # (S2, E)
    E = x.shape[-1]
    H = num_heads
    hd = E // H
    scale = 1.0 / math.sqrt(hd)

    def dense(v, w_r, b_r):
        # v: (S, Din) fp32 -> bf16 MXU operand; w_r: (1, Din, Dout) bf16
        # weights; fp32 MXU accumulation; fp32 bias add.
        return jnp.dot(v.astype(jnp.bfloat16), w_r[0],
                       preferred_element_type=jnp.float32) + b_r[0]

    def mha(xq, xkv, wq, bq, wk, bk, wv, bv, wo, bo, w_out_ref):
        sq, skv = xq.shape[0], xkv.shape[0]
        q = dense(xq, wq, bq) * scale          # scale folded into q
        k = dense(xkv, wk, bk)
        v = dense(xkv, wv, bv)
        qh = jnp.transpose(q.reshape(sq, H, hd), (1, 0, 2))    # (H, Sq, hd)
        kh = jnp.transpose(k.reshape(skv, H, hd), (1, 0, 2))   # (H, Skv, hd)
        vh = jnp.transpose(v.reshape(skv, H, hd), (1, 0, 2))   # (H, Skv, hd)
        # Fused-head batched matmuls (one einsum for all heads).
        logits = jnp.einsum('hqd,hkd->hqk',
                            qh.astype(jnp.bfloat16), kh.astype(jnp.bfloat16),
                            preferred_element_type=jnp.float32)
        logits = logits - jnp.max(logits, axis=-1, keepdims=True)
        e = jnp.exp(logits)
        w = e * pl.reciprocal(jnp.sum(e, axis=-1, keepdims=True), approx=True)
        if w_out_ref is not None:
            w_out_ref[0, 0] = w                # (H, Sq, Skv): one store
        att = jnp.einsum('hqk,hkd->hqd',
                         w.astype(jnp.bfloat16), vh.astype(jnp.bfloat16),
                         preferred_element_type=jnp.float32)   # (H, Sq, hd)
        att = jnp.transpose(att, (1, 0, 2)).reshape(sq, E)
        return dense(att, wo, bo)

    # --- self attention + residual + layernorm (dropout == identity) --------
    y_att = mha(x, x, wq1, bq1, wk1, bk1, wv1, bv1, wo1, bo1, self_w_ref)
    y = _layer_norm(x + y_att, g1[0], be1[0])

    # --- cross attention over encoder state ----------------------------------
    z_att = mha(y, state, wq2, bq2, wk2, bk2, wv2, bv2, wo2, bo2, cross_w_ref)
    v_res = _layer_norm(y + z_att, g2[0], be2[0])

    # --- feed-forward (Dense relu -> Dense) -----------------------------------
    hmid = jnp.maximum(dense(v_res, wf1, bf1), 0.0)
    ff_out = dense(hmid, wf2, bf2)

    # NOTE: torch DecoderLayer uses z (the raw mha2 output) as the residual.
    x_out_ref[0] = _layer_norm(z_att + ff_out, g3[0], be3[0])


# ----------------------------------------------------------------------------
# Wrapper
# ----------------------------------------------------------------------------
def decoder_forward(x, state, params, num_heads, *, return_attn_weights=True):
    B, S1, E = x.shape
    _, S2, _ = state.shape
    L = params['wq1'].shape[0]
    FF = params['wf1'].shape[-1]

    act_map = lambda b, l: (b, 0, 0)        # per-batch block, resident over l
    par_map = lambda b, l: (l, 0, 0)        # per-layer parameter block
    attn_map = lambda b, l: (b, l, 0, 0, 0) # transpose folded into index_map

    mat_spec = lambda din, dout: pl.BlockSpec((1, din, dout), par_map)
    vec_spec = lambda d: pl.BlockSpec((1, 1, d), par_map)

    in_specs = [pl.BlockSpec((1, S1, E), act_map),
                pl.BlockSpec((1, S2, E), act_map)]
    for _ in range(2):                      # mha1, mha2 : q, k, v, o
        for _ in range(4):
            in_specs.append(mat_spec(E, E))
            in_specs.append(vec_spec(E))
    in_specs += [mat_spec(E, FF), vec_spec(FF), mat_spec(FF, E), vec_spec(E)]
    in_specs += [vec_spec(E)] * 6           # 3 layernorms: gamma, beta

    out_specs = [pl.BlockSpec((1, S1, E), act_map)]
    out_shape = [jax.ShapeDtypeStruct((B, S1, E), jnp.float32)]
    if return_attn_weights:
        out_specs += [pl.BlockSpec((1, 1, num_heads, S1, S1), attn_map),
                      pl.BlockSpec((1, 1, num_heads, S1, S2), attn_map)]
        out_shape += [
            jax.ShapeDtypeStruct((B, L, num_heads, S1, S1), jnp.float32),
            jax.ShapeDtypeStruct((B, L, num_heads, S1, S2), jnp.float32)]

    # bf16 weight matrices for the MXU (fp32 accumulation in-kernel); biases
    # and LN params stay fp32.  At production E/FF also consider
    # pipeline_mode=pl.Buffered(1) on the big weight specs or an FF K-tiling
    # grid axis so double-buffered weights fit v7x's 64 MiB VMEM.
    wcast = lambda n: params[n].astype(jnp.bfloat16)
    args = [x, state]
    for idx in (1, 2):
        for n in ('q', 'k', 'v', 'o'):
            args += [wcast(f'w{n}{idx}'), params[f'b{n}{idx}']]
    args += [wcast('wf1'), params['bf1'], wcast('wf2'), params['bf2']]
    for i in (1, 2, 3):
        args += [params[f'g{i}'], params[f'be{i}']]

    outs = pl.pallas_call(
        functools.partial(_decoder_layer_kernel, num_heads, return_attn_weights),
        out_shape=tuple(out_shape),
        grid_spec=pltpu.PrefetchScalarGridSpec(
            num_scalar_prefetch=0,
            grid=(B, L),                    # batch parallel, layers carried
            in_specs=in_specs,
            out_specs=out_specs,
        ),
        compiler_params=pltpu.CompilerParams(
            dimension_semantics=("parallel", "arbitrary"),
            vmem_limit_bytes=64 * 1024 * 1024),
    )(*args)

    if return_attn_weights:
        out, self_w, cross_w = outs
        return out, {'self_attn_weights': self_w,
                     'cross_attn_weights': cross_w}
    out = outs[0] if isinstance(outs, (tuple, list)) else outs
    return out, {}


# ----------------------------------------------------------------------------
# Deterministic parameter init (weights stacked along a leading layer axis)
# ----------------------------------------------------------------------------
def init_params(key, num_layers, embed_dim, ff_hidden):
    ki = iter(jax.random.split(key, 64))
    mat = lambda k, din, dout: 0.05 * jax.random.normal(
        k, (num_layers, din, dout), jnp.float32)
    bias = lambda k, d: 0.01 * jax.random.normal(
        k, (num_layers, 1, d), jnp.float32)
    p = {}
    for idx in (1, 2):
        for n in ('q', 'k', 'v', 'o'):
            p[f'w{n}{idx}'] = mat(next(ki), embed_dim, embed_dim)
            p[f'b{n}{idx}'] = bias(next(ki), embed_dim)
    p['wf1'] = mat(next(ki), embed_dim, ff_hidden)
    p['bf1'] = bias(next(ki), ff_hidden)
    p['wf2'] = mat(next(ki), ff_hidden, embed_dim)
    p['bf2'] = bias(next(ki), embed_dim)
    for i in (1, 2, 3):
        p[f'g{i}'] = jnp.ones((num_layers, 1, embed_dim), jnp.float32)
        p[f'be{i}'] = jnp.zeros((num_layers, 1, embed_dim), jnp.float32)
    return p


# ----------------------------------------------------------------------------
# Pure-JAX reference (same mixed-precision policy as the kernel: bf16 MXU
# inputs, fp32 accumulation), for correctness check only.
# ----------------------------------------------------------------------------
def _ref_dense(v, w, b):
    return jnp.einsum('...sd,de->...se', v.astype(jnp.bfloat16),
                      w.astype(jnp.bfloat16),
                      preferred_element_type=jnp.float32) + b


def _ref_mha(xq, xkv, wq, bq, wk, bk, wv, bv, wo, bo, H):
    B, Sq, E = xq.shape
    Skv = xkv.shape[1]
    hd = E // H
    q = _ref_dense(xq, wq, bq).reshape(B, Sq, H, hd).transpose(0, 2, 1, 3)
    k = _ref_dense(xkv, wk, bk).reshape(B, Skv, H, hd).transpose(0, 2, 1, 3)
    v = _ref_dense(xkv, wv, bv).reshape(B, Skv, H, hd).transpose(0, 2, 1, 3)
    logits = jnp.einsum('bhqd,bhkd->bhqk', q.astype(jnp.bfloat16),
                        k.astype(jnp.bfloat16),
                        preferred_element_type=jnp.float32) / math.sqrt(hd)
    w = jax.nn.softmax(logits, axis=-1)
    att = jnp.einsum('bhqk,bhkd->bhqd', w.astype(jnp.bfloat16),
                     v.astype(jnp.bfloat16),
                     preferred_element_type=jnp.float32)
    att = att.transpose(0, 2, 1, 3).reshape(B, Sq, E)
    return _ref_dense(att, wo, bo), w


def _ref_decoder(x, state, p, H):
    L = p['wq1'].shape[0]
    sw, cw = [], []
    for i in range(L):
        g = lambda n: p[n][i]
        y_att, w1 = _ref_mha(x, x, g('wq1'), g('bq1'), g('wk1'), g('bk1'),
                             g('wv1'), g('bv1'), g('wo1'), g('bo1'), H)
        y = _layer_norm(x + y_att, g('g1'), g('be1'))
        z_att, w2 = _ref_mha(y, state, g('wq2'), g('bq2'), g('wk2'), g('bk2'),
                             g('wv2'), g('bv2'), g('wo2'), g('bo2'), H)
        v = _layer_norm(y + z_att, g('g2'), g('be2'))
        h = jax.nn.relu(_ref_dense(v, g('wf1'), g('bf1')))
        ff = _ref_dense(h, g('wf2'), g('bf2'))
        x = _layer_norm(z_att + ff, g('g3'), g('be3'))
        sw.append(w1)
        cw.append(w2)
    return x, jnp.stack(sw, 1), jnp.stack(cw, 1)   # (B, L, H, Sq, Skv)


if __name__ == "__main__":
    B, S1, S2 = 2, 8, 16          # batch, target seq, encoder-state seq
    E, FF, L, H = 32, 64, 2, 4    # embed, ff hidden, num layers, num heads

    key = jax.random.PRNGKey(0)
    kx, ks, kp = jax.random.split(key, 3)
    x = jax.random.normal(kx, (B, S1, E), jnp.float32)
    state = jax.random.normal(ks, (B, S2, E), jnp.float32)
    params = init_params(kp, L, E, FF)

    out, attn = decoder_forward(x, state, params, H)
    jax.block_until_ready((out, attn))

    ref_out, ref_sw, ref_cw = _ref_decoder(x, state, params, H)
    assert jnp.allclose(out, ref_out, atol=3e-2, rtol=3e-2), \
        float(jnp.max(jnp.abs(out - ref_out)))
    assert jnp.allclose(attn['self_attn_weights'], ref_sw, atol=1e-2)
    assert jnp.allclose(attn['cross_attn_weights'], ref_cw, atol=1e-2)

    print("KERNEL_OK")
</pallas_src>

<mosaic_0001>
module attributes {stable_mosaic.version = 11 : i64} {
  func.func @_decoder_layer_kernel(%arg0: i32, %arg1: i32, %arg2: memref<1x8x32xf32, #tpu.memory_space<vmem>>, %arg3: memref<1x16x32xf32, #tpu.memory_space<vmem>>, %arg4: memref<1x32x32xbf16, #tpu.memory_space<vmem>>, %arg5: memref<1x1x32xf32, #tpu.memory_space<vmem>>, %arg6: memref<1x32x32xbf16, #tpu.memory_space<vmem>>, %arg7: memref<1x1x32xf32, #tpu.memory_space<vmem>>, %arg8: memref<1x32x32xbf16, #tpu.memory_space<vmem>>, %arg9: memref<1x1x32xf32, #tpu.memory_space<vmem>>, %arg10: memref<1x32x32xbf16, #tpu.memory_space<vmem>>, %arg11: memref<1x1x32xf32, #tpu.memory_space<vmem>>, %arg12: memref<1x32x32xbf16, #tpu.memory_space<vmem>>, %arg13: memref<1x1x32xf32, #tpu.memory_space<vmem>>, %arg14: memref<1x32x32xbf16, #tpu.memory_space<vmem>>, %arg15: memref<1x1x32xf32, #tpu.memory_space<vmem>>, %arg16: memref<1x32x32xbf16, #tpu.memory_space<vmem>>, %arg17: memref<1x1x32xf32, #tpu.memory_space<vmem>>, %arg18: memref<1x32x32xbf16, #tpu.memory_space<vmem>>, %arg19: memref<1x1x32xf32, #tpu.memory_space<vmem>>, %arg20: memref<1x32x64xbf16, #tpu.memory_space<vmem>>, %arg21: memref<1x1x64xf32, #tpu.memory_space<vmem>>, %arg22: memref<1x64x32xbf16, #tpu.memory_space<vmem>>, %arg23: memref<1x1x32xf32, #tpu.memory_space<vmem>>, %arg24: memref<1x1x32xf32, #tpu.memory_space<vmem>>, %arg25: memref<1x1x32xf32, #tpu.memory_space<vmem>>, %arg26: memref<1x1x32xf32, #tpu.memory_space<vmem>>, %arg27: memref<1x1x32xf32, #tpu.memory_space<vmem>>, %arg28: memref<1x1x32xf32, #tpu.memory_space<vmem>>, %arg29: memref<1x1x32xf32, #tpu.memory_space<vmem>>, %arg30: memref<1x8x32xf32, #tpu.memory_space<vmem>>, %arg31: memref<1x1x4x8x8xf32, #tpu.memory_space<vmem>>, %arg32: memref<1x1x4x8x16xf32, #tpu.memory_space<vmem>>) attributes {dimension_semantics = [#tpu.dimension_semantics<parallel>, #tpu.dimension_semantics<arbitrary>], iteration_bounds = array<i64: 2, 2>, scalar_prefetch = 0 : i64, scratch_operands = 0 : i64, tpu.core_type = #tpu.core_type<tc>, window_params = [{transform_indices = @transform_0, window_bounds = array<i64: 1, 8, 32>}, {transform_indices = @transform_1, window_bounds = array<i64: 1, 16, 32>}, {transform_indices = @transform_2, window_bounds = array<i64: 1, 32, 32>}, {transform_indices = @transform_3, window_bounds = array<i64: 1, 1, 32>}, {transform_indices = @transform_4, window_bounds = array<i64: 1, 32, 32>}, {transform_indices = @transform_5, window_bounds = array<i64: 1, 1, 32>}, {transform_indices = @transform_6, window_bounds = array<i64: 1, 32, 32>}, {transform_indices = @transform_7, window_bounds = array<i64: 1, 1, 32>}, {transform_indices = @transform_8, window_bounds = array<i64: 1, 32, 32>}, {transform_indices = @transform_9, window_bounds = array<i64: 1, 1, 32>}, {transform_indices = @transform_10, window_bounds = array<i64: 1, 32, 32>}, {transform_indices = @transform_11, window_bounds = array<i64: 1, 1, 32>}, {transform_indices = @transform_12, window_bounds = array<i64: 1, 32, 32>}, {transform_indices = @transform_13, window_bounds = array<i64: 1, 1, 32>}, {transform_indices = @transform_14, window_bounds = array<i64: 1, 32, 32>}, {transform_indices = @transform_15, window_bounds = array<i64: 1, 1, 32>}, {transform_indices = @transform_16, window_bounds = array<i64: 1, 32, 32>}, {transform_indices = @transform_17, window_bounds = array<i64: 1, 1, 32>}, {transform_indices = @transform_18, window_bounds = array<i64: 1, 32, 64>}, {transform_indices = @transform_19, window_bounds = array<i64: 1, 1, 64>}, {transform_indices = @transform_20, window_bounds = array<i64: 1, 64, 32>}, {transform_indices = @transform_21, window_bounds = array<i64: 1, 1, 32>}, {transform_indices = @transform_22, window_bounds = array<i64: 1, 1, 32>}, {transform_indices = @transform_23, window_bounds = array<i64: 1, 1, 32>}, {transform_indices = @transform_24, window_bounds = array<i64: 1, 1, 32>}, {transform_indices = @transform_25, window_bounds = array<i64: 1, 1, 32>}, {transform_indices = @transform_26, window_bounds = array<i64: 1, 1, 32>}, {transform_indices = @transform_27, window_bounds = array<i64: 1, 1, 32>}, {transform_indices = @transform_28, window_bounds = array<i64: 1, 8, 32>}, {transform_indices = @transform_29, window_bounds = array<i64: 1, 1, 4, 8, 8>}, {transform_indices = @transform_30, window_bounds = array<i64: 1, 1, 4, 8, 16>}]} {
    %c0_i32 = arith.constant 0 : i32
    %0 = arith.cmpi eq, %arg1, %c0_i32 : i32
    %1 = arith.extui %0 : i1 to i32
    %c0_i32_0 = arith.constant 0 : i32
    %2 = arith.cmpi ne, %1, %c0_i32_0 : i32
    scf.if %2 {
      %c0_132 = arith.constant 0 : index
      %c0_133 = arith.constant 0 : index
      %c0_134 = arith.constant 0 : index
      %231 = vector.load %arg2[%c0_132, %c0_133, %c0_134] : memref<1x8x32xf32, #tpu.memory_space<vmem>>, vector<1x8x32xf32>
      %c0_135 = arith.constant 0 : index
      %c0_136 = arith.constant 0 : index
      %c0_137 = arith.constant 0 : index
      %232 = vector.load %arg30[%c0_135, %c0_136, %c0_137] : memref<1x8x32xf32, #tpu.memory_space<vmem>>, vector<1x8x32xf32>
      tpu.vector_store %arg30[%c0_135, %c0_136, %c0_137], %231 {strides = array<i32>} : memref<1x8x32xf32, #tpu.memory_space<vmem>>, vector<1x8x32xf32>,
    } else {
    }
    %c0 = arith.constant 0 : index
    %c0_1 = arith.constant 0 : index
    %c0_2 = arith.constant 0 : index
    %3 = vector.load %arg30[%c0, %c0_1, %c0_2] : memref<1x8x32xf32, #tpu.memory_space<vmem>>, vector<1x8x32xf32>
    %4 = vector.shape_cast %3 : vector<1x8x32xf32> to vector<8x32xf32>
    %c0_3 = arith.constant 0 : index
    %c0_4 = arith.constant 0 : index
    %c0_5 = arith.constant 0 : index
    %5 = vector.load %arg3[%c0_3, %c0_4, %c0_5] : memref<1x16x32xf32, #tpu.memory_space<vmem>>, vector<1x16x32xf32>
    %6 = vector.shape_cast %5 : vector<1x16x32xf32> to vector<16x32xf32>
    %7 = arith.truncf %4 : vector<8x32xf32> to vector<8x32xbf16>
    %c0_6 = arith.constant 0 : index
    %c0_7 = arith.constant 0 : index
    %c0_8 = arith.constant 0 : index
    %8 = vector.load %arg4[%c0_6, %c0_7, %c0_8] : memref<1x32x32xbf16, #tpu.memory_space<vmem>>, vector<1x32x32xbf16>
    %9 = vector.shape_cast %8 : vector<1x32x32xbf16> to vector<32x32xbf16>
    %cst = arith.constant dense<0.000000e+00> : vector<8x32xf32>
    %10 = tpu.matmul %7, %9, %cst {dimension_numbers = #tpu.dot_dimension_numbers<[1], [0], [0], [1], [0, 0, 1, 1], [], []>} : vector<8x32xbf16>, vector<32x32xbf16>, vector<8x32xf32> -> vector<8x32xf32>
    %c0_9 = arith.constant 0 : index
    %c0_10 = arith.constant 0 : index
    %c0_11 = arith.constant 0 : index
    %11 = vector.load %arg5[%c0_9, %c0_10, %c0_11] : memref<1x1x32xf32, #tpu.memory_space<vmem>>, vector<1x1x32xf32>
    %12 = vector.shape_cast %11 : vector<1x1x32xf32> to vector<1x32xf32>
    %13 = vector.broadcast %12 : vector<1x32xf32> to vector<8x32xf32>
    %14 = arith.addf %10, %13 : vector<8x32xf32>
    %cst_12 = arith.constant 0.353553385 : f32
    %15 = vector.broadcast %cst_12 : f32 to vector<8x32xf32>
    %16 = arith.mulf %14, %15 : vector<8x32xf32>
    %17 = arith.truncf %4 : vector<8x32xf32> to vector<8x32xbf16>
    %c0_13 = arith.constant 0 : index
    %c0_14 = arith.constant 0 : index
    %c0_15 = arith.constant 0 : index
    %18 = vector.load %arg6[%c0_13, %c0_14, %c0_15] : memref<1x32x32xbf16, #tpu.memory_space<vmem>>, vector<1x32x32xbf16>
    %19 = vector.shape_cast %18 : vector<1x32x32xbf16> to vector<32x32xbf16>
    %cst_16 = arith.constant dense<0.000000e+00> : vector<8x32xf32>
    %20 = tpu.matmul %17, %19, %cst_16 {dimension_numbers = #tpu.dot_dimension_numbers<[1], [0], [0], [1], [0, 0, 1, 1], [], []>} : vector<8x32xbf16>, vector<32x32xbf16>, vector<8x32xf32> -> vector<8x32xf32>
    %c0_17 = arith.constant 0 : index
    %c0_18 = arith.constant 0 : index
    %c0_19 = arith.constant 0 : index
    %21 = vector.load %arg7[%c0_17, %c0_18, %c0_19] : memref<1x1x32xf32, #tpu.memory_space<vmem>>, vector<1x1x32xf32>
    %22 = vector.shape_cast %21 : vector<1x1x32xf32> to vector<1x32xf32>
    %23 = vector.broadcast %22 : vector<1x32xf32> to vector<8x32xf32>
    %24 = arith.addf %20, %23 : vector<8x32xf32>
    %25 = arith.truncf %4 : vector<8x32xf32> to vector<8x32xbf16>
    %c0_20 = arith.constant 0 : index
    %c0_21 = arith.constant 0 : index
    %c0_22 = arith.constant 0 : index
    %26 = vector.load %arg8[%c0_20, %c0_21, %c0_22] : memref<1x32x32xbf16, #tpu.memory_space<vmem>>, vector<1x32x32xbf16>
    %27 = vector.shape_cast %26 : vector<1x32x32xbf16> to vector<32x32xbf16>
    %cst_23 = arith.constant dense<0.000000e+00> : vector<8x32xf32>
    %28 = tpu.matmul %25, %27, %cst_23 {dimension_numbers = #tpu.dot_dimension_numbers<[1], [0], [0], [1], [0, 0, 1, 1], [], []>} : vector<8x32xbf16>, vector<32x32xbf16>, vector<8x32xf32> -> vector<8x32xf32>
    %c0_24 = arith.constant 0 : index
    %c0_25 = arith.constant 0 : index
    %c0_26 = arith.constant 0 : index
    %29 = vector.load %arg9[%c0_24, %c0_25, %c0_26] : memref<1x1x32xf32, #tpu.memory_space<vmem>>, vector<1x1x32xf32>
    %30 = vector.shape_cast %29 : vector<1x1x32xf32> to vector<1x32xf32>
    %31 = vector.broadcast %30 : vector<1x32xf32> to vector<8x32xf32>
    %32 = arith.addf %28, %31 : vector<8x32xf32>
    %33 = vector.shape_cast %16 : vector<8x32xf32> to vector<8x4x8xf32>
    %34 = tpu.transpose %33, [1, 0, 2] : vector<8x4x8xf32> -> vector<4x8x8xf32>
    %35 = vector.shape_cast %24 : vector<8x32xf32> to vector<8x4x8xf32>
    %36 = tpu.transpose %35, [1, 0, 2] : vector<8x4x8xf32> -> vector<4x8x8xf32>
    %37 = vector.shape_cast %32 : vector<8x32xf32> to vector<8x4x8xf32>
    %38 = tpu.transpose %37, [1, 0, 2] : vector<8x4x8xf32> -> vector<4x8x8xf32>
    %39 = arith.truncf %34 : vector<4x8x8xf32> to vector<4x8x8xbf16>
    %40 = arith.truncf %36 : vector<4x8x8xf32> to vector<4x8x8xbf16>
    "tpu.trace_start"() <{level = 10 : i32, message = "hqd,hkd->hqk"}> : () -> ()
    %cst_27 = arith.constant dense<0.000000e+00> : vector<4x8x8xf32>
    %41 = tpu.matmul %39, %40, %cst_27 {dimension_numbers = #tpu.dot_dimension_numbers<[2], [2], [1], [1], [0, 0, 0, 1, 1, 1], [0], [0]>} : vector<4x8x8xbf16>, vector<4x8x8xbf16>, vector<4x8x8xf32> -> vector<4x8x8xf32>
    "tpu.trace_stop"() : () -> ()
    %cst_28 = arith.constant dense<0xFF800000> : vector<4x8xf32>
    %42 = vector.multi_reduction <maximumf>, %41, %cst_28 [2] : vector<4x8x8xf32> to vector<4x8xf32>
    %43 = vector.shape_cast %42 : vector<4x8xf32> to vector<4x8x1xf32>
    %44 = vector.broadcast %43 : vector<4x8x1xf32> to vector<4x8x8xf32>
    %45 = arith.subf %41, %44 : vector<4x8x8xf32>
    %46 = math.exp %45 : vector<4x8x8xf32>
    %cst_29 = arith.constant dense<0.000000e+00> : vector<4x8xf32>
    %47 = vector.multi_reduction <add>, %46, %cst_29 [2] : vector<4x8x8xf32> to vector<4x8xf32>
    %48 = vector.shape_cast %47 : vector<4x8xf32> to vector<4x8x1xf32>
    %49 = tpu.reciprocal %48 {approx = true} : vector<4x8x1xf32> -> vector<4x8x1xf32>
    %50 = vector.broadcast %49 : vector<4x8x1xf32> to vector<4x8x8xf32>
    %51 = arith.mulf %46, %50 : vector<4x8x8xf32>
    %c0_30 = arith.constant 0 : index
    %c0_31 = arith.constant 0 : index
    %c0_32 = arith.constant 0 : index
    %c0_33 = arith.constant 0 : index
    %c0_34 = arith.constant 0 : index
    %52 = vector.load %arg31[%c0_30, %c0_31, %c0_32, %c0_33, %c0_34] : memref<1x1x4x8x8xf32, #tpu.memory_space<vmem>>, vector<1x1x4x8x8xf32>
    %53 = vector.shape_cast %52 : vector<1x1x4x8x8xf32> to vector<4x8x8xf32>
    %54 = vector.shape_cast %51 : vector<4x8x8xf32> to vector<1x1x4x8x8xf32>
    tpu.vector_store %arg31[%c0_30, %c0_31, %c0_32, %c0_33, %c0_34], %54 {strides = array<i32>} : memref<1x1x4x8x8xf32, #tpu.memory_space<vmem>>, vector<1x1x4x8x8xf32>,
    %55 = arith.truncf %51 : vector<4x8x8xf32> to vector<4x8x8xbf16>
    %56 = arith.truncf %38 : vector<4x8x8xf32> to vector<4x8x8xbf16>
    "tpu.trace_start"() <{level = 10 : i32, message = "hqk,hkd->hqd"}> : () -> ()
    %cst_35 = arith.constant dense<0.000000e+00> : vector<4x8x8xf32>
    %57 = tpu.matmul %55, %56, %cst_35 {dimension_numbers = #tpu.dot_dimension_numbers<[2], [1], [1], [2], [0, 0, 0, 1, 1, 2], [0], [0]>} : vector<4x8x8xbf16>, vector<4x8x8xbf16>, vector<4x8x8xf32> -> vector<4x8x8xf32>
    "tpu.trace_stop"() : () -> ()
    %58 = tpu.transpose %57, [1, 0, 2] : vector<4x8x8xf32> -> vector<8x4x8xf32>
    %59 = vector.shape_cast %58 : vector<8x4x8xf32> to vector<8x32xf32>
    %60 = arith.truncf %59 : vector<8x32xf32> to vector<8x32xbf16>
    %c0_36 = arith.constant 0 : index
    %c0_37 = arith.constant 0 : index
    %c0_38 = arith.constant 0 : index
    %61 = vector.load %arg10[%c0_36, %c0_37, %c0_38] : memref<1x32x32xbf16, #tpu.memory_space<vmem>>, vector<1x32x32xbf16>
    %62 = vector.shape_cast %61 : vector<1x32x32xbf16> to vector<32x32xbf16>
    %cst_39 = arith.constant dense<0.000000e+00> : vector<8x32xf32>
    %63 = tpu.matmul %60, %62, %cst_39 {dimension_numbers = #tpu.dot_dimension_numbers<[1], [0], [0], [1], [0, 0, 1, 1], [], []>} : vector<8x32xbf16>, vector<32x32xbf16>, vector<8x32xf32> -> vector<8x32xf32>
    %c0_40 = arith.constant 0 : index
    %c0_41 = arith.constant 0 : index
    %c0_42 = arith.constant 0 : index
    %64 = vector.load %arg11[%c0_40, %c0_41, %c0_42] : memref<1x1x32xf32, #tpu.memory_space<vmem>>, vector<1x1x32xf32>
    %65 = vector.shape_cast %64 : vector<1x1x32xf32> to vector<1x32xf32>
    %66 = vector.broadcast %65 : vector<1x32xf32> to vector<8x32xf32>
    %67 = arith.addf %63, %66 : vector<8x32xf32>
    %68 = arith.addf %4, %67 : vector<8x32xf32>
    %c0_43 = arith.constant 0 : index
    %c0_44 = arith.constant 0 : index
    %c0_45 = arith.constant 0 : index
    %69 = vector.load %arg24[%c0_43, %c0_44, %c0_45] : memref<1x1x32xf32, #tpu.memory_space<vmem>>, vector<1x1x32xf32>
    %70 = vector.shape_cast %69 : vector<1x1x32xf32> to vector<1x32xf32>
    %c0_46 = arith.constant 0 : index
    %c0_47 = arith.constant 0 : index
    %c0_48 = arith.constant 0 : index
    %71 = vector.load %arg25[%c0_46, %c0_47, %c0_48] : memref<1x1x32xf32, #tpu.memory_space<vmem>>, vector<1x1x32xf32>
    %72 = vector.shape_cast %71 : vector<1x1x32xf32> to vector<1x32xf32>
    %cst_49 = arith.constant dense<0.000000e+00> : vector<8xf32>
    %73 = vector.multi_reduction <add>, %68, %cst_49 [1] : vector<8x32xf32> to vector<8xf32>
    %74 = vector.shape_cast %73 : vector<8xf32> to vector<8x1xf32>
    %cst_50 = arith.constant 3.200000e+01 : f32
    %75 = vector.broadcast %cst_50 : f32 to vector<8x1xf32>
    %76 = arith.divf %74, %75 : vector<8x1xf32>
    %77 = vector.broadcast %76 : vector<8x1xf32> to vector<8x32xf32>
    %78 = arith.subf %68, %77 : vector<8x32xf32>
    %79 = arith.mulf %78, %78 : vector<8x32xf32>
    %cst_51 = arith.constant dense<0.000000e+00> : vector<8xf32>
    %80 = vector.multi_reduction <add>, %79, %cst_51 [1] : vector<8x32xf32> to vector<8xf32>
    %81 = vector.shape_cast %80 : vector<8xf32> to vector<8x1xf32>
    %cst_52 = arith.constant 3.200000e+01 : f32
    %82 = vector.broadcast %cst_52 : f32 to vector<8x1xf32>
    %83 = arith.divf %81, %82 : vector<8x1xf32>
    %84 = vector.broadcast %76 : vector<8x1xf32> to vector<8x32xf32>
    %85 = arith.subf %68, %84 : vector<8x32xf32>
    %cst_53 = arith.constant 9.99999974E-6 : f32
    %86 = vector.broadcast %cst_53 : f32 to vector<8x1xf32>
    %87 = arith.addf %83, %86 : vector<8x1xf32>
    %88 = math.rsqrt %87 : vector<8x1xf32>
    %89 = vector.broadcast %88 : vector<8x1xf32> to vector<8x32xf32>
    %90 = arith.mulf %85, %89 : vector<8x32xf32>
    %91 = vector.broadcast %70 : vector<1x32xf32> to vector<8x32xf32>
    %92 = arith.mulf %90, %91 : vector<8x32xf32>
    %93 = vector.broadcast %72 : vector<1x32xf32> to vector<8x32xf32>
    %94 = arith.addf %92, %93 : vector<8x32xf32>
    %95 = arith.truncf %94 : vector<8x32xf32> to vector<8x32xbf16>
    %c0_54 = arith.constant 0 : index
    %c0_55 = arith.constant 0 : index
    %c0_56 = arith.constant 0 : index
    %96 = vector.load %arg12[%c0_54, %c0_55, %c0_56] : memref<1x32x32xbf16, #tpu.memory_space<vmem>>, vector<1x32x32xbf16>
    %97 = vector.shape_cast %96 : vector<1x32x32xbf16> to vector<32x32xbf16>
    %cst_57 = arith.constant dense<0.000000e+00> : vector<8x32xf32>
    %98 = tpu.matmul %95, %97, %cst_57 {dimension_numbers = #tpu.dot_dimension_numbers<[1], [0], [0], [1], [0, 0, 1, 1], [], []>} : vector<8x32xbf16>, vector<32x32xbf16>, vector<8x32xf32> -> vector<8x32xf32>
    %c0_58 = arith.constant 0 : index
    %c0_59 = arith.constant 0 : index
    %c0_60 = arith.constant 0 : index
    %99 = vector.load %arg13[%c0_58, %c0_59, %c0_60] : memref<1x1x32xf32, #tpu.memory_space<vmem>>, vector<1x1x32xf32>
    %100 = vector.shape_cast %99 : vector<1x1x32xf32> to vector<1x32xf32>
    %101 = vector.broadcast %100 : vector<1x32xf32> to vector<8x32xf32>
    %102 = arith.addf %98, %101 : vector<8x32xf32>
    %cst_61 = arith.constant 0.353553385 : f32
    %103 = vector.broadcast %cst_61 : f32 to vector<8x32xf32>
    %104 = arith.mulf %102, %103 : vector<8x32xf32>
    %105 = arith.truncf %6 : vector<16x32xf32> to vector<16x32xbf16>
    %c0_62 = arith.constant 0 : index
    %c0_63 = arith.constant 0 : index
    %c0_64 = arith.constant 0 : index
    %106 = vector.load %arg14[%c0_62, %c0_63, %c0_64] : memref<1x32x32xbf16, #tpu.memory_space<vmem>>, vector<1x32x32xbf16>
    %107 = vector.shape_cast %106 : vector<1x32x32xbf16> to vector<32x32xbf16>
    %cst_65 = arith.constant dense<0.000000e+00> : vector<16x32xf32>
    %108 = tpu.matmul %105, %107, %cst_65 {dimension_numbers = #tpu.dot_dimension_numbers<[1], [0], [0], [1], [0, 0, 1, 1], [], []>} : vector<16x32xbf16>, vector<32x32xbf16>, vector<16x32xf32> -> vector<16x32xf32>
    %c0_66 = arith.constant 0 : index
    %c0_67 = arith.constant 0 : index
    %c0_68 = arith.constant 0 : index
    %109 = vector.load %arg15[%c0_66, %c0_67, %c0_68] : memref<1x1x32xf32, #tpu.memory_space<vmem>>, vector<1x1x32xf32>
    %110 = vector.shape_cast %109 : vector<1x1x32xf32> to vector<1x32xf32>
    %111 = vector.broadcast %110 : vector<1x32xf32> to vector<16x32xf32>
    %112 = arith.addf %108, %111 : vector<16x32xf32>
    %113 = arith.truncf %6 : vector<16x32xf32> to vector<16x32xbf16>
    %c0_69 = arith.constant 0 : index
    %c0_70 = arith.constant 0 : index
    %c0_71 = arith.constant 0 : index
    %114 = vector.load %arg16[%c0_69, %c0_70, %c0_71] : memref<1x32x32xbf16, #tpu.memory_space<vmem>>, vector<1x32x32xbf16>
    %115 = vector.shape_cast %114 : vector<1x32x32xbf16> to vector<32x32xbf16>
    %cst_72 = arith.constant dense<0.000000e+00> : vector<16x32xf32>
    %116 = tpu.matmul %113, %115, %cst_72 {dimension_numbers = #tpu.dot_dimension_numbers<[1], [0], [0], [1], [0, 0, 1, 1], [], []>} : vector<16x32xbf16>, vector<32x32xbf16>, vector<16x32xf32> -> vector<16x32xf32>
    %c0_73 = arith.constant 0 : index
    %c0_74 = arith.constant 0 : index
    %c0_75 = arith.constant 0 : index
    %117 = vector.load %arg17[%c0_73, %c0_74, %c0_75] : memref<1x1x32xf32, #tpu.memory_space<vmem>>, vector<1x1x32xf32>
    %118 = vector.shape_cast %117 : vector<1x1x32xf32> to vector<1x32xf32>
    %119 = vector.broadcast %118 : vector<1x32xf32> to vector<16x32xf32>
    %120 = arith.addf %116, %119 : vector<16x32xf32>
    %121 = vector.shape_cast %104 : vector<8x32xf32> to vector<8x4x8xf32>
    %122 = tpu.transpose %121, [1, 0, 2] : vector<8x4x8xf32> -> vector<4x8x8xf32>
    %123 = vector.shape_cast %112 : vector<16x32xf32> to vector<16x4x8xf32>
    %124 = tpu.transpose %123, [1, 0, 2] : vector<16x4x8xf32> -> vector<4x16x8xf32>
    %125 = vector.shape_cast %120 : vector<16x32xf32> to vector<16x4x8xf32>
    %126 = tpu.transpose %125, [1, 0, 2] : vector<16x4x8xf32> -> vector<4x16x8xf32>
    %127 = arith.truncf %122 : vector<4x8x8xf32> to vector<4x8x8xbf16>
    %128 = arith.truncf %124 : vector<4x16x8xf32> to vector<4x16x8xbf16>
    "tpu.trace_start"() <{level = 10 : i32, message = "hqd,hkd->hqk"}> : () -> ()
    %cst_76 = arith.constant dense<0.000000e+00> : vector<4x8x16xf32>
    %129 = tpu.matmul %127, %128, %cst_76 {dimension_numbers = #tpu.dot_dimension_numbers<[2], [2], [1], [1], [0, 0, 0, 1, 1, 1], [0], [0]>} : vector<4x8x8xbf16>, vector<4x16x8xbf16>, vector<4x8x16xf32> -> vector<4x8x16xf32>
    "tpu.trace_stop"() : () -> ()
    %cst_77 = arith.constant dense<0xFF800000> : vector<4x8xf32>
    %130 = vector.multi_reduction <maximumf>, %129, %cst_77 [2] : vector<4x8x16xf32> to vector<4x8xf32>
    %131 = vector.shape_cast %130 : vector<4x8xf32> to vector<4x8x1xf32>
    %132 = vector.broadcast %131 : vector<4x8x1xf32> to vector<4x8x16xf32>
    %133 = arith.subf %129, %132 : vector<4x8x16xf32>
    %134 = math.exp %133 : vector<4x8x16xf32>
    %cst_78 = arith.constant dense<0.000000e+00> : vector<4x8xf32>
    %135 = vector.multi_reduction <add>, %134, %cst_78 [2] : vector<4x8x16xf32> to vector<4x8xf32>
    %136 = vector.shape_cast %135 : vector<4x8xf32> to vector<4x8x1xf32>
    %137 = tpu.reciprocal %136 {approx = true} : vector<4x8x1xf32> -> vector<4x8x1xf32>
    %138 = vector.broadcast %137 : vector<4x8x1xf32> to vector<4x8x16xf32>
    %139 = arith.mulf %134, %138 : vector<4x8x16xf32>
    %c0_79 = arith.constant 0 : index
    %c0_80 = arith.constant 0 : index
    %c0_81 = arith.constant 0 : index
    %c0_82 = arith.constant 0 : index
    %c0_83 = arith.constant 0 : index
    %140 = vector.load %arg32[%c0_79, %c0_80, %c0_81, %c0_82, %c0_83] : memref<1x1x4x8x16xf32, #tpu.memory_space<vmem>>, vector<1x1x4x8x16xf32>
    %141 = vector.shape_cast %140 : vector<1x1x4x8x16xf32> to vector<4x8x16xf32>
    %142 = vector.shape_cast %139 : vector<4x8x16xf32> to vector<1x1x4x8x16xf32>
    tpu.vector_store %arg32[%c0_79, %c0_80, %c0_81, %c0_82, %c0_83], %142 {strides = array<i32>} : memref<1x1x4x8x16xf32, #tpu.memory_space<vmem>>, vector<1x1x4x8x16xf32>,
    %143 = arith.truncf %139 : vector<4x8x16xf32> to vector<4x8x16xbf16>
    %144 = arith.truncf %126 : vector<4x16x8xf32> to vector<4x16x8xbf16>
    "tpu.trace_start"() <{level = 10 : i32, message = "hqk,hkd->hqd"}> : () -> ()
    %cst_84 = arith.constant dense<0.000000e+00> : vector<4x8x8xf32>
    %145 = tpu.matmul %143, %144, %cst_84 {dimension_numbers = #tpu.dot_dimension_numbers<[2], [1], [1], [2], [0, 0, 0, 1, 1, 2], [0], [0]>} : vector<4x8x16xbf16>, vector<4x16x8xbf16>, vector<4x8x8xf32> -> vector<4x8x8xf32>
    "tpu.trace_stop"() : () -> ()
    %146 = tpu.transpose %145, [1, 0, 2] : vector<4x8x8xf32> -> vector<8x4x8xf32>
    %147 = vector.shape_cast %146 : vector<8x4x8xf32> to vector<8x32xf32>
    %148 = arith.truncf %147 : vector<8x32xf32> to vector<8x32xbf16>
    %c0_85 = arith.constant 0 : index
    %c0_86 = arith.constant 0 : index
    %c0_87 = arith.constant 0 : index
    %149 = vector.load %arg18[%c0_85, %c0_86, %c0_87] : memref<1x32x32xbf16, #tpu.memory_space<vmem>>, vector<1x32x32xbf16>
    %150 = vector.shape_cast %149 : vector<1x32x32xbf16> to vector<32x32xbf16>
    %cst_88 = arith.constant dense<0.000000e+00> : vector<8x32xf32>
    %151 = tpu.matmul %148, %150, %cst_88 {dimension_numbers = #tpu.dot_dimension_numbers<[1], [0], [0], [1], [0, 0, 1, 1], [], []>} : vector<8x32xbf16>, vector<32x32xbf16>, vector<8x32xf32> -> vector<8x32xf32>
    %c0_89 = arith.constant 0 : index
    %c0_90 = arith.constant 0 : index
    %c0_91 = arith.constant 0 : index
    %152 = vector.load %arg19[%c0_89, %c0_90, %c0_91] : memref<1x1x32xf32, #tpu.memory_space<vmem>>, vector<1x1x32xf32>
    %153 = vector.shape_cast %152 : vector<1x1x32xf32> to vector<1x32xf32>
    %154 = vector.broadcast %153 : vector<1x32xf32> to vector<8x32xf32>
    %155 = arith.addf %151, %154 : vector<8x32xf32>
    %156 = arith.addf %94, %155 : vector<8x32xf32>
    %c0_92 = arith.constant 0 : index
    %c0_93 = arith.constant 0 : index
    %c0_94 = arith.constant 0 : index
    %157 = vector.load %arg26[%c0_92, %c0_93, %c0_94] : memref<1x1x32xf32, #tpu.memory_space<vmem>>, vector<1x1x32xf32>
    %158 = vector.shape_cast %157 : vector<1x1x32xf32> to vector<1x32xf32>
    %c0_95 = arith.constant 0 : index
    %c0_96 = arith.constant 0 : index
    %c0_97 = arith.constant 0 : index
    %159 = vector.load %arg27[%c0_95, %c0_96, %c0_97] : memref<1x1x32xf32, #tpu.memory_space<vmem>>, vector<1x1x32xf32>
    %160 = vector.shape_cast %159 : vector<1x1x32xf32> to vector<1x32xf32>
    %cst_98 = arith.constant dense<0.000000e+00> : vector<8xf32>
    %161 = vector.multi_reduction <add>, %156, %cst_98 [1] : vector<8x32xf32> to vector<8xf32>
    %162 = vector.shape_cast %161 : vector<8xf32> to vector<8x1xf32>
    %cst_99 = arith.constant 3.200000e+01 : f32
    %163 = vector.broadcast %cst_99 : f32 to vector<8x1xf32>
    %164 = arith.divf %162, %163 : vector<8x1xf32>
    %165 = vector.broadcast %164 : vector<8x1xf32> to vector<8x32xf32>
    %166 = arith.subf %156, %165 : vector<8x32xf32>
    %167 = arith.mulf %166, %166 : vector<8x32xf32>
    %cst_100 = arith.constant dense<0.000000e+00> : vector<8xf32>
    %168 = vector.multi_reduction <add>, %167, %cst_100 [1] : vector<8x32xf32> to vector<8xf32>
    %169 = vector.shape_cast %168 : vector<8xf32> to vector<8x1xf32>
    %cst_101 = arith.constant 3.200000e+01 : f32
    %170 = vector.broadcast %cst_101 : f32 to vector<8x1xf32>
    %171 = arith.divf %169, %170 : vector<8x1xf32>
    %172 = vector.broadcast %164 : vector<8x1xf32> to vector<8x32xf32>
    %173 = arith.subf %156, %172 : vector<8x32xf32>
    %cst_102 = arith.constant 9.99999974E-6 : f32
    %174 = vector.broadcast %cst_102 : f32 to vector<8x1xf32>
    %175 = arith.addf %171, %174 : vector<8x1xf32>
    %176 = math.rsqrt %175 : vector<8x1xf32>
    %177 = vector.broadcast %176 : vector<8x1xf32> to vector<8x32xf32>
    %178 = arith.mulf %173, %177 : vector<8x32xf32>
    %179 = vector.broadcast %158 : vector<1x32xf32> to vector<8x32xf32>
    %180 = arith.mulf %178, %179 : vector<8x32xf32>
    %181 = vector.broadcast %160 : vector<1x32xf32> to vector<8x32xf32>
    %182 = arith.addf %180, %181 : vector<8x32xf32>
    %183 = arith.truncf %182 : vector<8x32xf32> to vector<8x32xbf16>
    %c0_103 = arith.constant 0 : index
    %c0_104 = arith.constant 0 : index
    %c0_105 = arith.constant 0 : index
    %184 = vector.load %arg20[%c0_103, %c0_104, %c0_105] : memref<1x32x64xbf16, #tpu.memory_space<vmem>>, vector<1x32x64xbf16>
    %185 = vector.shape_cast %184 : vector<1x32x64xbf16> to vector<32x64xbf16>
    %cst_106 = arith.constant dense<0.000000e+00> : vector<8x64xf32>
    %186 = tpu.matmul %183, %185, %cst_106 {dimension_numbers = #tpu.dot_dimension_numbers<[1], [0], [0], [1], [0, 0, 1, 1], [], []>} : vector<8x32xbf16>, vector<32x64xbf16>, vector<8x64xf32> -> vector<8x64xf32>
    %c0_107 = arith.constant 0 : index
    %c0_108 = arith.constant 0 : index
    %c0_109 = arith.constant 0 : index
    %187 = vector.load %arg21[%c0_107, %c0_108, %c0_109] : memref<1x1x64xf32, #tpu.memory_space<vmem>>, vector<1x1x64xf32>
    %188 = vector.shape_cast %187 : vector<1x1x64xf32> to vector<1x64xf32>
    %189 = vector.broadcast %188 : vector<1x64xf32> to vector<8x64xf32>
    %190 = arith.addf %186, %189 : vector<8x64xf32>
    %cst_110 = arith.constant 0.000000e+00 : f32
    %191 = vector.broadcast %cst_110 : f32 to vector<8x64xf32>
    %192 = arith.maximumf %190, %191 : vector<8x64xf32>
    %193 = arith.truncf %192 : vector<8x64xf32> to vector<8x64xbf16>
    %c0_111 = arith.constant 0 : index
    %c0_112 = arith.constant 0 : index
    %c0_113 = arith.constant 0 : index
    %194 = vector.load %arg22[%c0_111, %c0_112, %c0_113] : memref<1x64x32xbf16, #tpu.memory_space<vmem>>, vector<1x64x32xbf16>
    %195 = vector.shape_cast %194 : vector<1x64x32xbf16> to vector<64x32xbf16>
    %cst_114 = arith.constant dense<0.000000e+00> : vector<8x32xf32>
    %196 = tpu.matmul %193, %195, %cst_114 {dimension_numbers = #tpu.dot_dimension_numbers<[1], [0], [0], [1], [0, 0, 1, 1], [], []>} : vector<8x64xbf16>, vector<64x32xbf16>, vector<8x32xf32> -> vector<8x32xf32>
    %c0_115 = arith.constant 0 : index
    %c0_116 = arith.constant 0 : index
    %c0_117 = arith.constant 0 : index
    %197 = vector.load %arg23[%c0_115, %c0_116, %c0_117] : memref<1x1x32xf32, #tpu.memory_space<vmem>>, vector<1x1x32xf32>
    %198 = vector.shape_cast %197 : vector<1x1x32xf32> to vector<1x32xf32>
    %199 = vector.broadcast %198 : vector<1x32xf32> to vector<8x32xf32>
    %200 = arith.addf %196, %199 : vector<8x32xf32>
    %201 = arith.addf %155, %200 : vector<8x32xf32>
    %c0_118 = arith.constant 0 : index
    %c0_119 = arith.constant 0 : index
    %c0_120 = arith.constant 0 : index
    %202 = vector.load %arg28[%c0_118, %c0_119, %c0_120] : memref<1x1x32xf32, #tpu.memory_space<vmem>>, vector<1x1x32xf32>
    %203 = vector.shape_cast %202 : vector<1x1x32xf32> to vector<1x32xf32>
    %c0_121 = arith.constant 0 : index
    %c0_122 = arith.constant 0 : index
    %c0_123 = arith.constant 0 : index
    %204 = vector.load %arg29[%c0_121, %c0_122, %c0_123] : memref<1x1x32xf32, #tpu.memory_space<vmem>>, vector<1x1x32xf32>
    %205 = vector.shape_cast %204 : vector<1x1x32xf32> to vector<1x32xf32>
    %cst_124 = arith.constant dense<0.000000e+00> : vector<8xf32>
    %206 = vector.multi_reduction <add>, %201, %cst_124 [1] : vector<8x32xf32> to vector<8xf32>
    %207 = vector.shape_cast %206 : vector<8xf32> to vector<8x1xf32>
    %cst_125 = arith.constant 3.200000e+01 : f32
    %208 = vector.broadcast %cst_125 : f32 to vector<8x1xf32>
    %209 = arith.divf %207, %208 : vector<8x1xf32>
    %210 = vector.broadcast %209 : vector<8x1xf32> to vector<8x32xf32>
    %211 = arith.subf %201, %210 : vector<8x32xf32>
    %212 = arith.mulf %211, %211 : vector<8x32xf32>
    %cst_126 = arith.constant dense<0.000000e+00> : vector<8xf32>
    %213 = vector.multi_reduction <add>, %212, %cst_126 [1] : vector<8x32xf32> to vector<8xf32>
    %214 = vector.shape_cast %213 : vector<8xf32> to vector<8x1xf32>
    %cst_127 = arith.constant 3.200000e+01 : f32
    %215 = vector.broadcast %cst_127 : f32 to vector<8x1xf32>
    %216 = arith.divf %214, %215 : vector<8x1xf32>
    %217 = vector.broadcast %209 : vector<8x1xf32> to vector<8x32xf32>
    %218 = arith.subf %201, %217 : vector<8x32xf32>
    %cst_128 = arith.constant 9.99999974E-6 : f32
    %219 = vector.broadcast %cst_128 : f32 to vector<8x1xf32>
    %220 = arith.addf %216, %219 : vector<8x1xf32>
    %221 = math.rsqrt %220 : vector<8x1xf32>
    %222 = vector.broadcast %221 : vector<8x1xf32> to vector<8x32xf32>
    %223 = arith.mulf %218, %222 : vector<8x32xf32>
    %224 = vector.broadcast %203 : vector<1x32xf32> to vector<8x32xf32>
    %225 = arith.mulf %223, %224 : vector<8x32xf32>
    %226 = vector.broadcast %205 : vector<1x32xf32> to vector<8x32xf32>
    %227 = arith.addf %225, %226 : vector<8x32xf32>
    %c0_129 = arith.constant 0 : index
    %c0_130 = arith.constant 0 : index
    %c0_131 = arith.constant 0 : index
    %228 = vector.load %arg30[%c0_129, %c0_130, %c0_131] : memref<1x8x32xf32, #tpu.memory_space<vmem>>, vector<1x8x32xf32>
    %229 = vector.shape_cast %228 : vector<1x8x32xf32> to vector<8x32xf32>
    %230 = vector.shape_cast %227 : vector<8x32xf32> to vector<1x8x32xf32>
    tpu.vector_store %arg30[%c0_129, %c0_130, %c0_131], %230 {strides = array<i32>} : memref<1x8x32xf32, #tpu.memory_space<vmem>>, vector<1x8x32xf32>,
    return
  }
  func.func @transform_0(%arg0: i32, %arg1: i32) -> (i32, i32, i32) {
    %c0_i32 = arith.constant 0 : i32
    %c0_i32_0 = arith.constant 0 : i32
    %c0_i32_1 = arith.constant 0 : i32
    return %arg0, %c0_i32, %c0_i32_0 : i32, i32, i32
  }
  func.func @transform_1(%arg0: i32, %arg1: i32) -> (i32, i32, i32) {
    %c0_i32 = arith.constant 0 : i32
    %c0_i32_0 = arith.constant 0 : i32
    %c0_i32_1 = arith.constant 0 : i32
    return %arg0, %c0_i32, %c0_i32_0 : i32, i32, i32
  }
  func.func @transform_2(%arg0: i32, %arg1: i32) -> (i32, i32, i32) {
    %c0_i32 = arith.constant 0 : i32
    %c0_i32_0 = arith.constant 0 : i32
    %c0_i32_1 = arith.constant 0 : i32
    return %arg1, %c0_i32, %c0_i32_0 : i32, i32, i32
  }
  func.func @transform_3(%arg0: i32, %arg1: i32) -> (i32, i32, i32) {
    %c0_i32 = arith.constant 0 : i32
    %c0_i32_0 = arith.constant 0 : i32
    %c0_i32_1 = arith.constant 0 : i32
    return %arg1, %c0_i32, %c0_i32_0 : i32, i32, i32
  }
  func.func @transform_4(%arg0: i32, %arg1: i32) -> (i32, i32, i32) {
    %c0_i32 = arith.constant 0 : i32
    %c0_i32_0 = arith.constant 0 : i32
    %c0_i32_1 = arith.constant 0 : i32
    return %arg1, %c0_i32, %c0_i32_0 : i32, i32, i32
  }
  func.func @transform_5(%arg0: i32, %arg1: i32) -> (i32, i32, i32) {
    %c0_i32 = arith.constant 0 : i32
    %c0_i32_0 = arith.constant 0 : i32
    %c0_i32_1 = arith.constant 0 : i32
    return %arg1, %c0_i32, %c0_i32_0 : i32, i32, i32
  }
  func.func @transform_6(%arg0: i32, %arg1: i32) -> (i32, i32, i32) {
    %c0_i32 = arith.constant 0 : i32
    %c0_i32_0 = arith.constant 0 : i32
    %c0_i32_1 = arith.constant 0 : i32
    return %arg1, %c0_i32, %c0_i32_0 : i32, i32, i32
  }
  func.func @transform_7(%arg0: i32, %arg1: i32) -> (i32, i32, i32) {
    %c0_i32 = arith.constant 0 : i32
    %c0_i32_0 = arith.constant 0 : i32
    %c0_i32_1 = arith.constant 0 : i32
    return %arg1, %c0_i32, %c0_i32_0 : i32, i32, i32
  }
  func.func @transform_8(%arg0: i32, %arg1: i32) -> (i32, i32, i32) {
    %c0_i32 = arith.constant 0 : i32
    %c0_i32_0 = arith.constant 0 : i32
    %c0_i32_1 = arith.constant 0 : i32
    return %arg1, %c0_i32, %c0_i32_0 : i32, i32, i32
  }
  func.func @transform_9(%arg0: i32, %arg1: i32) -> (i32, i32, i32) {
    %c0_i32 = arith.constant 0 : i32
    %c0_i32_0 = arith.constant 0 : i32
    %c0_i32_1 = arith.constant 0 : i32
    return %arg1, %c0_i32, %c0_i32_0 : i32, i32, i32
  }
  func.func @transform_10(%arg0: i32, %arg1: i32) -> (i32, i32, i32) {
    %c0_i32 = arith.constant 0 : i32
    %c0_i32_0 = arith.constant 0 : i32
    %c0_i32_1 = arith.constant 0 : i32
    return %arg1, %c0_i32, %c0_i32_0 : i32, i32, i32
  }
  func.func @transform_11(%arg0: i32, %arg1: i32) -> (i32, i32, i32) {
    %c0_i32 = arith.constant 0 : i32
    %c0_i32_0 = arith.constant 0 : i32
    %c0_i32_1 = arith.constant 0 : i32
    return %arg1, %c0_i32, %c0_i32_0 : i32, i32, i32
  }
  func.func @transform_12(%arg0: i32, %arg1: i32) -> (i32, i32, i32) {
    %c0_i32 = arith.constant 0 : i32
    %c0_i32_0 = arith.constant 0 : i32
    %c0_i32_1 = arith.constant 0 : i32
    return %arg1, %c0_i32, %c0_i32_0 : i32, i32, i32
  }
  func.func @transform_13(%arg0: i32, %arg1: i32) -> (i32, i32, i32) {
    %c0_i32 = arith.constant 0 : i32
    %c0_i32_0 = arith.constant 0 : i32
    %c0_i32_1 = arith.constant 0 : i32
    return %arg1, %c0_i32, %c0_i32_0 : i32, i32, i32
  }
  func.func @transform_14(%arg0: i32, %arg1: i32) -> (i32, i32, i32) {
    %c0_i32 = arith.constant 0 : i32
    %c0_i32_0 = arith.constant 0 : i32
    %c0_i32_1 = arith.constant 0 : i32
    return %arg1, %c0_i32, %c0_i32_0 : i32, i32, i32
  }
  func.func @transform_15(%arg0: i32, %arg1: i32) -> (i32, i32, i32) {
    %c0_i32 = arith.constant 0 : i32
    %c0_i32_0 = arith.constant 0 : i32
    %c0_i32_1 = arith.constant 0 : i32
    return %arg1, %c0_i32, %c0_i32_0 : i32, i32, i32
  }
  func.func @transform_16(%arg0: i32, %arg1: i32) -> (i32, i32, i32) {
    %c0_i32 = arith.constant 0 : i32
    %c0_i32_0 = arith.constant 0 : i32
    %c0_i32_1 = arith.constant 0 : i32
    return %arg1, %c0_i32, %c0_i32_0 : i32, i32, i32
  }
  func.func @transform_17(%arg0: i32, %arg1: i32) -> (i32, i32, i32) {
    %c0_i32 = arith.constant 0 : i32
    %c0_i32_0 = arith.constant 0 : i32
    %c0_i32_1 = arith.constant 0 : i32
    return %arg1, %c0_i32, %c0_i32_0 : i32, i32, i32
  }
  func.func @transform_18(%arg0: i32, %arg1: i32) -> (i32, i32, i32) {
    %c0_i32 = arith.constant 0 : i32
    %c0_i32_0 = arith.constant 0 : i32
    %c0_i32_1 = arith.constant 0 : i32
    return %arg1, %c0_i32, %c0_i32_0 : i32, i32, i32
  }
  func.func @transform_19(%arg0: i32, %arg1: i32) -> (i32, i32, i32) {
    %c0_i32 = arith.constant 0 : i32
    %c0_i32_0 = arith.constant 0 : i32
    %c0_i32_1 = arith.constant 0 : i32
    return %arg1, %c0_i32, %c0_i32_0 : i32, i32, i32
  }
  func.func @transform_20(%arg0: i32, %arg1: i32) -> (i32, i32, i32) {
    %c0_i32 = arith.constant 0 : i32
    %c0_i32_0 = arith.constant 0 : i32
    %c0_i32_1 = arith.constant 0 : i32
    return %arg1, %c0_i32, %c0_i32_0 : i32, i32, i32
  }
  func.func @transform_21(%arg0: i32, %arg1: i32) -> (i32, i32, i32) {
    %c0_i32 = arith.constant 0 : i32
    %c0_i32_0 = arith.constant 0 : i32
    %c0_i32_1 = arith.constant 0 : i32
    return %arg1, %c0_i32, %c0_i32_0 : i32, i32, i32
  }
  func.func @transform_22(%arg0: i32, %arg1: i32) -> (i32, i32, i32) {
    %c0_i32 = arith.constant 0 : i32
    %c0_i32_0 = arith.constant 0 : i32
    %c0_i32_1 = arith.constant 0 : i32
    return %arg1, %c0_i32, %c0_i32_0 : i32, i32, i32
  }
  func.func @transform_23(%arg0: i32, %arg1: i32) -> (i32, i32, i32) {
    %c0_i32 = arith.constant 0 : i32
    %c0_i32_0 = arith.constant 0 : i32
    %c0_i32_1 = arith.constant 0 : i32
    return %arg1, %c0_i32, %c0_i32_0 : i32, i32, i32
  }
  func.func @transform_24(%arg0: i32, %arg1: i32) -> (i32, i32, i32) {
    %c0_i32 = arith.constant 0 : i32
    %c0_i32_0 = arith.constant 0 : i32
    %c0_i32_1 = arith.constant 0 : i32
    return %arg1, %c0_i32, %c0_i32_0 : i32, i32, i32
  }
  func.func @transform_25(%arg0: i32, %arg1: i32) -> (i32, i32, i32) {
    %c0_i32 = arith.constant 0 : i32
    %c0_i32_0 = arith.constant 0 : i32
    %c0_i32_1 = arith.constant 0 : i32
    return %arg1, %c0_i32, %c0_i32_0 : i32, i32, i32
  }
  func.func @transform_26(%arg0: i32, %arg1: i32) -> (i32, i32, i32) {
    %c0_i32 = arith.constant 0 : i32
    %c0_i32_0 = arith.constant 0 : i32
    %c0_i32_1 = arith.constant 0 : i32
    return %arg1, %c0_i32, %c0_i32_0 : i32, i32, i32
  }
  func.func @transform_27(%arg0: i32, %arg1: i32) -> (i32, i32, i32) {
    %c0_i32 = arith.constant 0 : i32
    %c0_i32_0 = arith.constant 0 : i32
    %c0_i32_1 = arith.constant 0 : i32
    return %arg1, %c0_i32, %c0_i32_0 : i32, i32, i32
  }
  func.func @transform_28(%arg0: i32, %arg1: i32) -> (i32, i32, i32) {
    %c0_i32 = arith.constant 0 : i32
    %c0_i32_0 = arith.constant 0 : i32
    %c0_i32_1 = arith.constant 0 : i32
    return %arg0, %c0_i32, %c0_i32_0 : i32, i32, i32
  }
  func.func @transform_29(%arg0: i32, %arg1: i32) -> (i32, i32, i32, i32, i32) {
    %c0_i32 = arith.constant 0 : i32
    %c0_i32_0 = arith.constant 0 : i32
    %c0_i32_1 = arith.constant 0 : i32
    %c0_i32_2 = arith.constant 0 : i32
    return %arg0, %arg1, %c0_i32, %c0_i32_0, %c0_i32_1 : i32, i32, i32, i32, i32
  }
  func.func @transform_30(%arg0: i32, %arg1: i32) -> (i32, i32, i32, i32, i32) {
    %c0_i32 = arith.constant 0 : i32
    %c0_i32_0 = arith.constant 0 : i32
    %c0_i32_1 = arith.constant 0 : i32
    %c0_i32_2 = arith.constant 0 : i32
    return %arg0, %arg1, %c0_i32, %c0_i32_0, %c0_i32_1 : i32, i32, i32, i32, i32
  }
}

</mosaic_0001>

<bundles_post_ra>
// kernel: tpu_custom_call.1
= control target key start
LH: loop header
LB: loop body
LE: loop exit
PB: predicated region body
PF: predicated region fallthrough
CT: control target
= control target key end

     0   :  { %s6792_s6 = smov 1   ;;  %s6793_s10 = smov 2   ;;  %s8323_s0 = inlined_call_operand.smem [shape: u32[31], index: -1, kind: input, shape index: {}] }
   0x1   :  { %s6862_s5 = sld [smem:[%s8323_s0]]   ;;  %s6794_s14 = smov 3  }
   0x2   :  { %s6867_s9 = sld [smem:[%s8323_s0 + %s6792_s6]]   ;;  %s6795_s18 = smov 4  }
   0x3   :  { %s6872_s13 = sld [smem:[%s8323_s0 + %s6793_s10]]   ;;  %s6796_s22 = smov 5  }
   0x4   :  { %s6877_s17 = sld [smem:[%s8323_s0 + %s6794_s14]]   ;;  %s6797_s26 = smov 6  }
   0x5   :  { %s6882_s21 = sld [smem:[%s8323_s0 + %s6795_s18]]   ;;  %s6798_s30 = smov 7  }
   0x6   :  { %s6887_s25 = sld [smem:[%s8323_s0 + %s6796_s22]]   ;;  %s6799_s4 = smov 8  }
   0x7   :  { %8397 = sst [smem:[#allocation43_spill]] %s6862_s5  ;;  %s6800_s10 = smov 9  }
   0x8   :  { %8398 = sst [smem:[#allocation44_spill]] %s6867_s9  ;;  %s6801_s15 = smov 10  }
   0x9   :  { %8399 = sst [smem:[#allocation45_spill]] %s6872_s13  ;;  %s6802_s20 = smov 11  }
   0xa   :  { %8400 = sst [smem:[#allocation46_spill]] %s6877_s17  ;;  %s6804_s1 = smov 13  }
   0xb   :  { %8401 = sst [smem:[#allocation47_spill]] %s6882_s21  ;;  %s6805_s7 = smov 14  }
   0xc   :  { %8402 = sst [smem:[#allocation48_spill]] %s6887_s25  ;;  %s6807_s22 = smov 16  }
   0xd   :  { %s6892_s29 = sld [smem:[%s8323_s0 + %s6797_s26]]   ;;  %s6803_s26 = smov 12  }
   0xe   :  { %s6897_s3 = sld [smem:[%s8323_s0 + %s6798_s30]]   ;;  %s6808_s28 = smov 17  }
   0xf   :  { %s6902_s8 = sld [smem:[%s8323_s0 + %s6799_s4]]  }
  0x10   :  { %s6907_s14 = sld [smem:[%s8323_s0 + %s6800_s10]]  }
  0x11   :  { %s6912_s19 = sld [smem:[%s8323_s0 + %s6801_s15]]   ;;  %s6806_s15 = smov 15  }
  0x12   :  { %s6917_s24 = sld [smem:[%s8323_s0 + %s6802_s20]]  }
  0x13   :  { %8403 = sst [smem:[#allocation49_spill]] %s6892_s29 }
  0x14   :  { %8404 = sst [smem:[#allocation50_spill]] %s6897_s3 }
  0x15   :  { %8405 = sst [smem:[#allocation51_spill]] %s6902_s8 }
  0x16   :  { %8406 = sst [smem:[#allocation52_spill]] %s6907_s14 }
  0x17   :  { %8407 = sst [smem:[#allocation53_spill]] %s6912_s19 }
  0x18   :  { %8408 = sst [smem:[#allocation54_spill]] %s6917_s24 }
  0x19   :  { %s6922_s30 = sld [smem:[%s8323_s0 + %s6803_s26]]  }
  0x1a   :  { %s6927_s6 = sld [smem:[%s8323_s0 + %s6804_s1]]  }
  0x1b   :  { %s6932_s12 = sld [smem:[%s8323_s0 + %s6805_s7]]   ;;  %s6809_s7 = smov 18  }
  0x1c   :  { %s6937_s20 = sld [smem:[%s8323_s0 + %s6806_s15]]   ;;  %s6810_s15 = smov 19  }
  0x1d   :  { %s6942_s27 = sld [smem:[%s8323_s0 + %s6807_s22]]   ;;  %s6811_s22 = smov 20  }
  0x1e   :  { %s6947_s4 = sld [smem:[%s8323_s0 + %s6808_s28]]   ;;  %s6812_s28 = smov 21  }
  0x1f   :  { %8409 = sst [smem:[#allocation55_spill]] %s6922_s30 }
  0x20   :  { %8410 = sst [smem:[#allocation56_spill]] %s6927_s6 }
  0x21   :  { %8411 = sst [smem:[#allocation57_spill]] %s6932_s12 }
  0x22   :  { %8412 = sst [smem:[#allocation58_spill]] %s6937_s20 }
  0x23   :  { %8413 = sst [smem:[#allocation59_spill]] %s6942_s27 }
  0x24   :  { %8414 = sst [smem:[#allocation60_spill]] %s6947_s4 }
  0x25   :  { %s6952_s25 = sld [smem:[%s8323_s0 + %s6809_s7]]   ;;  %s6813_s7 = smov 22  }
  0x26   :  { %s6957_s21 = sld [smem:[%s8323_s0 + %s6810_s15]]   ;;  %s6814_s15 = smov 23  }
  0x27   :  { %s6962_s13 = sld [smem:[%s8323_s0 + %s6811_s22]]   ;;  %s6815_s22 = smov 24  }
  0x28   :  { %s6967_s17 = sld [smem:[%s8323_s0 + %s6812_s28]]   ;;  %s6816_s28 = smov 25  }
  0x29   :  { %s6972_s9 = sld [smem:[%s8323_s0 + %s6813_s7]]   ;;  %s6817_s7 = smov 26  }
  0x2b   :  { %8415 = sst [smem:[#allocation61_spill]] %s6952_s25 }
  0x2c   :  { %8416 = sst [smem:[#allocation62_spill]] %s6957_s21 }
  0x2d   :  { %8417 = sst [smem:[#allocation63_spill]] %s6962_s13 }
  0x2e   :  { %8418 = sst [smem:[#allocation64_spill]] %s6967_s17 }
  0x2f   :  { %8419 = sst [smem:[#allocation65_spill]] %s6972_s9 }
  0x30   :  { %s6977_s21 = sld [smem:[%s8323_s0 + %s6814_s15]]   ;;  %s6818_s15 = smov 27  }
  0x31   :  { %s6982_s13 = sld [smem:[%s8323_s0 + %s6815_s22]]   ;;  %s6819_s22 = smov 28  }
  0x32   :  { %s6987_s17 = sld [smem:[%s8323_s0 + %s6816_s28]]   ;;  %s6820_s28 = smov 29  }
  0x33   :  { %s6992_s9 = sld [smem:[%s8323_s0 + %s6817_s7]]   ;;  %s6821_s7 = smov 30  }
  0x36   :  { %8420 = sst [smem:[#allocation66_spill]] %s6977_s21 }
  0x37   :  { %8421 = sst [smem:[#allocation67_spill]] %s6982_s13 }
  0x38   :  { %8422 = sst [smem:[#allocation68_spill]] %s6987_s17 }
  0x39   :  { %8423 = sst [smem:[#allocation69_spill]] %s6992_s9 }
  0x3a   :  { %s6997_s21 = sld [smem:[%s8323_s0 + %s6818_s15]]  }
  0x3b   :  { %s7002_s13 = sld [smem:[%s8323_s0 + %s6819_s22]]  }
  0x3c   :  { %s7007_s17 = sld [smem:[%s8323_s0 + %s6820_s28]]  }
  0x3d   :  { %s7012_s9 = sld [smem:[%s8323_s0 + %s6821_s7]]  }
  0x40   :  { %8424 = sst [smem:[#allocation70_spill]] %s6997_s21 }
  0x41   :  { %8425 = sst [smem:[#allocation71_spill]] %s7002_s13 }
  0x42   :  { %8426 = sst [smem:[#allocation72_spill]] %s7007_s17 }
  0x43   :  { %8427 = sst [smem:[#allocation73_spill]] %s7012_s9 }
  0x44   :  { %67 = vsyncpa [#allocation3], 0 }
  0x45   :  { %69 = vsyncpa [#allocation3 + $0x1], 0 }
  0x46   :  { %70 = vsyncpa [#allocation6], 0 }
  0x47   :  { %72 = vsyncpa [#allocation6 + $0x1], 0 }
  0x48   :  { %73 = vsyncpa [#allocation9], 0 }
  0x49   :  { %75 = vsyncpa [#allocation9 + $0x1], 0 }
  0x4a   :  { %76 = vsyncpa [#allocation12], 0 }
  0x4b   :  { %78 = vsyncpa [#allocation12 + $0x1], 0 }
  0x4c   :  { %79 = vsyncpa [#allocation15], 0 }
  0x4d   :  { %81 = vsyncpa [#allocation15 + $0x1], 0 }
  0x4e   :  { %82 = vsyncpa [#allocation18], 0 }
  0x4f   :  { %84 = vsyncpa [#allocation18 + $0x1], 0 }
  0x50   :  { %85 = vsyncpa [#allocation21], 0 }
  0x51   :  { %87 = vsyncpa [#allocation21 + $0x1], 0 }
  0x52   :  { %88 = vsyncpa [#allocation24], 0 }
  0x53   :  { %90 = vsyncpa [#allocation24 + $0x1], 0 }
  0x54   :  { %91 = vsyncpa [#allocation27], 0 }
  0x55   :  { %93 = vsyncpa [#allocation27 + $0x1], 0 }
  0x56   :  { %94 = vsyncpa [#allocation4], 0 }
  0x57   :  { %96 = vsyncpa [#allocation4 + $0x1], 0 }
  0x58   :  { %97 = vsyncpa [#allocation30], 0 }
  0x59   :  { %99 = vsyncpa [#allocation30 + $0x1], 0  ;;  %s7014_s0 = smov 0   ;;  %s7016_s15 = smov 0  }
  0x5a   :  { %s7018_s16 = smov 0   ;;  %s7020_s18 = smov 0  }
  0x5b   :  { %s7022_s22 = smov 0   ;;  %s7024_s23 = smov 0  }
  0x5c   :  { %s7026_s26 = smov 0   ;;  %s7028_s28 = smov 0  }
  0x5d   :  { %s7030_s1 = smov 0   ;;  %s7032_s2 = smov 0  }
  0x5e   :  { %s7034_s7 = smov 0   ;;  %s7036_s10 = smov 0  }
  0x5f   :  { %s7038_s11 = smov 0   ;;  %s7040_s13 = smov 0  }
  0x60 LB: > { %s8428_s30 = sld [smem:[#allocation55_spill]]  ;;  %s7085_s9 = sadd.s32 4294967295, %s6790_s13   ;;  %s6762_s26 = sphi %s7026_s26, %s8573_s26   ;;  %s6758_s23 = sphi %s7024_s23, %s8572_s23   ;;  %s6754_s22 = sphi %s7022_s22, %s8571_s22   ;;  %s6750_s18 = sphi %s7020_s18, %s8570_s18   ;;  %s6746_s16 = sphi %s7018_s16, %s8569_s16   ;;  %s6742_s15 = sphi %s7016_s15, %s8568_s15   ;;  %s6738_s0 = sphi %s7014_s0, %s8567_s0   ;;  %s6790_s13 = sphi %s7040_s13, %s105_s13   ;;  %s6786_s11 = sphi %s7038_s11, %s8579_s11   ;;  %s6782_s10 = sphi %s7036_s10, %s8578_s10   ;;  %s6778_s7 = sphi %s7034_s7, %s8581_s7   ;;  %s6774_s2 = sphi %s7032_s2, %s8576_s2   ;;  %s6770_s1 = sphi %s7030_s1, %s8575_s1   ;;  %s6766_s28 = sphi %s7028_s28, %s8574_s28  }
  0x61   : > { %s8429_s27 = sld [smem:[#allocation59_spill]]  ;;  %s114_s21 = sadd.s32 1, %s6782_s10 }
  0x62   : > { %s8430_s25 = sld [smem:[#allocation61_spill]]  ;;  %p115_p0 = scmp.ge.s32.totalorder %s114_s21, 2 }
  0x63   : > { %s8431_s19 = sld [smem:[#allocation53_spill]]  ;;  %p131_p1 = scmp.ne.s32.totalorder %s6770_s1, %s6766_s28 }
  0x64   : > { %s8432_s12 = sld [smem:[#allocation57_spill]]  ;;  %p132_p2 = scmp.eq.s32.totalorder %s6790_s13, 0 }
  0x65   : > { %s8433_s8 = sld [smem:[#allocation51_spill]]  ;;  %s8583_s21 = smov (%p115_p0, %s114_s21), 0 }
  0x66   : > { %s8434_s29 = sld [smem:[#allocation49_spill]]  ;;  %p7102_p3 = por %p132_p2, %p131_p1 }
  0x67   : > { %8435 = sst [smem:[#allocation74_spill]] %s6742_s15  ;;  %p137_p4 = scmp.ne.s32.totalorder %s6766_s28, %s6762_s26 }
  0x68   : > { %8436 = sst [smem:[#allocation75_spill]] %s6746_s16  ;;  %p138_p6 = scmp.eq.s32.totalorder %s7085_s9, 0 }
  0x69   : > { %8437 = sst [smem:[#allocation76_spill]] %s6754_s22  ;;  %s277_s4 = ssub.s32 %s6782_s10, %s8583_s21 }
  0x6a   : > { %8438 = sst [smem:[#allocation77_spill]] %s6758_s23  ;;  %s280_s20 = sadd.s32 1, %s6758_s23 }
  0x6b   : > { %8439 = sst [smem:[#allocation78_spill]] %s6762_s26  ;;  %p7119_p7 = por %p138_p6, %p137_p4 }
  0x6c   : > { %8440 = sst [smem:[#allocation79_spill]] %s6766_s28  ;;  %p278_p8 = scmp.eq.s32.totalorder %s277_s4, 0 }
  0x6d   : > { %8441 = sst [smem:[#allocation80_spill]] %s6770_s1  ;;  %p287_p9 = scmp.ne.s32.totalorder %s6758_s23, %s6754_s22 }
  0x6e   : > { %8442 = sst [smem:[#allocation81_spill]] %s6774_s2  ;;  %s117_s2 = sadd.s32 1, %s6786_s11 }
  0x6f   : > { %8443 = sst [smem:[#allocation82_spill]] %s6778_s7  ;;  %s124_s7 = sadd.s32 1, %s6770_s1 }
  0x70   : > { %8444 = sst [smem:[#allocation83_spill]] %s6782_s10  ;;  %s8585_s2 = smov (!%p115_p0, %s117_s2), %s6786_s11 }
  0x71   : > { %8445 = sst [smem:[#allocation84_spill]] %s6786_s11  ;;  %p119_p5 = scmp.ge.s32.totalorder %s8585_s2, 2 }
  0x72   : > { %8446 = sst [smem:[#allocation85_spill]] %s6790_s13  ;;  %p293_p11 = scmp.ne.s32.totalorder %s6754_s22, %s6750_s18 }
  0x73   : > { %8447 = sst [smem:[#allocation86_spill]] %s8583_s21  ;;  %s8587_s2 = smov (%p119_p5, %s8585_s2), 0 }
  0x74   : > { %s8448_s17 = scalar_select %p7102_p3, 1, 0 }
  0x75   : > { %8450 = sst [smem:[#allocation88_spill]] %s8587_s2  ;;  %s121_s24 = ssub.s32 %s6786_s11, %s8587_s2 }
  0x76   : > { %8449 = sst [smem:[#allocation87_spill]] %s8448_s17  ;;  %p122_p10 = scmp.eq.s32.totalorder %s121_s24, 0 }
  0x77   : > { %s8451_s6 = scalar_select %p7119_p7, 1, 0 }
  0x78   : > { %s7130_s21 = scalar_select %p278_p8, %s6758_s23, %s280_s20  }
  0x79   : > { %8452 = sst [smem:[#allocation89_spill]] %s8451_s6  ;;  %p7137_p12 = por %p287_p9, %p132_p2 }
  0x7a   : > { %8453 = sst [smem:[#allocation90_spill]] %s7130_s21  ;;  %p7143_p13 = por %p293_p11, %p138_p6 }
  0x7b   : > { %s7133_s14 = scalar_select %p122_p10, %s6770_s1, %s124_s7  }
  0x7c   : > { %s8456_s6 = scalar_select %p7143_p13, 1, 0 }
  0x7d   : > { %8454 = sst [smem:[#allocation91_spill]] %s7133_s14  ;;  %p863_p0 = scmp.eq.s32.totalorder %s7085_s9, 3 }
  0x7e   : > { %s8457_s2 = sadd.s32 4294967294, %s6790_s13   ;;  %s877_s17 = sor.u32 %s277_s4, %s121_s24 }
  0x7f   : > { %p869_p5 = scmp.eq.s32.totalorder %s8457_s2, 3  ;;  %s880_s5 = sadd.s32 1, %s6746_s16 }
  0x80   : > { %p7154_p8 = por %p863_p0, %p131_p1  ;;  %p878_p9 = scmp.eq.s32.totalorder %s877_s17, 0 }
  0x81   : > { %p7161_p2 = por %p869_p5, %p137_p4  ;;  %p890_p6 = scmp.ne.s32.totalorder %s6746_s16, %s6742_s15 }
  0x82   : > { %s8458_s20 = scalar_select %p7154_p8, 1, 0 }
  0x83   : > { %s8460_s18 = scalar_select %p7161_p2, 1, 0 }
  0x84   : > { %8459 = sst [smem:[#allocation92_spill]] %s8458_s20  ;;  %p896_p10 = scmp.ne.s32.totalorder %s6742_s15, %s6738_s0 }
  0x85   : > { %8461 = sst [smem:[#allocation93_spill]] %s8460_s18  ;;  %p7172_p11 = por %p890_p6, %p863_p0 }
  0x86   : > { %s7170_s7 = scalar_select %p878_p9, %s6746_s16, %s880_s5  }
  0x87   : > { %s8463_s14 = scalar_select %p7172_p11, 1, 0 }
  0x88   : > { %8462 = sst [smem:[#allocation94_spill]] %s7170_s7  ;;  %p7176_p13 = por %p896_p10, %p869_p5 }
  0x89   : > { %8464 = sst [smem:[#allocation95_spill]] %s8463_s14  ;;  %p5474_p1 = scmp.ge.s32.totalorder %s6790_s13, 4 }
  0x8a   : > { %s8465_s24 = scalar_select %p7176_p13, 1, 0 }
  0x8b   : > { %941 = sbr.rel (%p5474_p1) target bundleno = 521 (0x209), region = 16  ;;  %s7182_s5 = sand.u32 (!%p5474_p1), 1, %s6790_s13  }
  0x8c   : > { %8466 = sst [smem:[#allocation96_spill]] %s8465_s24  ;;  %s7185_s17 = sand.u32 (!%p5474_p1), 1, %s6758_s23  }
  0x8d   : > { %s7188_s4 = sshll.u32 (!%p5474_p1), %s7185_s17, 4  ;;  %s7191_s0 = sshll.u32 (!%p5474_p1), %s6782_s10, 8 }
  0x8e   : > { %s7195_s2 = scalar_lea.hbm (!%p5474_p1), %s8434_s29, %s7191_s0  ;;  %s1003_s21 = scalar_lea.vmem (!%p5474_p1), [#allocation5], %s7188_s4 }
  0x8f   : > { %s1010_s7 = sshll.u32 (!%p5474_p1), %s1003_s21, 4  ;;  %s6142_s24 = scalar_lea.hbm (!%p5474_p1), %s7195_s2, 256  ;;  %s7198_s7 = int_to_ptr.vmem [resolvable:$true] %s1010_s7 }
  0x90   : > { %p6143_p4 = scmp.ne.s32.totalorder %s7195_s2, %s6142_s24  ;;  %s6146_s23 = scalar_lea.hbm %s8434_s29, 512 }
  0x91   : > { %p6147_p9 = scmp.lt.s32.totalorder %s7195_s2, %s8434_s29  ;;  %p6148_p6 = scmp.lt.s32.totalorder %s6146_s23, %s6142_s24 }
  0x92   : > { %p6144_p0 = pnand %p6143_p4, %p7137_p12 }
  0x93   : > { %p6149_p10 = por %p6148_p6, %p6147_p9 }
  0x94   : > { %p6145_p5 = pneg %p6144_p0 }
  0x96   : > { %p6150_p1 = pnand %p6149_p10, %p6145_p5 }
  0x98   : > { %6153 = shalt.err (!%p6150_p1)
}
  0x99   : > { %s6154_s18 = scalar_lea.vmem %s7198_s7, 256  ;;  %s6822_s21 = smov [#allocation5]  }
  0x9a   : > { %p6155_p13 = scmp.ne.s32.totalorder %s7198_s7, %s6154_s18  ;;  %s6158_s16 = sshll.u32 %s6822_s21, 4  ;;  %s6159_s16 = int_to_ptr.vmem [resolvable:$false] %s6158_s16 }
  0x9b   : > { %s6160_s26 = scalar_lea.vmem %s6159_s16, 512  ;;  %p6161_p4 = scmp.lt.s32.totalorder %s7198_s7, %s6159_s16 }
  0x9c   : > { %p6156_p2 = pnand %p6155_p13, %p7137_p12  ;;  %p6162_p0 = scmp.lt.s32.totalorder %s6160_s26, %s6154_s18 }
  0x9e   : > { %p6157_p8 = pneg %p6156_p2  ;;  %p6163_p11 = por %p6162_p0, %p6161_p4 }
  0xa0   : > { %p6164_p7 = pnand %p6163_p11, %p6157_p8 }
  0xa2   : > { %6167 = shalt.err (!%p6164_p7)
}
  0xa3   : > { %s6823_s23 = smov 64   ;;  %s6824_s24 = smov 4  }
  0xa4   : > { %s8467_s16 = scalar_lea.sflag [#allocation6], %s7182_s5  ;;  %s7224_s26 = scalar_lea.hbm %s8433_s8, %s7191_s0 }
  0xa5   : > { %5879 = dma.hbm_to_vmem [thread:$0]  (%p7137_p12), %s7195_s2, 256, %s7198_s7, %s8467_s16, %s6823_s23, %s6823_s23, %s6824_s24  }
  0xa6   : > { %s1041_s18 = scalar_lea.vmem [#allocation8], %s7188_s4  ;;  %s8359_s29 = scalar_lea.sflag [#allocation9], %s7182_s5 }
  0xa7   : > { %s1048_s21 = sshll.u32 %s1041_s18, 4  ;;  %s6168_s20 = scalar_lea.hbm %s7224_s26, 256  ;;  %s7227_s21 = int_to_ptr.vmem [resolvable:$true] %s1048_s21 }
  0xa8   : > { %p6169_p7 = scmp.ne.s32.totalorder %s7224_s26, %s6168_s20  ;;  %s6172_s14 = scalar_lea.hbm %s8433_s8, 512 }
  0xa9   : > { %p6173_p2 = scmp.lt.s32.totalorder %s7224_s26, %s8433_s8  ;;  %p6174_p11 = scmp.lt.s32.totalorder %s6172_s14, %s6168_s20 }
  0xaa   : > { %p6170_p13 = pnand %p6169_p7, %p7137_p12 }
  0xab   : > { %p6175_p5 = por %p6174_p11, %p6173_p2 }
  0xac   : > { %p6171_p8 = pneg %p6170_p13 }
  0xae   : > { %p6176_p9 = pnand %p6175_p5, %p6171_p8 }
  0xb0   : > { %6179 = shalt.err (!%p6176_p9)
}
  0xb1   : > { %s6180_s7 = scalar_lea.vmem %s7227_s21, 256  ;;  %s6825_s2 = smov [#allocation8]  }
  0xb2   : > { %p6181_p6 = scmp.ne.s32.totalorder %s7227_s21, %s6180_s7  ;;  %s6184_s16 = sshll.u32 %s6825_s2, 4  ;;  %s6185_s16 = int_to_ptr.vmem [resolvable:$false] %s6184_s16 }
  0xb3   : > { %s6186_s18 = scalar_lea.vmem %s6185_s16, 512  ;;  %p6187_p4 = scmp.lt.s32.totalorder %s7227_s21, %s6185_s16 }
  0xb4   : > { %p6182_p10 = pnand %p6181_p6, %p7137_p12  ;;  %p6188_p0 = scmp.lt.s32.totalorder %s6186_s18, %s6180_s7 }
  0xb6   : > { %p6183_p1 = pneg %p6182_p10  ;;  %p6189_p7 = por %p6188_p0, %p6187_p4 }
  0xb8   : > { %p6190_p13 = pnand %p6189_p7, %p6183_p1 }
  0xba   : > { %6193 = shalt.err (!%p6190_p13)
}
  0xbb   : > { %5881 = dma.hbm_to_vmem [thread:$0]  (%p7137_p12), %s7224_s26, 256, %s7227_s21, %s8359_s29, %s6823_s23, %s6823_s23, %s6824_s24  }
  0xbc   : > { %s7253_s14 = scalar_lea.hbm %s8431_s19, %s7191_s0  ;;  %s1079_s20 = scalar_lea.vmem [#allocation11], %s7188_s4 }
  0xbd   : > { %s1086_s7 = sshll.u32 %s1079_s20, 4  ;;  %s8360_s2 = scalar_lea.sflag [#allocation12], %s7182_s5  ;;  %s7256_s7 = int_to_ptr.vmem [resolvable:$true] %s1086_s7 }
  0xbe   : > { %s6194_s16 = scalar_lea.hbm %s7253_s14, 256  ;;  %s6198_s18 = scalar_lea.hbm %s8431_s19, 512 }
  0xbf   : > { %p6195_p8 = scmp.ne.s32.totalorder %s7253_s14, %s6194_s16  ;;  %p6199_p5 = scmp.lt.s32.totalorder %s7253_s14, %s8431_s19 }
  0xc0   : > { %p6200_p9 = scmp.lt.s32.totalorder %s6198_s18, %s6194_s16 }
  0xc1   : > { %p6196_p2 = pnand %p6195_p8, %p7137_p12 }
  0xc2   : > { %p6201_p6 = por %p6200_p9, %p6199_p5 }
  0xc3   : > { %p6197_p11 = pneg %p6196_p2 }
  0xc5   : > { %p6202_p10 = pnand %p6201_p6, %p6197_p11 }
  0xc7   : > { %6205 = shalt.err (!%p6202_p10)
}
  0xc8   : > { %s6206_s26 = scalar_lea.vmem %s7256_s7, 256  ;;  %s6826_s21 = smov [#allocation11]  }
  0xc9   : > { %p6207_p1 = scmp.ne.s32.totalorder %s7256_s7, %s6206_s26  ;;  %s6210_s20 = sshll.u32 %s6826_s21, 4  ;;  %s6211_s20 = int_to_ptr.vmem [resolvable:$false] %s6210_s20 }
  0xca   : > { %s6212_s29 = scalar_lea.vmem %s6211_s20, 512  ;;  %p6213_p7 = scmp.lt.s32.totalorder %s7256_s7, %s6211_s20 }
  0xcb   : > { %p6208_p4 = pnand %p6207_p1, %p7137_p12  ;;  %p6214_p13 = scmp.lt.s32.totalorder %s6212_s29, %s6206_s26 }
  0xcd   : > { %p6209_p0 = pneg %p6208_p4  ;;  %p6215_p8 = por %p6214_p13, %p6213_p7 }
  0xcf   : > { %p6216_p2 = pnand %p6215_p8, %p6209_p0 }
  0xd1   : > { %6219 = shalt.err (!%p6216_p2)
}
  0xd2   : > { %5883 = dma.hbm_to_vmem [thread:$0]  (%p7137_p12), %s7253_s14, 256, %s7256_s7, %s8360_s2, %s6823_s23, %s6823_s23, %s6824_s24  }
  0xd3   : > { %s7282_s29 = scalar_lea.hbm %s8428_s30, %s7191_s0  ;;  %s1117_s16 = scalar_lea.vmem [#allocation14], %s7188_s4 }
  0xd4   : > { %s1124_s18 = sshll.u32 %s1117_s16, 4  ;;  %s8361_s26 = scalar_lea.sflag [#allocation15], %s7182_s5  ;;  %s7285_s18 = int_to_ptr.vmem [resolvable:$true] %s1124_s18 }
  0xd5   : > { %s6220_s21 = scalar_lea.hbm %s7282_s29, 256  ;;  %s6224_s20 = scalar_lea.hbm %s8428_s30, 512 }
  0xd6   : > { %p6221_p11 = scmp.ne.s32.totalorder %s7282_s29, %s6220_s21  ;;  %p6225_p6 = scmp.lt.s32.totalorder %s7282_s29, %s8428_s30 }
  0xd7   : > { %p6226_p10 = scmp.lt.s32.totalorder %s6224_s20, %s6220_s21 }
  0xd8   : > { %p6222_p5 = pnand %p6221_p11, %p7137_p12 }
  0xd9   : > { %p6227_p1 = por %p6226_p10, %p6225_p6 }
  0xda   : > { %p6223_p9 = pneg %p6222_p5 }
  0xdc   : > { %p6228_p4 = pnand %p6227_p1, %p6223_p9 }
  0xde   : > { %6231 = shalt.err (!%p6228_p4)
}
  0xdf   : > { %s6232_s14 = scalar_lea.vmem %s7285_s18, 256  ;;  %s6827_s7 = smov [#allocation14]  }
  0xe0   : > { %p6233_p0 = scmp.ne.s32.totalorder %s7285_s18, %s6232_s14  ;;  %s6236_s16 = sshll.u32 %s6827_s7, 4  ;;  %s6237_s16 = int_to_ptr.vmem [resolvable:$false] %s6236_s16 }
  0xe1   : > { %s6238_s2 = scalar_lea.vmem %s6237_s16, 512  ;;  %p6239_p8 = scmp.lt.s32.totalorder %s7285_s18, %s6237_s16 }
  0xe2   : > { %p6234_p7 = pnand %p6233_p0, %p7137_p12  ;;  %p6240_p2 = scmp.lt.s32.totalorder %s6238_s2, %s6232_s14 }
  0xe4   : > { %p6235_p13 = pneg %p6234_p7  ;;  %p6241_p11 = por %p6240_p2, %p6239_p8 }
  0xe6   : > { %p6242_p5 = pnand %p6241_p11, %p6235_p13 }
  0xe8   : > { %6245 = shalt.err (!%p6242_p5)
}
  0xe9   : > { %5885 = dma.hbm_to_vmem [thread:$0]  (%p7137_p12), %s7282_s29, 256, %s7285_s18, %s8361_s26, %s6823_s23, %s6823_s23, %s6824_s24  }
  0xea   : > { %s7311_s2 = scalar_lea.hbm %s8432_s12, %s7191_s0  ;;  %s1155_s21 = scalar_lea.vmem [#allocation17], %s7188_s4 }
  0xeb   : > { %s1162_s20 = sshll.u32 %s1155_s21, 4  ;;  %s8362_s14 = scalar_lea.sflag [#allocation18], %s7182_s5  ;;  %s7314_s20 = int_to_ptr.vmem [resolvable:$true] %s1162_s20 }
  0xec   : > { %s6246_s7 = scalar_lea.hbm %s7311_s2, 256  ;;  %s6250_s16 = scalar_lea.hbm %s8432_s12, 512 }
  0xed   : > { %p6247_p9 = scmp.ne.s32.totalorder %s7311_s2, %s6246_s7  ;;  %p6251_p1 = scmp.lt.s32.totalorder %s7311_s2, %s8432_s12 }
  0xee   : > { %p6252_p4 = scmp.lt.s32.totalorder %s6250_s16, %s6246_s7 }
  0xef   : > { %p6248_p6 = pnand %p6247_p9, %p7137_p12 }
  0xf0   : > { %p6253_p0 = por %p6252_p4, %p6251_p1 }
  0xf1   : > { %p6249_p10 = pneg %p6248_p6 }
  0xf3   : > { %p6254_p7 = pnand %p6253_p0, %p6249_p10 }
  0xf5   : > { %6257 = shalt.err (!%p6254_p7)
}
  0xf6   : > { %s6258_s29 = scalar_lea.vmem %s7314_s20, 256  ;;  %s6828_s18 = smov [#allocation17]  }
  0xf7   : > { %p6259_p13 = scmp.ne.s32.totalorder %s7314_s20, %s6258_s29  ;;  %s6262_s21 = sshll.u32 %s6828_s18, 4  ;;  %s6263_s21 = int_to_ptr.vmem [resolvable:$false] %s6262_s21 }
  0xf8   : > { %s6264_s26 = scalar_lea.vmem %s6263_s21, 512  ;;  %p6265_p11 = scmp.lt.s32.totalorder %s7314_s20, %s6263_s21 }
  0xf9   : > { %p6260_p8 = pnand %p6259_p13, %p7137_p12  ;;  %p6266_p5 = scmp.lt.s32.totalorder %s6264_s26, %s6258_s29 }
  0xfb   : > { %p6261_p2 = pneg %p6260_p8  ;;  %p6267_p9 = por %p6266_p5, %p6265_p11 }
  0xfd   : > { %p6268_p6 = pnand %p6267_p9, %p6261_p2 }
  0xff   : > { %6271 = shalt.err (!%p6268_p6)
}
 0x100   : > { %5887 = dma.hbm_to_vmem [thread:$0]  (%p7137_p12), %s7311_s2, 256, %s7314_s20, %s8362_s14, %s6823_s23, %s6823_s23, %s6824_s24  }
 0x101   : > { %s7340_s26 = scalar_lea.hbm %s8429_s27, %s7191_s0  ;;  %s1193_s7 = scalar_lea.vmem [#allocation20], %s7188_s4 }
 0x102   : > { %s1200_s16 = sshll.u32 %s1193_s7, 4  ;;  %s8364_s29 = scalar_lea.sflag [#allocation21], %s7182_s5  ;;  %s7343_s16 = int_to_ptr.vmem [resolvable:$true] %s1200_s16 }
 0x103   : > { %s6272_s18 = scalar_lea.hbm %s7340_s26, 256  ;;  %s6276_s21 = scalar_lea.hbm %s8429_s27, 512 }
 0x104   : > { %p6273_p10 = scmp.ne.s32.totalorder %s7340_s26, %s6272_s18  ;;  %p6277_p0 = scmp.lt.s32.totalorder %s7340_s26, %s8429_s27 }
 0x105   : > { %p6278_p7 = scmp.lt.s32.totalorder %s6276_s21, %s6272_s18 }
 0x106   : > { %p6274_p1 = pnand %p6273_p10, %p7137_p12 }
 0x107   : > { %p6279_p13 = por %p6278_p7, %p6277_p0 }
 0x108   : > { %p6275_p4 = pneg %p6274_p1 }
 0x10a   : > { %p6280_p8 = pnand %p6279_p13, %p6275_p4 }
 0x10c   : > { %6283 = shalt.err (!%p6280_p8)
}
 0x10d   : > { %s6284_s2 = scalar_lea.vmem %s7343_s16, 256  ;;  %s6829_s20 = smov [#allocation20]  }
 0x10e   : > { %p6285_p2 = scmp.ne.s32.totalorder %s7343_s16, %s6284_s2  ;;  %s6288_s7 = sshll.u32 %s6829_s20, 4  ;;  %s6289_s7 = int_to_ptr.vmem [resolvable:$false] %s6288_s7 }
 0x10f   : > { %s6290_s14 = scalar_lea.vmem %s6289_s7, 512  ;;  %p6291_p9 = scmp.lt.s32.totalorder %s7343_s16, %s6289_s7 }
 0x110   : > { %p6286_p11 = pnand %p6285_p2, %p7137_p12  ;;  %p6292_p6 = scmp.lt.s32.totalorder %s6290_s14, %s6284_s2 }
 0x112   : > { %p6287_p5 = pneg %p6286_p11  ;;  %p6293_p10 = por %p6292_p6, %p6291_p9 }
 0x114   : > { %p6294_p1 = pnand %p6293_p10, %p6287_p5 }
 0x116   : > { %6297 = shalt.err (!%p6294_p1)
}
 0x117   : > { %5889 = dma.hbm_to_vmem [thread:$0]  (%p7137_p12), %s7340_s26, 256, %s7343_s16, %s8364_s29, %s6823_s23, %s6823_s23, %s6824_s24  }
 0x118   : > { %s7369_s14 = scalar_lea.hbm %s8430_s25, %s7191_s0  ;;  %s1231_s18 = scalar_lea.vmem [#allocation23], %s7188_s4 }
 0x119   : > { %s1238_s21 = sshll.u32 %s1231_s18, 4  ;;  %s945_s2 = sand.u32 1, %s6770_s1   ;;  %s7372_s21 = int_to_ptr.vmem [resolvable:$true] %s1238_s21 }
 0x11a   : > { %s8367_s20 = scalar_lea.sflag [#allocation24], %s7182_s5  ;;  %s6298_s7 = scalar_lea.hbm %s7369_s14, 256 }
 0x11b   : > { %p6299_p4 = scmp.ne.s32.totalorder %s7369_s14, %s6298_s7  ;;  %s6302_s8 = scalar_lea.hbm %s8430_s25, 512 }
 0x11c   : > { %p6303_p13 = scmp.lt.s32.totalorder %s7369_s14, %s8430_s25  ;;  %p6304_p8 = scmp.lt.s32.totalorder %s6302_s8, %s6298_s7 }
 0x11d   : > { %p6300_p0 = pnand %p6299_p4, %p7137_p12 }
 0x11e   : > { %p6305_p2 = por %p6304_p8, %p6303_p13 }
 0x11f   : > { %p6301_p7 = pneg %p6300_p0 }
 0x121   : > { %p6306_p11 = pnand %p6305_p2, %p6301_p7 }
 0x123   : > { %6309 = shalt.err (!%p6306_p11)
}
 0x124   : > { %s6310_s4 = scalar_lea.vmem %s7372_s21, 256  ;;  %s6830_s0 = smov [#allocation23]  }
 0x125   : > { %p6311_p5 = scmp.ne.s32.totalorder %s7372_s21, %s6310_s4  ;;  %s6314_s26 = sshll.u32 %s6830_s0, 4  ;;  %s6315_s26 = int_to_ptr.vmem [resolvable:$false] %s6314_s26 }
 0x126   : > { %s6316_s16 = scalar_lea.vmem %s6315_s26, 512  ;;  %p6317_p10 = scmp.lt.s32.totalorder %s7372_s21, %s6315_s26 }
 0x127   : > { %p6312_p9 = pnand %p6311_p5, %p7137_p12  ;;  %p6318_p1 = scmp.lt.s32.totalorder %s6316_s16, %s6310_s4 }
 0x129   : > { %p6313_p6 = pneg %p6312_p9  ;;  %p6319_p4 = por %p6318_p1, %p6317_p10 }
 0x12b   : > { %p6320_p0 = pnand %p6319_p4, %p6313_p6 }
 0x12d   : > { %6323 = shalt.err (!%p6320_p0)
}
 0x12e   : > { %s8468_s8 = sld [smem:[#allocation43_spill]]  ;;  %s5475_s7 = sshll.u32 %s945_s2, 3 }
 0x12f   : > { %5891 = dma.hbm_to_vmem [thread:$0]  (%p7137_p12), %s7369_s14, 256, %s7372_s21, %s8367_s20, %s6823_s23, %s6823_s23, %s6824_s24  }
 0x130   : > { %s5476_s4 = sshll.u32 %s6786_s11, 7  ;;  %s949_s26 = scalar_lea.vmem [#allocation2], %s5475_s7 }
 0x131   : > { %s956_s16 = sshll.u32 %s949_s26, 4  ;;  %s946_s29 = scalar_lea.sflag [#allocation3], %s945_s2  ;;  %s957_s16 = int_to_ptr.vmem [resolvable:$true] %s956_s16 }
 0x134   : > { %s7401_s0 = scalar_lea.hbm %s8468_s8, %s5476_s4  ;;  %s6328_s19 = scalar_lea.hbm %s8468_s8, 256 }
 0x135   : > { %s6324_s12 = scalar_lea.hbm %s7401_s0, 128  ;;  %p6329_p2 = scmp.lt.s32.totalorder %s7401_s0, %s8468_s8 }
 0x136   : > { %p6325_p7 = scmp.ne.s32.totalorder %s7401_s0, %s6324_s12  ;;  %p6330_p11 = scmp.lt.s32.totalorder %s6328_s19, %s6324_s12 }
 0x138   : > { %p6326_p13 = pnand %p6325_p7, %p7102_p3  ;;  %p6331_p5 = por %p6330_p11, %p6329_p2 }
 0x13a   : > { %p6327_p8 = pneg %p6326_p13 }
 0x13c   : > { %p6332_p9 = pnand %p6331_p5, %p6327_p8 }
 0x13e   : > { %6335 = shalt.err (!%p6332_p9)
}
 0x13f   : > { %s6336_s23 = scalar_lea.vmem %s957_s16, 128  ;;  %s6831_s24 = smov [#allocation2]  }
 0x140   : > { %p6337_p6 = scmp.ne.s32.totalorder %s957_s16, %s6336_s23  ;;  %s6340_s14 = sshll.u32 %s6831_s24, 4  ;;  %s6341_s14 = int_to_ptr.vmem [resolvable:$false] %s6340_s14 }
 0x141   : > { %s6342_s21 = scalar_lea.vmem %s6341_s14, 256  ;;  %p6343_p4 = scmp.lt.s32.totalorder %s957_s16, %s6341_s14 }
 0x142   : > { %p6338_p10 = pnand %p6337_p6, %p7102_p3  ;;  %p6344_p0 = scmp.lt.s32.totalorder %s6342_s21, %s6336_s23 }
 0x144   : > { %p6339_p1 = pneg %p6338_p10  ;;  %p6345_p7 = por %p6344_p0, %p6343_p4 }
 0x146   : > { %p6346_p13 = pnand %p6345_p7, %p6339_p1 }
 0x148   : > { %6349 = shalt.err (!%p6346_p13)
}
 0x149   : > { %s8470_s19 = sld [smem:[#allocation50_spill]]  ;;  %s7418_s12 = sshll.u32 %s6782_s10, 4 }
 0x14a   : > { %5878 = dma.hbm_to_vmem [thread:$0]  (%p7102_p3), %s7401_s0, 128, %s957_s16, %s946_s29  }
 0x14b   : > { %s1023_s2 = scalar_lea.vmem [#allocation7], %s7185_s17 }
 0x14c   : > { %s1030_s7 = sshll.u32 %s1023_s2, 4  ;;  %s1031_s7 = int_to_ptr.vmem [resolvable:$true] %s1030_s7 }
 0x14f   : > { %s1028_s4 = scalar_lea.hbm %s8470_s19, %s7418_s12  ;;  %s6354_s18 = scalar_lea.hbm %s8470_s19, 32 }
 0x150   : > { %s6350_s26 = scalar_lea.hbm %s1028_s4, 16  ;;  %p6355_p5 = scmp.lt.s32.totalorder %s1028_s4, %s8470_s19 }
 0x151   : > { %p6351_p8 = scmp.ne.s32.totalorder %s1028_s4, %s6350_s26  ;;  %p6356_p9 = scmp.lt.s32.totalorder %s6354_s18, %s6350_s26 }
 0x153   : > { %p6352_p2 = pnand %p6351_p8, %p7137_p12  ;;  %p6357_p6 = por %p6356_p9, %p6355_p5 }
 0x155   : > { %p6353_p11 = pneg %p6352_p2 }
 0x157   : > { %p6358_p10 = pnand %p6357_p6, %p6353_p11 }
 0x159   : > { %6361 = shalt.err (!%p6358_p10)
}
 0x15a   : > { %s6362_s23 = scalar_lea.vmem %s1031_s7, 16  ;;  %s6832_s29 = smov [#allocation7]  }
 0x15b   : > { %p6363_p3 = scmp.ne.s32.totalorder %s1031_s7, %s6362_s23  ;;  %s6366_s0 = sshll.u32 %s6832_s29, 4  ;;  %s6367_s0 = int_to_ptr.vmem [resolvable:$false] %s6366_s0 }
 0x15c   : > { %s6368_s16 = scalar_lea.vmem %s6367_s0, 32  ;;  %p6369_p0 = scmp.lt.s32.totalorder %s1031_s7, %s6367_s0 }
 0x15d   : > { %p6364_p1 = pnand %p6363_p3, %p7137_p12  ;;  %p6370_p7 = scmp.lt.s32.totalorder %s6368_s16, %s6362_s23 }
 0x15f   : > { %p6365_p4 = pneg %p6364_p1  ;;  %p6371_p13 = por %p6370_p7, %p6369_p0 }
 0x161   : > { %p6372_p8 = pnand %p6371_p13, %p6365_p4 }
 0x163   : > { %6375 = shalt.err (!%p6372_p8)
}
 0x164   : > { %s8471_s24 = scalar_lea.sflag [#allocation6], %s7182_s5  ;;  %s8472_s14 = sld [smem:[#allocation52_spill]] }
 0x165   : > { %s8473_s21 = sld [smem:[#allocation54_spill]]  ;;  %s1061_s26 = scalar_lea.vmem [#allocation10], %s7185_s17 }
 0x166   : > { %5880 = dma.hbm_to_vmem [thread:$0]  (%p7137_p12), %s1028_s4, 16, %s1031_s7, %s8471_s24  }
 0x167   : > { %s1068_s18 = sshll.u32 %s1061_s26, 4  ;;  %s1069_s18 = int_to_ptr.vmem [resolvable:$true] %s1068_s18 }
 0x16a   : > { %s7435_s2 = scalar_lea.hbm %s8472_s14, %s7418_s12  ;;  %s6380_s0 = scalar_lea.hbm %s8472_s14, 32 }
 0x16b   : > { %s7440_s23 = scalar_lea.hbm %s8473_s21, %s7418_s12  ;;  %s6376_s29 = scalar_lea.hbm %s7435_s2, 16 }
 0x16c   : > { %p6377_p2 = scmp.ne.s32.totalorder %s7435_s2, %s6376_s29  ;;  %p6381_p9 = scmp.lt.s32.totalorder %s7435_s2, %s8472_s14 }
 0x16d   : > { %p6382_p6 = scmp.lt.s32.totalorder %s6380_s0, %s6376_s29 }
 0x16e   : > { %p6378_p11 = pnand %p6377_p2, %p7137_p12 }
 0x16f   : > { %p6383_p10 = por %p6382_p6, %p6381_p9 }
 0x170   : > { %p6379_p5 = pneg %p6378_p11 }
 0x172   : > { %p6384_p3 = pnand %p6383_p10, %p6379_p5 }
 0x174   : > { %6387 = shalt.err (!%p6384_p3)
}
 0x175   : > { %s6388_s7 = scalar_lea.vmem %s1069_s18, 16  ;;  %s6833_s4 = smov [#allocation10]  }
 0x176   : > { %p6389_p1 = scmp.ne.s32.totalorder %s1069_s18, %s6388_s7  ;;  %s6392_s16 = sshll.u32 %s6833_s4, 4  ;;  %s6393_s16 = int_to_ptr.vmem [resolvable:$false] %s6392_s16 }
 0x177   : > { %s6394_s24 = scalar_lea.vmem %s6393_s16, 32  ;;  %p6395_p7 = scmp.lt.s32.totalorder %s1069_s18, %s6393_s16 }
 0x178   : > { %p6390_p4 = pnand %p6389_p1, %p7137_p12  ;;  %p6396_p13 = scmp.lt.s32.totalorder %s6394_s24, %s6388_s7 }
 0x17a   : > { %p6391_p0 = pneg %p6390_p4  ;;  %p6397_p8 = por %p6396_p13, %p6395_p7 }
 0x17c   : > { %p6398_p2 = pnand %p6397_p8, %p6391_p0 }
 0x17e   : > { %6401 = shalt.err (!%p6398_p2)
}
 0x17f   : > { %s8474_s26 = scalar_lea.sflag [#allocation9], %s7182_s5  ;;  %s8475_s29 = sld [smem:[#allocation56_spill]] }
 0x180   : > { %5882 = dma.hbm_to_vmem [thread:$0]  (%p7137_p12), %s7435_s2, 16, %s1069_s18, %s8474_s26  }
 0x181   : > { %s1099_s0 = scalar_lea.vmem [#allocation13], %s7185_s17  ;;  %s6402_s16 = scalar_lea.hbm %s7440_s23, 16 }
 0x182   : > { %s1106_s7 = sshll.u32 %s1099_s0, 4  ;;  %p6403_p11 = scmp.ne.s32.totalorder %s7440_s23, %s6402_s16  ;;  %s1107_s7 = int_to_ptr.vmem [resolvable:$true] %s1106_s7 }
 0x183   : > { %s6406_s24 = scalar_lea.hbm %s8473_s21, 32  ;;  %p6407_p6 = scmp.lt.s32.totalorder %s7440_s23, %s8473_s21 }
 0x184   : > { %p6404_p5 = pnand %p6403_p11, %p7137_p12  ;;  %p6408_p10 = scmp.lt.s32.totalorder %s6406_s24, %s6402_s16 }
 0x185   : > { %s7459_s4 = scalar_lea.hbm %s8475_s29, %s7418_s12 }
 0x186   : > { %p6405_p9 = pneg %p6404_p5  ;;  %p6409_p3 = por %p6408_p10, %p6407_p6 }
 0x188   : > { %p6410_p1 = pnand %p6409_p3, %p6405_p9 }
 0x18a   : > { %6413 = shalt.err (!%p6410_p1)
}
 0x18b   : > { %s6414_s20 = scalar_lea.vmem %s1107_s7, 16  ;;  %s6834_s2 = smov [#allocation13]  }
 0x18c   : > { %p6415_p4 = scmp.ne.s32.totalorder %s1107_s7, %s6414_s20  ;;  %s6418_s18 = sshll.u32 %s6834_s2, 4  ;;  %s6419_s18 = int_to_ptr.vmem [resolvable:$false] %s6418_s18 }
 0x18d   : > { %s6420_s26 = scalar_lea.vmem %s6419_s18, 32  ;;  %p6421_p13 = scmp.lt.s32.totalorder %s1107_s7, %s6419_s18 }
 0x18e   : > { %p6416_p0 = pnand %p6415_p4, %p7137_p12  ;;  %p6422_p8 = scmp.lt.s32.totalorder %s6420_s26, %s6414_s20 }
 0x190   : > { %p6417_p7 = pneg %p6416_p0  ;;  %p6423_p2 = por %p6422_p8, %p6421_p13 }
 0x192   : > { %p6424_p11 = pnand %p6423_p2, %p6417_p7 }
 0x194   : > { %6427 = shalt.err (!%p6424_p11)
}
 0x195   : > { %s8476_s0 = scalar_lea.sflag [#allocation12], %s7182_s5  ;;  %s8477_s16 = sld [smem:[#allocation58_spill]] }
 0x196   : > { %5884 = dma.hbm_to_vmem [thread:$0]  (%p7137_p12), %s7440_s23, 16, %s1107_s7, %s8476_s0  }
 0x197   : > { %s1137_s2 = scalar_lea.vmem [#allocation16], %s7185_s17  ;;  %s6428_s26 = scalar_lea.hbm %s7459_s4, 16 }
 0x198   : > { %s1144_s20 = sshll.u32 %s1137_s2, 4  ;;  %p6429_p5 = scmp.ne.s32.totalorder %s7459_s4, %s6428_s26  ;;  %s1145_s20 = int_to_ptr.vmem [resolvable:$true] %s1144_s20 }
 0x199   : > { %s6432_s8 = scalar_lea.hbm %s8475_s29, 32  ;;  %p6433_p10 = scmp.lt.s32.totalorder %s7459_s4, %s8475_s29 }
 0x19a   : > { %p6430_p9 = pnand %p6429_p5, %p7137_p12  ;;  %p6434_p3 = scmp.lt.s32.totalorder %s6432_s8, %s6428_s26 }
 0x19b   : > { %s8478_s24 = smov %s8477_s16  ;;  %s7478_s18 = scalar_lea.hbm %s8477_s16, %s7418_s12 }
 0x19c   : > { %p6431_p6 = pneg %p6430_p9  ;;  %p6435_p1 = por %p6434_p3, %p6433_p10 }
 0x19e   : > { %p6436_p4 = pnand %p6435_p1, %p6431_p6 }
 0x1a0   : > { %6439 = shalt.err (!%p6436_p4)
}
 0x1a1   : > { %s6440_s14 = scalar_lea.vmem %s1145_s20, 16  ;;  %s6835_s23 = smov [#allocation16]  }
 0x1a2   : > { %p6441_p0 = scmp.ne.s32.totalorder %s1145_s20, %s6440_s14  ;;  %s6444_s7 = sshll.u32 %s6835_s23, 4  ;;  %s6445_s7 = int_to_ptr.vmem [resolvable:$false] %s6444_s7 }
 0x1a3   : > { %s6446_s0 = scalar_lea.vmem %s6445_s7, 32  ;;  %p6447_p8 = scmp.lt.s32.totalorder %s1145_s20, %s6445_s7 }
 0x1a4   : > { %p6442_p7 = pnand %p6441_p0, %p7137_p12  ;;  %p6448_p2 = scmp.lt.s32.totalorder %s6446_s0, %s6440_s14 }
 0x1a6   : > { %p6443_p13 = pneg %p6442_p7  ;;  %p6449_p11 = por %p6448_p2, %p6447_p8 }
 0x1a8   : > { %p6450_p5 = pnand %p6449_p11, %p6443_p13 }
 0x1aa   : > { %6453 = shalt.err (!%p6450_p5)
}
 0x1ab   : > { %s8479_s8 = scalar_lea.sflag [#allocation15], %s7182_s5  ;;  %s8480_s16 = sld [smem:[#allocation60_spill]] }
 0x1ac   : > { %5886 = dma.hbm_to_vmem [thread:$0]  (%p7137_p12), %s7459_s4, 16, %s1145_s20, %s8479_s8  }
 0x1ad   : > { %s1175_s2 = scalar_lea.vmem [#allocation19], %s7185_s17  ;;  %s6454_s23 = scalar_lea.hbm %s7478_s18, 16 }
 0x1ae   : > { %s1182_s14 = sshll.u32 %s1175_s2, 4  ;;  %p6455_p9 = scmp.ne.s32.totalorder %s7478_s18, %s6454_s23  ;;  %s1183_s14 = int_to_ptr.vmem [resolvable:$true] %s1182_s14 }
 0x1af   : > { %s6458_s7 = scalar_lea.hbm %s8478_s24, 32  ;;  %p6459_p3 = scmp.lt.s32.totalorder %s7478_s18, %s8478_s24 }
 0x1b0   : > { %p6456_p6 = pnand %p6455_p9, %p7137_p12  ;;  %p6460_p1 = scmp.lt.s32.totalorder %s6458_s7, %s6454_s23 }
 0x1b1   : > { %s8481_s19 = smov %s8480_s16  ;;  %s7497_s26 = scalar_lea.hbm %s8480_s16, %s7418_s12 }
 0x1b2   : > { %p6457_p10 = pneg %p6456_p6  ;;  %p6461_p4 = por %p6460_p1, %p6459_p3 }
 0x1b4   : > { %p6462_p0 = pnand %p6461_p4, %p6457_p10 }
 0x1b6   : > { %6465 = shalt.err (!%p6462_p0)
}
 0x1b7   : > { %s6466_s0 = scalar_lea.vmem %s1183_s14, 16  ;;  %s6836_s4 = smov [#allocation19]  }
 0x1b8   : > { %p6467_p7 = scmp.ne.s32.totalorder %s1183_s14, %s6466_s0  ;;  %s6470_s20 = sshll.u32 %s6836_s4, 4  ;;  %s6471_s20 = int_to_ptr.vmem [resolvable:$false] %s6470_s20 }
 0x1b9   : > { %s6472_s8 = scalar_lea.vmem %s6471_s20, 32  ;;  %p6473_p2 = scmp.lt.s32.totalorder %s1183_s14, %s6471_s20 }
 0x1ba   : > { %p6468_p13 = pnand %p6467_p7, %p7137_p12  ;;  %p6474_p11 = scmp.lt.s32.totalorder %s6472_s8, %s6466_s0 }
 0x1bc   : > { %p6469_p8 = pneg %p6468_p13  ;;  %p6475_p5 = por %p6474_p11, %p6473_p2 }
 0x1be   : > { %p6476_p9 = pnand %p6475_p5, %p6469_p8 }
 0x1c0   : > { %6479 = shalt.err (!%p6476_p9)
}
 0x1c1   : > { %s8482_s16 = scalar_lea.sflag [#allocation18], %s7182_s5  ;;  %s8483_s2 = sld [smem:[#allocation62_spill]] }
 0x1c2   : > { %5888 = dma.hbm_to_vmem [thread:$0]  (%p7137_p12), %s7478_s18, 16, %s1183_s14, %s8482_s16  }
 0x1c3   : > { %s1213_s23 = scalar_lea.vmem [#allocation22], %s7185_s17  ;;  %s6480_s4 = scalar_lea.hbm %s7497_s26, 16 }
 0x1c4   : > { %s1220_s7 = sshll.u32 %s1213_s23, 4  ;;  %p6481_p6 = scmp.ne.s32.totalorder %s7497_s26, %s6480_s4  ;;  %s1221_s7 = int_to_ptr.vmem [resolvable:$true] %s1220_s7 }
 0x1c5   : > { %s6484_s20 = scalar_lea.hbm %s8481_s19, 32  ;;  %p6485_p1 = scmp.lt.s32.totalorder %s7497_s26, %s8481_s19 }
 0x1c6   : > { %p6482_p10 = pnand %p6481_p6, %p7137_p12  ;;  %p6486_p4 = scmp.lt.s32.totalorder %s6484_s20, %s6480_s4 }
 0x1c7   : > { %s8484_s21 = smov %s8483_s2  ;;  %s7516_s0 = scalar_lea.hbm %s8483_s2, %s7418_s12 }
 0x1c8   : > { %p6483_p3 = pneg %p6482_p10  ;;  %p6487_p0 = por %p6486_p4, %p6485_p1 }
 0x1ca   : > { %p6488_p7 = pnand %p6487_p0, %p6483_p3 }
 0x1cc   : > { %6491 = shalt.err (!%p6488_p7)
}
 0x1cd   : > { %s6492_s8 = scalar_lea.vmem %s1221_s7, 16  ;;  %s6837_s18 = smov [#allocation22]  }
 0x1ce   : > { %p6493_p13 = scmp.ne.s32.totalorder %s1221_s7, %s6492_s8  ;;  %s6496_s14 = sshll.u32 %s6837_s18, 4  ;;  %s6497_s14 = int_to_ptr.vmem [resolvable:$false] %s6496_s14 }
 0x1cf   : > { %s6498_s16 = scalar_lea.vmem %s6497_s14, 32  ;;  %p6499_p11 = scmp.lt.s32.totalorder %s1221_s7, %s6497_s14 }
 0x1d0   : > { %p6494_p8 = pnand %p6493_p13, %p7137_p12  ;;  %p6500_p5 = scmp.lt.s32.totalorder %s6498_s16, %s6492_s8 }
 0x1d2   : > { %p6495_p2 = pneg %p6494_p8  ;;  %p6501_p9 = por %p6500_p5, %p6499_p11 }
 0x1d4   : > { %p6502_p6 = pnand %p6501_p9, %p6495_p2 }
 0x1d6   : > { %6505 = shalt.err (!%p6502_p6)
}
 0x1d7   : > { %s8485_s2 = scalar_lea.sflag [#allocation21], %s7182_s5  ;;  %s1251_s23 = scalar_lea.vmem [#allocation25], %s7185_s17 }
 0x1d8   : > { %5890 = dma.hbm_to_vmem [thread:$0]  (%p7137_p12), %s7497_s26, 16, %s1221_s7, %s8485_s2  }
 0x1d9   : > { %s1258_s4 = sshll.u32 %s1251_s23, 4  ;;  %s6506_s20 = scalar_lea.hbm %s7516_s0, 16  ;;  %s1259_s4 = int_to_ptr.vmem [resolvable:$true] %s1258_s4 }
 0x1da   : > { %p6507_p10 = scmp.ne.s32.totalorder %s7516_s0, %s6506_s20  ;;  %s6510_s8 = scalar_lea.hbm %s8484_s21, 32 }
 0x1db   : > { %p6511_p4 = scmp.lt.s32.totalorder %s7516_s0, %s8484_s21  ;;  %p6512_p0 = scmp.lt.s32.totalorder %s6510_s8, %s6506_s20 }
 0x1dc   : > { %p6508_p3 = pnand %p6507_p10, %p7137_p12 }
 0x1dd   : > { %p6513_p7 = por %p6512_p0, %p6511_p4 }
 0x1de   : > { %p6509_p1 = pneg %p6508_p3 }
 0x1e0   : > { %p6514_p13 = pnand %p6513_p7, %p6509_p1 }
 0x1e2   : > { %6517 = shalt.err (!%p6514_p13)
}
 0x1e3   : > { %s6518_s18 = scalar_lea.vmem %s1259_s4, 16  ;;  %s6838_s26 = smov [#allocation25]  }
 0x1e4   : > { %p6519_p8 = scmp.ne.s32.totalorder %s1259_s4, %s6518_s18  ;;  %s6522_s7 = sshll.u32 %s6838_s26, 4  ;;  %s6523_s7 = int_to_ptr.vmem [resolvable:$false] %s6522_s7 }
 0x1e5   : > { %s6524_s14 = scalar_lea.vmem %s6523_s7, 32  ;;  %p6525_p5 = scmp.lt.s32.totalorder %s1259_s4, %s6523_s7 }
 0x1e6   : > { %p6520_p2 = pnand %p6519_p8, %p7137_p12  ;;  %p6526_p9 = scmp.lt.s32.totalorder %s6524_s14, %s6518_s18 }
 0x1e8   : > { %p6521_p11 = pneg %p6520_p2  ;;  %p6527_p6 = por %p6526_p9, %p6525_p5 }
 0x1ea   : > { %p6528_p10 = pnand %p6527_p6, %p6521_p11 }
 0x1ec   : > { %6531 = shalt.err (!%p6528_p10)
}
 0x1ed   : > { %s8486_s16 = scalar_lea.sflag [#allocation24], %s7182_s5  ;;  %s8487_s2 = sld [smem:[#allocation67_spill]] }
 0x1ee   : > { %5892 = dma.hbm_to_vmem [thread:$0]  (%p7137_p12), %s7516_s0, 16, %s1259_s4, %s8486_s16  }
 0x1ef   : > { %s1294_s8 = scalar_lea.vmem [#allocation26], %s7185_s17  ;;  %s1292_s26 = scalar_lea.sflag [#allocation27], %s7185_s17 }
 0x1f0   : > { %s1301_s18 = sshll.u32 %s1294_s8, 4  ;;  %s1302_s18 = int_to_ptr.vmem [resolvable:$true] %s1301_s18 }
 0x1f3   : > { %s8488_s20 = smov %s8487_s2  ;;  %s7549_s23 = scalar_lea.hbm %s8487_s2, %s7418_s12 }
 0x1f4   : > { %s6532_s7 = scalar_lea.hbm %s7549_s23, 16  ;;  %s6536_s5 = scalar_lea.hbm %s8488_s20, 32 }
 0x1f5   : > { %p6533_p3 = scmp.ne.s32.totalorder %s7549_s23, %s6532_s7  ;;  %p6537_p0 = scmp.lt.s32.totalorder %s7549_s23, %s8488_s20 }
 0x1f6   : > { %p6538_p7 = scmp.lt.s32.totalorder %s6536_s5, %s6532_s7 }
 0x1f7   : > { %p6534_p1 = pnand %p6533_p3, %p7137_p12 }
 0x1f8   : > { %p6539_p13 = por %p6538_p7, %p6537_p0 }
 0x1f9   : > { %p6535_p4 = pneg %p6534_p1 }
 0x1fb   : > { %p6540_p8 = pnand %p6539_p13, %p6535_p4 }
 0x1fd   : > { %6543 = shalt.err (!%p6540_p8)
}
 0x1fe   : > { %s6544_s12 = scalar_lea.vmem %s1302_s18, 16  ;;  %s6839_s0 = smov [#allocation26]  }
 0x1ff   : > { %p6545_p2 = scmp.ne.s32.totalorder %s1302_s18, %s6544_s12  ;;  %s6548_s4 = sshll.u32 %s6839_s0, 4  ;;  %s6549_s4 = int_to_ptr.vmem [resolvable:$false] %s6548_s4 }
 0x200   : > { %s6550_s17 = scalar_lea.vmem %s6549_s4, 32  ;;  %p6551_p9 = scmp.lt.s32.totalorder %s1302_s18, %s6549_s4 }
 0x201   : > { %p6546_p11 = pnand %p6545_p2, %p7137_p12  ;;  %p6552_p6 = scmp.lt.s32.totalorder %s6550_s17, %s6544_s12 }
 0x203   : > { %p6547_p5 = pneg %p6546_p11  ;;  %p6553_p10 = por %p6552_p6, %p6551_p9 }
 0x205   : > { %p6554_p3 = pnand %p6553_p10, %p6547_p5 }
 0x207   : > { %6557 = shalt.err (!%p6554_p3)
}
 0x208   : > { %5893 = dma.hbm_to_vmem [thread:$0]  (%p7137_p12), %s7549_s23, 16, %s1302_s18, %s1292_s26  }
 0x209 PF: > { %p5506_p1 = scmp.ge.s32.totalorder %s6790_s13, 1  ;;  %p1324_p4 = scmp.lt.s32.totalorder %s6790_s13, 5 }
 0x20b   : > { %p1325_p0 = pnand %p5506_p1, %p1324_p4 }
 0x20d   : > { %1328 = sbr.rel (%p1325_p0) target bundleno = 4803 (0x12c3), region = 132 }
 0x212   : > { %s8489_s14 = sld [smem:[#allocation89_spill]]  ;;  %s7568_s16 = sand.u32 1, %s6766_s28  }
 0x213   : > { %s8372_s2 = sshll.u32 %s7568_s16, 3  ;;  %s1331_s8 = scalar_lea.sflag [#allocation3], %s7568_s16 }
 0x214   : > { %s7574_s3 = scalar_lea.vmem [#allocation2], %s8372_s2 }
 0x215   : > { %8490 = sst [smem:[#allocation97_spill]] %s7574_s3 }
 0x218   : > { %p8491_p12 = scmp.ne.s32.totalorder %s8489_s14, 0 }
 0x21a   : > { %6693 = dma.done.wait (%p8491_p12), %s1331_s8, 128  }
 0x21b   : > { %6695 = vsyncadd (%p8491_p12), %s1331_s8, 4294967168  ;;  %s7581_s23 = sand.u32 1, %s7085_s9   ;;  %s7584_s18 = sand.u32 1, %s6754_s22  }
 0x21c   : > { %8492 = sst [smem:[#allocation98_spill]] %s7581_s23  ;;  %s7587_s26 = sshll.u32 %s7584_s18, 4 }
 0x21d   : > { %8493 = sst [smem:[#allocation99_spill]] %s7584_s18  ;;  %s1340_s7 = scalar_lea.sflag [#allocation6], %s7581_s23 }
 0x21e   : > { %8494 = sst [smem:[#allocation100_spill]] %s7587_s26  ;;  %p8495_p7 = scmp.ne.s32.totalorder %s8456_s6, 0 }
 0x220   : > { %6697 = dma.done.wait (%p8495_p7), %s1340_s7, 272  }
 0x221   : > { %6699 = vsyncadd (%p8495_p7), %s1340_s7, 4294967024  ;;  %s1357_s12 = scalar_lea.sflag [#allocation9], %s7581_s23 }
 0x222   : > { %6701 = dma.done.wait (%p8495_p7), %s1357_s12, 272  }
 0x223   : > { %6703 = vsyncadd (%p8495_p7), %s1357_s12, 4294967024  ;;  %s1374_s17 = scalar_lea.sflag [#allocation12], %s7581_s23 }
 0x224   : > { %6705 = dma.done.wait (%p8495_p7), %s1374_s17, 272  }
 0x225   : > { %6707 = vsyncadd (%p8495_p7), %s1374_s17, 4294967024  ;;  %s1391_s7 = scalar_lea.sflag [#allocation15], %s7581_s23 }
 0x226   : > { %6709 = dma.done.wait (%p8495_p7), %s1391_s7, 272  }
 0x227   : > { %6711 = vsyncadd (%p8495_p7), %s1391_s7, 4294967024  ;;  %s1408_s14 = scalar_lea.sflag [#allocation18], %s7581_s23 }
 0x228   : > { %6713 = dma.done.wait (%p8495_p7), %s1408_s14, 272  }
 0x229   : > { %6715 = vsyncadd (%p8495_p7), %s1408_s14, 4294967024  ;;  %s1425_s8 = scalar_lea.sflag [#allocation21], %s7581_s23 }
 0x22a   : > { %6717 = dma.done.wait (%p8495_p7), %s1425_s8, 272  }
 0x22b   : > { %6719 = vsyncadd (%p8495_p7), %s1425_s8, 4294967024  ;;  %s1442_s4 = scalar_lea.sflag [#allocation24], %s7581_s23 }
 0x22c   : > { %6721 = dma.done.wait (%p8495_p7), %s1442_s4, 272  }
 0x22d   : > { %6723 = vsyncadd (%p8495_p7), %s1442_s4, 4294967024  ;;  %s1459_s0 = scalar_lea.sflag [#allocation27], %s7584_s18 }
 0x22e   : > { %6725 = dma.done.wait (%p8495_p7), %s1459_s0, 16  }
 0x22f   : > { %6727 = vsyncadd (%p8495_p7), %s1459_s0, 4294967280  ;;  %s8496_s8 = sld [smem:[#allocation82_spill]]  ;;  %s1649_s14 = sand.u32 1, %s6742_s15  }
 0x230   : > { %s8497_s12 = sld [smem:[#allocation81_spill]]  ;;  %s5516_s17 = sshll.u32 %s1649_s14, 5 }
 0x231   : > { %s8498_s7 = sld [smem:[#allocation44_spill]]  ;;  %s8511_s18 = sshll.u32 %s7568_s16, 3 }
 0x232   : > { %s8499_s9 = sld [smem:[#allocation46_spill]]  ;;  %s7681_s26 = scalar_lea.vmem [#allocation28], %s8511_s18 }
 0x233   : > { %s8500_s4 = sld [smem:[#allocation45_spill]]  ;;  %s7683_s3 = scalar_lea.vmem [#allocation29], %s5516_s17 }
 0x234   : > { %s8501_s5 = sld [smem:[#allocation47_spill]] }
 0x235   : > { %s8502_s2 = sld [smem:[#allocation48_spill]]  ;;  %p1659_p13 = scmp.lt.s32.totalorder %s8496_s8, 1 }
 0x236   : > { %s8503_s19 = sld [smem:[#allocation63_spill]]  ;;  %p1664_p8 = scmp.lt.s32.totalorder %s8497_s12, 1 }
 0x237   : > { %s8504_s20 = sld [smem:[#allocation64_spill]]  ;;  %s8589_s8 = smov (!%p1659_p13, %s8496_s8), 1 }
 0x238   : > { %s8505_s21 = sld [smem:[#allocation65_spill]]  ;;  %s5630_s27 = sshll.u32 %s8589_s8, 4 }
 0x239   : > { %s8506_s24 = sld [smem:[#allocation66_spill]]  ;;  %s7649_s29 = scalar_lea.vmem %s8498_s7, %s5630_s27 }
 0x23a   : > { %s8507_s25 = sld [smem:[#allocation68_spill]] }
 0x23b   : > { %s8508_s6 = sld [smem:[#allocation69_spill]] }
 0x23c   : > { %s8509_s0 = sld [smem:[#allocation70_spill]] }
 0x23d   : > { %8510 = sst [smem:[#allocation101_spill]] %s7649_s29 }
 0x23e   : > { %s7652_s30 = scalar_select %p1664_p8, %s8497_s12, 1 }
 0x23f   : > { %s7685_s12 = scalar_lea.vmem [#allocation31], %s5516_s17 }
 0x240   : > { %s5631_s14 = sshll.u32 %s7652_s30, 4  ;;  %s1671_s11 = scalar_lea.vmem %s8499_s9, %s7652_s30 }
 0x241   : > { %s7658_s10 = scalar_lea.vmem %s8500_s4, %s5631_s14  ;;  %s1676_s8 = scalar_lea.vmem %s8501_s5, %s5631_s14 }
 0x242   : > { %s1679_s1 = scalar_lea.vmem %s8502_s2, %s7652_s30  ;;  %s5633_s27 = sshll.u32 %s7652_s30, 5 }
 0x243   : > { %s7665_s7 = scalar_lea.vmem %s8503_s19, %s5633_s27  ;;  %s1687_s28 = scalar_lea.vmem %s8504_s20, %s7652_s30 }
 0x244   : > { %s1690_s22 = scalar_lea.vmem %s8505_s21, %s7652_s30  ;;  %s1693_s15 = scalar_lea.vmem %s8506_s24, %s7652_s30 }
 0x245   : > { %s1696_s13 = scalar_lea.vmem %s8507_s25, %s7652_s30  ;;  %s1699_s23 = scalar_lea.vmem %s8508_s6, %s7652_s30 }
 0x246   : > { %s1702_s29 = scalar_lea.vmem %s8509_s0, %s7652_s30  ;;  %s8512_s9 = sld [smem:[#allocation81_spill]] }
 0x24c   : > { %p5526_p2 = scmp.ne.s32.totalorder %s8512_s9, 0 }
 0x24d   : > { %s8513_s2 = sld [smem:[#allocation97_spill]] (!%p5526_p2) }
 0x24e   : > { %1707 = sbr.rel (%p5526_p2) target bundleno = 597 (0x255), region = 200 }
 0x253   : > { %v1708_v0 = vld [vmem:[%s8513_s2] sm:$0xff]  ;;  %vm1709_vm0 = vcmask 261120  }
 0x254   : > { %1710 = vst.msk [vmem:[%s7681_s26] sm:$0xff] %vm1709_vm0, %v1708_v0 }
 0x255 PF: > { %v6082_v1 = vld [vmem:[%s1676_s8 + $0x8] sm:$0xff]   ;;  %v6840_v2 = vmov 0.0   ;;  %v6084_v4 = vld [vmem:[%s1676_s8] sm:$0xff]   ;;  %vm6841_vm1 = vmmov 0   ;;  %s8516_s21 = sld [smem:[#allocation100_spill]]  ;;  %vm1738_vm2 = vcmask 261120   ;;  %v1924_v25 = vlaneseq }
 0x256   : > { %5706 = vmatprep.subr.bf16.mxu1 %v6840_v2  ;;  %5698 = vmatprep.subr.bf16.mxu0 %v6840_v2  ;;  %v6083_v3 = vld [vmem:[%s7658_s10 + $0x8] sm:$0xff]   ;;  %v6085_v5 = vld [vmem:[%s7658_s10] sm:$0xff]   ;;  %s6842_s24 = smov 104   ;;  %s6843_s20 = smov 120   ;;  %v6845_v23 = vmov 1983009808  }
 0x257   : > { %5707 = vmatpush3.bf16.msra.mxu1 %v6082_v1  ;;  %5710 = vmatprep.mubr.msk.bf16.mxu1 %vm6841_vm1, %v6840_v2  ;;  %v5531_v8 = vld [vmem:[%s1679_s1] ss:$0 sm:$0xff]  ;;  %v1922_v24 = vunpack.c.l.s4 %v6845_v23  ;;  %v6846_v26 = vmov 1934713408   ;;  %v1925_v29 = vshrl.u32 %v1924_v25, 7  ;;  %vm2355_vm3 = vcmask 64512  }
 0x258   : > { %5699 = vmatpush3.bf16.msra.mxu0 %v6083_v3  ;;  %5708 = vmatprep.subr.bf16.mxu1 %v6840_v2  ;;  %v5527_v9 = vld [vmem:[%s1671_s11] ss:$0 sm:$0xff]  ;;  %s6844_s11 = smov 112   ;;  %v1954_v27 = vunpack.c.l.s4 %v6846_v26  ;;  %s8519_s18 = sld [smem:[#allocation99_spill]]  ;;  %vm2599_vm4 = vcmask 1043456   ;;  %vm2930_vm5 = vcmask 130048  }
 0x259   : > { %5700 = vmatprep.subr.bf16.mxu0 %v6840_v2  ;;  %5702 = vmatprep.mubr.msk.bf16.mxu0 %vm6841_vm1, %v6840_v2  ;;  %v1923_v28 = vunpack.c.0.s8 %v1922_v24  ;;  %s6847_s6 = smov 16   ;;  %s6848_s0 = smov 8   ;;  %vm2932_vm6 = vcmask 195584   ;;  %vm4738_vm7 = vcmask 523264  }
 0x25a   : > { %v1955_v32 = vunpack.c.0.s8 %v1954_v27  ;;  %s6849_s14 = smov 24   ;;  %s8523_s8 = sld [smem:[#allocation101_spill]] }
 0x25b   : > { %v7701_v6 = vld [vmem:[%s7681_s26] sm:$0xff]  ;;  %5709 = vmatpush3.bf16.msra.mxu1 %v6084_v4  ;;  %s8517_s10 = scalar_lea.vmem [#allocation5], %s8516_s21  ;;  %v7734_v33 = vsub.s32 %v1923_v28, %v1925_v29  ;;  %s8521_s17 = scalar_lea.vmem [#allocation8], %s8516_s21 }
 0x25c   : > { %v1714_v7 = vpack.c.bf16 %v7701_v6, %v7701_v6  ;;  %5701 = vmatpush3.bf16.msra.mxu0 %v6085_v5  ;;  %5722 = vmatprep.subr.bf16.mxu1 %v6840_v2  ;;  %v6086_v11 = vld [vmem:[%s8517_s10 + $0x8] sm:$0xff]   ;;  %s8518_s1 = smov %s8517_s10  ;;  %v7736_v40 = vsub.s32 %v1955_v32, %v1925_v29  ;;  %s8522_s4 = smov %s8521_s17 }
 0x25d   : > { %5714 = vmatprep.subr.bf16.mxu0 %v6840_v2  ;;  %v6087_v19 = vld [vmem:[%s8518_s1] sm:$0xff]   ;;  %s8525_s9 = scalar_lea.vmem [#allocation14], %s8516_s21  ;;  %s8527_s25 = scalar_lea.vmem [#allocation11], %s8516_s21 }
 0x25e   : > { %5711 = vmatmul.mubr.msk.bf16.vlgmr.msra.gmra.mxu1 %vm1738_vm2, %v1714_v7  ;;  %s8520_s5 = scalar_lea.vmem [#allocation7], %s8519_s18  ;;  %s8524_s27 = scalar_lea.vmem [#allocation10], %s8519_s18 }
 0x25f   : > { %5703 = vmatmul.mubr.msk.bf16.vlgmr.msra.gmra.mxu0 %vm1738_vm2, %v1714_v7  ;;  %5724 = vmatprep.mubr.msk.bf16.mxu1 %vm6841_vm1, %v6840_v2  ;;  %s8526_s2 = smov %s8525_s9  ;;  %s8528_s19 = smov %s8527_s25 }
 0x260   : > { %5718 = vmatprep.mubr.msk.bf16.mxu0 %vm6841_vm1, %v6840_v2  ;;  %5715 = vmatpush3.bf16.msra.mxu0 %v6086_v11  ;;  %s8529_s10 = scalar_lea.vmem [#allocation16], %s8519_s18  ;;  %s4852_s1 = sshll.u32 %s7683_s3, 4  ;;  %s8193_s1 = int_to_ptr.vmem [resolvable:$true] %s4852_s1 }
 0x261   : > { %5716 = vmatprep.subr.bf16.mxu0 %v6840_v2 }
 0x264   : > { %5717 = vmatpush3.bf16.msra.mxu0 %v6087_v19 }
 0x265   : > { %5728 = vmatprep.subr.bf16.mxu0 %v6840_v2 }
 0x267   : > { %5719 = vmatmul.mubr.msk.bf16.vlgmr.msra.gmra.mxu0 %vm1738_vm2, %v1714_v7 }
 0x268   : > { %5730 = vmatprep.mubr.msk.bf16.mxu0 %vm6841_vm1, %v6840_v2 }
 0x31e   : > { %v1840_v10 = vpop.f32.mrf.mxu1 }
 0x31f   : > { %v1841_v12 = vadd.f32 %v5531_v8, %v1840_v10  ;;  %v1776_v13 = vpop.f32.mrf.mxu0 }
 0x320   : > { %v1777_v14 = vadd.f32 %v5527_v9, %v1776_v13  ;;  %v5712_v15 = vpop.f32.mrf.mxu1 }
 0x321   : > { %2062 = vrot.lane.b32.xlu1 %v1841_v12, %s6842_s24  ;;  %2056 = vrot.lane.b32.xlu0 %v1841_v12, %s6843_s20  ;;  %v5704_v16 = vpop.f32.mrf.mxu0 }
 0x322   : > { %v1782_v17 = vmul.f32 0.35355338, %v1777_v14  ;;  %v1843_v18 = vpop.f32.mrf.mxu1 }
 0x323   : > { %v1779_v20 = vpop.f32.mrf.mxu0 }
 0x324   : > { %v5713_v21 = vpop.f32.mrf.mxu1 }
 0x325   : > { %2059 = vrot.lane.b32.xlu0 %v1841_v12, %s6844_s11  ;;  %1910 = vrot.lane.b32.xlu1 %v1782_v17, %s6843_s20  ;;  %v5705_v22 = vpop.f32.mrf.mxu0 }
 0x329   : > { %1913 = vrot.lane.b32.xlu0 %v1782_v17, %s6844_s11  ;;  %1916 = vrot.lane.b32.xlu1 %v1782_v17, %s6842_s24 }
 0x393   : > { %v2063_v30 = vpop.permute.xlu1 %2062  ;;  %v2057_v31 = vpop.permute.xlu0 %2056 }
 0x394   : > { %v2081_v34 = vcombine.low %v2057_v31, %v2063_v30  ;;  %v2082_v35 = vcombine.high %v2057_v31, %v2063_v30 }
 0x396   : > { %v2089_v41 = vrot.slane %v2081_v34, %v7734_v33  ;;  %v2096_v42 = vrot.slane %v2082_v35, %v7734_v33 }
 0x397   : > { %v2060_v36 = vpop.permute.xlu0 %2059  ;;  %v1911_v37 = vpop.permute.xlu1 %1910 }
 0x398   : > { %v2065_v38 = vcombine.low %v1841_v12, %v2060_v36  ;;  %v2066_v39 = vcombine.high %v1841_v12, %v2060_v36 }
 0x39a   : > { %v2073_v43 = vrot.slane %v2065_v38, %v7734_v33  ;;  %v2080_v44 = vrot.slane %v2066_v39, %v7734_v33 }
 0x39b   : > { %v1914_v45 = vpop.permute.xlu0 %1913  ;;  %v1917_v46 = vpop.permute.xlu1 %1916 }
 0x39c   : > { %v2097_v47 = vcombine.low %v2073_v43, %v2089_v41  ;;  %v2098_v48 = vcombine.high %v2073_v43, %v2089_v41  ;;  %v2113_v49 = vcombine.low %v2080_v44, %v2096_v42  ;;  %v2114_v50 = vcombine.high %v2080_v44, %v2096_v42 }
 0x39d   : > { %v1919_v51 = vcombine.low %v1782_v17, %v1914_v45  ;;  %v1920_v52 = vcombine.high %v1782_v17, %v1914_v45  ;;  %v1935_v53 = vcombine.low %v1911_v37, %v1917_v46  ;;  %v1936_v54 = vcombine.high %v1911_v37, %v1917_v46 }
 0x39e   : > { %v2105_v55 = vrot.slane %v2097_v47, %v7736_v40  ;;  %v2112_v56 = vrot.slane %v2098_v48, %v7736_v40  ;;  %v2121_v57 = vrot.slane %v2113_v49, %v7736_v40  ;;  %v2128_v58 = vrot.slane %v2114_v50, %v7736_v40 }
 0x39f   : > { %v1927_v59 = vrot.slane %v1919_v51, %v7734_v33  ;;  %v1934_v60 = vrot.slane %v1920_v52, %v7734_v33  ;;  %v1943_v61 = vrot.slane %v1935_v53, %v7734_v33  ;;  %v1950_v62 = vrot.slane %v1936_v54, %v7734_v33 }
 0x3a0   : > { %v2133_v63 = vcombine.low %v2105_v55, %v2112_v56  ;;  %v5541_v0 = vcombine.high %v2105_v55, %v2112_v56  ;;  %v2149_v1 = vcombine.low %v2121_v57, %v2128_v58  ;;  %v5542_v3 = vcombine.high %v2121_v57, %v2128_v58 }
 0x3a1   : > { %v1951_v4 = vcombine.low %v1927_v59, %v1943_v61  ;;  %v1952_v5 = vcombine.high %v1927_v59, %v1943_v61  ;;  %v1967_v7 = vcombine.low %v1934_v60, %v1950_v62  ;;  %v1968_v8 = vcombine.high %v1934_v60, %v1950_v62 }
 0x3a2   : > { %v2140_v9 = vrot.slane %v2133_v63, %v7734_v33  ;;  %v2148_v10 = vrot.slane %v5541_v0, %v7734_v33  ;;  %v2156_v11 = vrot.slane %v2149_v1, %v7734_v33  ;;  %v2164_v12 = vrot.slane %v5542_v3, %v7734_v33  ;;  %v1903_v63 = vpop.f32.mrf.mxu0 }
 0x3a3   : > { %v1959_v13 = vrot.slane %v1951_v4, %v7736_v40  ;;  %v1966_v14 = vrot.slane %v1952_v5, %v7736_v40  ;;  %v1975_v15 = vrot.slane %v1967_v7, %v7736_v40  ;;  %v1982_v16 = vrot.slane %v1968_v8, %v7736_v40 }
 0x3a4   : > { %v2165_v17 = vcombine.low %v2140_v9, %v2148_v10  ;;  %v2181_v18 = vcombine.low %v2156_v11, %v2164_v12  ;;  %v2166_v19 = vcombine.high %v2140_v9, %v2148_v10  ;;  %v2182_v20 = vcombine.high %v2156_v11, %v2164_v12  ;;  %v5720_v0 = vpop.f32.mrf.mxu0 }
 0x3a5   : > { %v1987_v21 = vcombine.low %v1959_v13, %v1966_v14  ;;  %v5539_v22 = vcombine.high %v1959_v13, %v1966_v14  ;;  %v2003_v23 = vcombine.low %v1975_v15, %v1982_v16  ;;  %v5540_v24 = vcombine.high %v1975_v15, %v1982_v16 }
 0x3a6   : > { %v2173_v25 = vrot.slane %v2165_v17, %v7736_v40  ;;  %v2189_v26 = vrot.slane %v2181_v18, %v7736_v40  ;;  %v2180_v34 = vrot.slane %v2166_v19, %v7736_v40  ;;  %v2196_v35 = vrot.slane %v2182_v20, %v7736_v40  ;;  %v1906_v1 = vpop.f32.mrf.mxu0 }
 0x3a7   : > { %v1994_v27 = vrot.slane %v1987_v21, %v7734_v33  ;;  %v2002_v28 = vrot.slane %v5539_v22, %v7734_v33  ;;  %v2010_v29 = vrot.slane %v2003_v23, %v7734_v33  ;;  %v2018_v30 = vrot.slane %v5540_v24, %v7734_v33  ;;  %v5535_v23 = vld [vmem:[%s8520_s5] ss:$0 sm:$0xff] }
 0x3a8   : > { %v2197_v31 = vcombine.low %v2173_v25, %v2189_v26  ;;  %v2198_v32 = vcombine.high %v2173_v25, %v2189_v26  ;;  %v2199_v45 = vcombine.low %v2180_v34, %v2196_v35  ;;  %v2200_v46 = vcombine.high %v2180_v34, %v2196_v35  ;;  %v5721_v3 = vpop.f32.mrf.mxu0 }
 0x3a9   : > { %v2019_v36 = vcombine.low %v1994_v27, %v2002_v28  ;;  %v2035_v37 = vcombine.low %v2010_v29, %v2018_v30  ;;  %v2020_v47 = vcombine.high %v1994_v27, %v2002_v28  ;;  %v2036_v48 = vcombine.high %v2010_v29, %v2018_v30 }
 0x3aa   : > { %v2351_v38 = vpack.c.bf16 %v2197_v31, %v2197_v31  ;;  %v2352_v39 = vpack.c.bf16 %v2198_v32, %v2198_v32  ;;  %v2353_v51 = vpack.c.bf16 %v2199_v45, %v2199_v45  ;;  %v2354_v52 = vpack.c.bf16 %v2200_v46, %v2200_v46 }
 0x3ab   : > { %v2027_v41 = vrot.slane %v2019_v36, %v7736_v40  ;;  %v2043_v42 = vrot.slane %v2035_v37, %v7736_v40  ;;  %v2034_v55 = vrot.slane %v2020_v47, %v7736_v40  ;;  %v2050_v56 = vrot.slane %v2036_v48, %v7736_v40 }
 0x3ac   : > { %v2360_v43 = vsel %vm2355_vm3, %v2351_v38, 0  ;;  %v2406_v44 = vsel %vm2355_vm3, %v2352_v39, 0  ;;  %v2452_v57 = vsel %vm2355_vm3, %v2353_v51, 0  ;;  %v2498_v58 = vsel %vm2355_vm3, %v2354_v52, 0 }
 0x3ad   : > { %5723 = vmatpush3.bf16.xpose.msra.mxu1 %v2360_v43  ;;  %5729 = vmatpush3.bf16.xpose.msra.mxu0 %v2406_v44  ;;  %v2051_v49 = vcombine.low %v2027_v41, %v2043_v42  ;;  %v2052_v50 = vcombine.high %v2027_v41, %v2043_v42  ;;  %v2053_v59 = vcombine.low %v2034_v55, %v2050_v56 }
 0x3ae   : > { %5734 = vmatprep.subr.bf16.mxu1 %v6840_v2  ;;  %5740 = vmatprep.subr.bf16.mxu0 %v6840_v2  ;;  %v2054_v60 = vcombine.high %v2034_v55, %v2050_v56  ;;  %v1904_v26 = vadd.f32 %v5535_v23, %v1903_v63 }
 0x3af   : > { %v2347_v53 = vpack.c.bf16 %v2051_v49, %v2051_v49  ;;  %v2348_v54 = vpack.c.bf16 %v2052_v50, %v2052_v50  ;;  %v2349_v61 = vpack.c.bf16 %v2053_v59, %v2053_v59 }
 0x3b0   : > { %v2350_v62 = vpack.c.bf16 %v2054_v60, %v2054_v60 }
 0x3b4   : > { %5725 = vmatmul.mubr.msk.bf16.vlgmr.msra.gmra.mxu1 %vm2355_vm3, %v2347_v53  ;;  %5731 = vmatmul.mubr.msk.bf16.vlgmr.msra.gmra.mxu0 %vm2355_vm3, %v2348_v54 }
 0x3b5   : > { %5735 = vmatpush3.bf16.xpose.msra.mxu1 %v2452_v57  ;;  %5741 = vmatpush3.bf16.xpose.msra.mxu0 %v2498_v58 }
 0x3b6   : > { %5736 = vmatprep.mubr.msk.bf16.mxu1 %vm6841_vm1, %v6840_v2  ;;  %5742 = vmatprep.mubr.msk.bf16.mxu0 %vm6841_vm1, %v6840_v2 }
 0x3b7   : > { %5746 = vmatprep.subr.bf16.mxu1 %v6840_v2  ;;  %5752 = vmatprep.subr.bf16.mxu0 %v6840_v2 }
 0x3bc   : > { %5737 = vmatmul.mubr.msk.bf16.vlgmr.msra.gmra.mxu1 %vm2355_vm3, %v2349_v61  ;;  %5743 = vmatmul.mubr.msk.bf16.vlgmr.msra.gmra.mxu0 %vm2355_vm3, %v2350_v62 }
 0x3bd   : > { %5748 = vmatprep.mubr.msk.bf16.mxu1 %vm6841_vm1, %v6840_v2  ;;  %5754 = vmatprep.mubr.msk.bf16.mxu0 %vm6841_vm1, %v6840_v2 }
 0x474   : > { %v2396_v4 = vpop.f32.mrf.mxu1  ;;  %v2442_v5 = vpop.f32.mrf.mxu0 }
 0x475   : > { %v2540_v7 = vsel %vm2355_vm3, %v2396_v4, -inf  ;;  %v2543_v8 = vsel %vm2355_vm3, %v2442_v5, -inf }
 0x476   : > { %2541 = vmax.xlane.f32.xlu0 %v2540_v7  ;;  %v5726_v9 = vpop.f32.mrf.mxu1  ;;  %2544 = vmax.xlane.f32.xlu1 %v2543_v8  ;;  %v5732_v10 = vpop.f32.mrf.mxu0 }
 0x478   : > { %v2399_v11 = vpop.f32.mrf.mxu1  ;;  %v2445_v12 = vpop.f32.mrf.mxu0 }
 0x47a   : > { %v5727_v13 = vpop.f32.mrf.mxu1  ;;  %v5733_v14 = vpop.f32.mrf.mxu0 }
 0x47c   : > { %v2488_v15 = vpop.f32.mrf.mxu1  ;;  %v2534_v16 = vpop.f32.mrf.mxu0 }
 0x47d   : > { %v2546_v17 = vsel %vm2355_vm3, %v2488_v15, -inf  ;;  %v2549_v22 = vsel %vm2355_vm3, %v2534_v16, -inf }
 0x47e   : > { %2547 = vmax.xlane.f32.xlu0 %v2546_v17  ;;  %v5738_v18 = vpop.f32.mrf.mxu1  ;;  %v5744_v19 = vpop.f32.mrf.mxu0 }
 0x480   : > { %v2491_v20 = vpop.f32.mrf.mxu1  ;;  %v2537_v21 = vpop.f32.mrf.mxu0 }
 0x482   : > { %v5739_v24 = vpop.f32.mrf.mxu1  ;;  %2550 = vmax.xlane.f32.xlu0 %v2549_v22  ;;  %v5745_v25 = vpop.f32.mrf.mxu0 }
 0x487   : > { %2202 = vrot.lane.b32.xlu1 %v1904_v26, %s6843_s20 }
 0x4ff   : > { %v2542_v27 = vpop.xlane.xlu0 %2541  ;;  %v2545_v28 = vpop.xlane.xlu1 %2544 }
 0x500   : > { %v2552_v29 = vsub.f32 %v2396_v4, %v2542_v27  ;;  %v2553_v30 = vsub.f32 %v2442_v5, %v2545_v28 }
 0x502   : > { %v2556_v31 = vmul.f32 1.442695, %v2552_v29  ;;  %v2558_v32 = vmul.f32 1.442695, %v2553_v30 }
 0x503   : > { %v2203_v49 = vpop.permute.xlu1 %2202 }
 0x504   : > { %6104 = vpow2.f32 %v2556_v31 }
 0x505   : > { %6106 = vpow2.f32 %v2558_v32 }
 0x507   : > { %v2548_v38 = vpop.xlane.xlu0 %2547 }
 0x508   : > { %v2554_v41 = vsub.f32 %v2488_v15, %v2548_v38 }
 0x50a   : > { %v2560_v43 = vmul.f32 1.442695, %v2554_v41 }
 0x50b   : > { %v2551_v39 = vpop.xlane.xlu0 %2550 }
 0x50c   : > { %v2555_v42 = vsub.f32 %v2534_v16, %v2551_v39  ;;  %6108 = vpow2.f32 %v2560_v43 }
 0x50e   : > { %v2562_v44 = vmul.f32 1.442695, %v2555_v42 }
 0x510   : > { %6110 = vpow2.f32 %v2562_v44 }
 0x511   : > { %v6105_v34 = vpop.eup %6104 }
 0x512   : > { %v6107_v35 = vpop.eup %6106  ;;  %v2564_v36 = vsel %vm2355_vm3, %v6105_v34, 0.0 }
 0x513   : > { %2565 = vadd.xlane.f32.xlu1 %v2564_v36  ;;  %v2567_v37 = vsel %vm2355_vm3, %v6107_v35, 0.0 }
 0x514   : > { %2568 = vadd.xlane.f32.xlu0 %v2567_v37 }
 0x519   : > { %v7801_v45 = vpop.eup %6108 }
 0x51a   : > { %v2570_v47 = vsel %vm2355_vm3, %v7801_v45, 0.0 }
 0x51d   : > { %v7803_v46 = vpop.eup %6110 }
 0x51e   : > { %v2573_v48 = vsel %vm2355_vm3, %v7803_v46, 0.0 }
 0x524   : > { %2208 = vrot.lane.b32.xlu1 %v1904_v26, %s6842_s24 }
 0x52a   : > { %2205 = vrot.lane.b32.xlu0 %v1904_v26, %s6844_s11 }
 0x548   : > { %2571 = vadd.xlane.f32.xlu1 %v2570_v47 }
 0x549   : > { %2574 = vadd.xlane.f32.xlu0 %v2573_v48 }
 0x59c   : > { %v2566_v50 = vpop.xlane.xlu1 %2565 }
 0x59d   : > { %6112 = vrcp.f32 %v2566_v50  ;;  %v2569_v51 = vpop.xlane.xlu0 %2568 }
 0x59e   : > { %6114 = vrcp.f32 %v2569_v51 }
 0x5a0   : > { %v2209_v52 = vpop.permute.xlu1 %2208 }
 0x5a1   : > { %v2227_v53 = vcombine.low %v2203_v49, %v2209_v52  ;;  %v2228_v54 = vcombine.high %v2203_v49, %v2209_v52  ;;  %v2206_v55 = vpop.permute.xlu0 %2205 }
 0x5a2   : > { %v2211_v56 = vcombine.low %v1904_v26, %v2206_v55  ;;  %v2212_v57 = vcombine.high %v1904_v26, %v2206_v55 }
 0x5a3   : > { %v2235_v58 = vrot.slane %v2227_v53, %v7734_v33  ;;  %v2242_v59 = vrot.slane %v2228_v54, %v7734_v33 }
 0x5a4   : > { %v2219_v60 = vrot.slane %v2211_v56, %v7734_v33  ;;  %v2226_v61 = vrot.slane %v2212_v57, %v7734_v33 }
 0x5a6   : > { %v2243_v62 = vcombine.low %v2219_v60, %v2235_v58  ;;  %v2244_v63 = vcombine.high %v2219_v60, %v2235_v58  ;;  %v2259_v0 = vcombine.low %v2226_v61, %v2242_v59  ;;  %v2260_v1 = vcombine.high %v2226_v61, %v2242_v59 }
 0x5a8   : > { %v2251_v3 = vrot.slane %v2243_v62, %v7736_v40  ;;  %v2258_v4 = vrot.slane %v2244_v63, %v7736_v40  ;;  %v2267_v5 = vrot.slane %v2259_v0, %v7736_v40  ;;  %v2274_v7 = vrot.slane %v2260_v1, %v7736_v40 }
 0x5aa   : > { %v6113_v8 = vpop.eup %6112  ;;  %v2279_v9 = vcombine.low %v2251_v3, %v2258_v4  ;;  %v5543_v10 = vcombine.high %v2251_v3, %v2258_v4  ;;  %v2295_v11 = vcombine.low %v2267_v5, %v2274_v7  ;;  %v5544_v12 = vcombine.high %v2267_v5, %v2274_v7 }
 0x5ab   : > { %v6115_v13 = vpop.eup %6114  ;;  %v2580_v14 = vmul.f32 %v6113_v8, %v6105_v34 }
 0x5ac   : > { %v2286_v15 = vrot.slane %v2279_v9, %v7734_v33  ;;  %v2294_v16 = vrot.slane %v5543_v10, %v7734_v33  ;;  %v2302_v17 = vrot.slane %v2295_v11, %v7734_v33  ;;  %v2310_v18 = vrot.slane %v5544_v12, %v7734_v33 }
 0x5ad   : > { %2584 = vst.msk [vmem:[%s7683_s3] sm:$0xff] %vm2355_vm3, %v2580_v14  ;;  %v2581_v19 = vmul.f32 %v6115_v13, %v6107_v35  ;;  %v2588_v39 = vpack.c.bf16 %v2580_v14, %v2580_v14 }
 0x5ae   : > { %v2311_v20 = vcombine.low %v2286_v15, %v2294_v16  ;;  %v2327_v21 = vcombine.low %v2302_v17, %v2310_v18  ;;  %v2312_v22 = vcombine.high %v2286_v15, %v2294_v16  ;;  %v2328_v23 = vcombine.high %v2302_v17, %v2310_v18  ;;  %v6088_v17 = vld [vmem:[%s8521_s17 + $0x8] sm:$0xff]   ;;  %s8534_s17 = scalar_lea.vmem [#allocation13], %s8519_s18 }
 0x5af   : > { %2585 = vst.msk [vmem:[%s7683_s3 + $0x8] sm:$0xff] %vm2355_vm3, %v2581_v19  ;;  %v2589_v41 = vpack.c.bf16 %v2581_v19, %v2581_v19 }
 0x5b0   : > { %v2319_v24 = vrot.slane %v2311_v20, %v7736_v40  ;;  %v2335_v25 = vrot.slane %v2327_v21, %v7736_v40  ;;  %v2326_v26 = vrot.slane %v2312_v22, %v7736_v40  ;;  %v2342_v27 = vrot.slane %v2328_v23, %v7736_v40 }
 0x5b2   : > { %v2343_v28 = vcombine.low %v2319_v24, %v2335_v25  ;;  %v2344_v29 = vcombine.high %v2319_v24, %v2335_v25  ;;  %v2345_v30 = vcombine.low %v2326_v26, %v2342_v27  ;;  %v2346_v31 = vcombine.high %v2326_v26, %v2342_v27  ;;  %v6089_v27 = vld [vmem:[%s8522_s4] sm:$0xff]   ;;  %s8535_s4 = scalar_lea.vmem [#allocation19], %s8519_s18 }
 0x5b4   : > { %v2592_v32 = vpack.c.bf16 %v2343_v28, %v2343_v28  ;;  %v2593_v34 = vpack.c.bf16 %v2344_v29, %v2344_v29  ;;  %v2594_v37 = vpack.c.bf16 %v2345_v30, %v2345_v30  ;;  %v2595_v38 = vpack.c.bf16 %v2346_v31, %v2346_v31 }
 0x5b6   : > { %v2601_v35 = vsel %vm2599_vm4, %v2592_v32, 0  ;;  %v2647_v36 = vsel %vm2599_vm4, %v2593_v34, 0  ;;  %v2693_v42 = vsel %vm2599_vm4, %v2594_v37, 0  ;;  %v2739_v43 = vsel %vm2599_vm4, %v2595_v38, 0 }
 0x5b7   : > { %5747 = vmatpush3.bf16.msra.mxu1 %v2601_v35  ;;  %5753 = vmatpush3.bf16.msra.mxu0 %v2647_v36 }
 0x5b8   : > { %5758 = vmatprep.subr.bf16.mxu1 %v6840_v2  ;;  %5764 = vmatprep.subr.bf16.mxu0 %v6840_v2 }
 0x5ba   : > { %5749 = vmatmul.mubr.msk.bf16.vlgmr.msra.gmra.mxu1 %vm2355_vm3, %v2588_v39  ;;  %5755 = vmatmul.mubr.msk.bf16.vlgmr.msra.gmra.mxu0 %vm2355_vm3, %v2589_v41 }
 0x5bb   : > { %5759 = vmatpush3.bf16.msra.mxu1 %v2693_v42  ;;  %5765 = vmatpush3.bf16.msra.mxu0 %v2739_v43 }
 0x5bc   : > { %5760 = vmatprep.mubr.msk.bf16.mxu1 %vm6841_vm1, %v6840_v2  ;;  %5766 = vmatprep.mubr.msk.bf16.mxu0 %vm6841_vm1, %v6840_v2 }
 0x5bd   : > { %5770 = vmatprep.subr.bf16.mxu1 %v6840_v2  ;;  %5778 = vmatprep.subr.bf16.mxu0 %v6840_v2 }
 0x5d1   : > { %v2572_v44 = vpop.xlane.xlu1 %2571 }
 0x5d2   : > { %6116 = vrcp.f32 %v2572_v44  ;;  %v2575_v47 = vpop.xlane.xlu0 %2574 }
 0x5d3   : > { %6118 = vrcp.f32 %v2575_v47 }
 0x5df   : > { %v6117_v48 = vpop.eup %6116 }
 0x5e0   : > { %v6119_v49 = vpop.eup %6118  ;;  %v2582_v50 = vmul.f32 %v6117_v48, %v7801_v45 }
 0x5e1   : > { %v2583_v51 = vmul.f32 %v6119_v49, %v7803_v46 }
 0x5e2   : > { %2586 = vst.msk [vmem:[%s7683_s3 + $0x10] sm:$0xff] %vm2355_vm3, %v2582_v50  ;;  %v2590_v52 = vpack.c.bf16 %v2582_v50, %v2582_v50 }
 0x5e3   : > { %2587 = vst.msk [vmem:[%s7683_s3 + $0x18] sm:$0xff] %vm2355_vm3, %v2583_v51  ;;  %v2591_v53 = vpack.c.bf16 %v2583_v51, %v2583_v51  ;;  %s6850_s3 = smov [#allocation29]  }
 0x5e4   : > { %5761 = vmatmul.mubr.msk.bf16.vlgmr.msra.gmra.mxu1 %vm2355_vm3, %v2590_v52 }
 0x5e5   : > { %5767 = vmatmul.mubr.msk.bf16.vlgmr.msra.gmra.mxu0 %vm2355_vm3, %v2591_v53  ;;  %5774 = vmatprep.mubr.msk.bf16.mxu1 %vm6841_vm1, %v6840_v2 }
 0x5e6   : > { %5782 = vmatprep.mubr.msk.bf16.mxu0 %vm6841_vm1, %v6840_v2  ;;  %5771 = vmatpush3.bf16.msra.mxu1 %v6088_v17 }
 0x5e7   : > { %5772 = vmatprep.subr.bf16.mxu1 %v6840_v2 }
 0x5ea   : > { %5773 = vmatpush3.bf16.msra.mxu1 %v6089_v27 }
 0x5eb   : > { %5786 = vmatprep.subr.bf16.mxu1 %v6840_v2 }
 0x67a   : > { %v2637_v54 = vpop.f32.mrf.mxu1  ;;  %v2683_v45 = vpop.f32.mrf.mxu0 }
 0x67c   : > { %v5750_v55 = vpop.f32.mrf.mxu1  ;;  %v5756_v46 = vpop.f32.mrf.mxu0 }
 0x67e   : > { %v2640_v56 = vpop.f32.mrf.mxu1  ;;  %v2686_v57 = vpop.f32.mrf.mxu0 }
 0x680   : > { %v5751_v58 = vpop.f32.mrf.mxu1  ;;  %v5757_v59 = vpop.f32.mrf.mxu0 }
 0x6a4   : > { %v2729_v60 = vpop.f32.mrf.mxu1 }
 0x6a5   : > { %v2781_v61 = vcombine.low %v2637_v54, %v2729_v60  ;;  %v2782_v62 = vcombine.high %v2637_v54, %v2729_v60  ;;  %v2775_v63 = vpop.f32.mrf.mxu0 }
 0x6a6   : > { %v2797_v0 = vcombine.low %v2683_v45, %v2775_v63  ;;  %v2798_v1 = vcombine.high %v2683_v45, %v2775_v63  ;;  %v5762_v3 = vpop.f32.mrf.mxu1  ;;  %v5555_v45 = vld [vmem:[%s8524_s27] ss:$0 sm:$0xff] }
 0x6a7   : > { %v2789_v4 = vrot.slane %v2781_v61, %v7734_v33  ;;  %v2796_v5 = vrot.slane %v2782_v62, %v7734_v33  ;;  %v5768_v7 = vpop.f32.mrf.mxu0  ;;  %v6090_v61 = vld [vmem:[%s8525_s9 + $0x8] sm:$0xff]   ;;  %v6091_v62 = vld [vmem:[%s8526_s2] sm:$0xff]   ;;  %s8544_s9 = scalar_lea.vmem [#allocation25], %s8519_s18  ;;  %s8546_s2 = sld [smem:[#allocation82_spill]] }
 0x6a8   : > { %v2805_v8 = vrot.slane %v2797_v0, %v7734_v33  ;;  %v2812_v9 = vrot.slane %v2798_v1, %v7734_v33  ;;  %v2732_v10 = vpop.f32.mrf.mxu1  ;;  %v1712_v63 = vld [vmem:[%s8523_s8] sm:$0xff]  ;;  %v1713_v0 = vld [vmem:[%s8523_s8 + $0x8] sm:$0xff] }
 0x6a9   : > { %v2778_v11 = vpop.f32.mrf.mxu0  ;;  %v7897_v1 = vpack.c.bf16 %v1713_v0, %v1712_v63  ;;  %v5565_v10 = vld [vmem:[%s8529_s10] ss:$0 sm:$0xff] }
 0x6aa   : > { %v2813_v12 = vcombine.low %v2789_v4, %v2805_v8  ;;  %v2814_v13 = vcombine.high %v2789_v4, %v2805_v8  ;;  %v2829_v14 = vcombine.low %v2796_v5, %v2812_v9  ;;  %v2830_v15 = vcombine.high %v2796_v5, %v2812_v9  ;;  %v5763_v16 = vpop.f32.mrf.mxu1  ;;  %v6092_v8 = vld [vmem:[%s8527_s25 + $0x8] sm:$0xff]   ;;  %v6093_v9 = vld [vmem:[%s8528_s19] sm:$0xff]   ;;  %s8550_s19 = sld [smem:[#allocation95_spill]] }
 0x6ab   : > { %v5769_v18 = vpop.f32.mrf.mxu0  ;;  %5779 = vmatpush3.bf16.msra.mxu0 %v6092_v8 }
 0x6ac   : > { %v2821_v19 = vrot.slane %v2813_v12, %v7736_v40  ;;  %v2828_v20 = vrot.slane %v2814_v13, %v7736_v40  ;;  %v2837_v21 = vrot.slane %v2829_v14, %v7736_v40  ;;  %v2844_v22 = vrot.slane %v2830_v15, %v7736_v40  ;;  %5780 = vmatprep.subr.bf16.mxu0 %v6840_v2 }
 0x6ad   : > { %s5616_s10 = sshll.u32 %s8546_s2, 3 }
 0x6ae   : > { %v2849_v23 = vcombine.low %v2821_v19, %v2828_v20  ;;  %v5553_v24 = vcombine.high %v2821_v19, %v2828_v20  ;;  %v2865_v25 = vcombine.low %v2837_v21, %v2844_v22  ;;  %v5554_v26 = vcombine.high %v2837_v21, %v2844_v22  ;;  %v5559_v21 = vld [vmem:[%s1690_s22] ss:$0 sm:$0xff] }
 0x6af   : > { %5781 = vmatpush3.bf16.msra.mxu0 %v6093_v9 }
 0x6b0   : > { %v2856_v28 = vrot.slane %v2849_v23, %v7734_v33  ;;  %v2864_v29 = vrot.slane %v5553_v24, %v7734_v33  ;;  %v2872_v30 = vrot.slane %v2865_v25, %v7734_v33  ;;  %v2880_v31 = vrot.slane %v5554_v26, %v7734_v33  ;;  %5794 = vmatprep.subr.bf16.mxu0 %v6840_v2  ;;  %v5560_v23 = vld [vmem:[%s1693_s15] ss:$0 sm:$0xff]  ;;  %s8532_s15 = scalar_lea.vmem [#allocation17], %s8516_s21  ;;  %p8551_p5 = scmp.ne.s32.totalorder %s8550_s19, 0 }
 0x6b1   : > { %s8533_s22 = smov %s8532_s15 }
 0x6b2   : > { %v2882_v32 = vcombine.high %v2856_v28, %v2864_v29  ;;  %v2898_v34 = vcombine.high %v2872_v30, %v2880_v31  ;;  %v2881_v35 = vcombine.low %v2856_v28, %v2864_v29  ;;  %v2897_v36 = vcombine.low %v2872_v30, %v2880_v31 }
 0x6b4   : > { %v2896_v37 = vrot.slane %v2882_v32, %v7736_v40  ;;  %v2912_v38 = vrot.slane %v2898_v34, %v7736_v40  ;;  %v2889_v39 = vrot.slane %v2881_v35, %v7736_v40  ;;  %v2905_v41 = vrot.slane %v2897_v36, %v7736_v40 }
 0x6b6   : > { %v2915_v42 = vcombine.low %v2896_v37, %v2912_v38  ;;  %v2914_v43 = vcombine.high %v2889_v39, %v2905_v41  ;;  %v2913_v44 = vcombine.low %v2889_v39, %v2905_v41  ;;  %v2916_v47 = vcombine.high %v2896_v37, %v2912_v38 }
 0x6b8   : > { %2922 = vrot.lane.b32.xlu1 %v2915_v42, %s6847_s6  ;;  %2918 = vrot.lane.b32.xlu0 %v2914_v43, %s6848_s0 }
 0x6bc   : > { %2926 = vrot.lane.b32.xlu1 %v2916_v47, %s6849_s14 }
 0x72a   : > { %v2923_v48 = vpop.permute.xlu1 %2922  ;;  %v2919_v49 = vpop.permute.xlu0 %2918 }
 0x72b   : > { %v2929_v50 = vsel %vm2355_vm3, %v2913_v44, %v2919_v49 }
 0x72c   : > { %v2931_v52 = vsel %vm2930_vm5, %v2929_v50, %v2923_v48 }
 0x72e   : > { %v2927_v51 = vpop.permute.xlu1 %2926 }
 0x72f   : > { %v2933_v53 = vsel %vm2932_vm6, %v2931_v52, %v2927_v51 }
 0x730   : > { %v2934_v54 = vpack.c.bf16 %v2933_v53, %v2933_v53 }
 0x732   : > { %5775 = vmatmul.mubr.msk.bf16.vlgmr.msra.gmra.mxu1 %vm1738_vm2, %v2934_v54 }
 0x733   : > { %5790 = vmatprep.mubr.msk.bf16.mxu1 %vm6841_vm1, %v6840_v2  ;;  %5787 = vmatpush3.bf16.msra.mxu1 %v6090_v61 }
 0x734   : > { %5788 = vmatprep.subr.bf16.mxu1 %v6840_v2 }
 0x737   : > { %5789 = vmatpush3.bf16.msra.mxu1 %v6091_v62 }
 0x738   : > { %5802 = vmatprep.subr.bf16.mxu1 %v6840_v2 }
 0x73a   : > { %5791 = vmatmul.mubr.msk.bf16.vlgmr.msra.gmra.mxu1 %vm1738_vm2, %v7897_v1 }
 0x73b   : > { %5804 = vmatprep.mubr.msk.bf16.mxu1 %vm6841_vm1, %v6840_v2 }
 0x7f2   : > { %v2995_v55 = vpop.f32.mrf.mxu1 }
 0x7f3   : > { %v2996_v46 = vadd.f32 %v5555_v45, %v2995_v55 }
 0x7f4   : > { %v5776_v56 = vpop.f32.mrf.mxu1 }
 0x7f5   : > { %v3001_v57 = vadd.f32 %v2996_v46, %v7701_v6 }
 0x7f6   : > { %v2998_v58 = vpop.f32.mrf.mxu1 }
 0x7f7   : > { %v3004_v59 = vsel %vm1738_vm2, %v3001_v57, 0.0 }
 0x7f8   : > { %3005 = vadd.xlane.f32.xlu0 %v3004_v59  ;;  %v5777_v60 = vpop.f32.mrf.mxu1 }
 0x7fa   : > { %v3161_v11 = vpop.f32.mrf.mxu1 }
 0x7fb   : > { %v3162_v12 = vadd.f32 %v5565_v10, %v3161_v11 }
 0x7fc   : > { %v5792_v13 = vpop.f32.mrf.mxu1 }
 0x7fe   : > { %v3164_v14 = vpop.f32.mrf.mxu1 }
 0x7ff   : > { %v3165_v15 = vadd.f32 %v5565_v10, %v3164_v14 }
 0x800   : > { %v5793_v16 = vpop.f32.mrf.mxu1 }
 0x80e   : > { %3380 = vrot.lane.b32.xlu0 %v3162_v12, %s6843_s20 }
 0x812   : > { %3386 = vrot.lane.b32.xlu0 %v3162_v12, %s6844_s11 }
 0x816   : > { %3392 = vrot.lane.b32.xlu0 %v3162_v12, %s6842_s24 }
 0x881   : > { %v3006_v6 = vpop.xlane.xlu0 %3005 }
 0x882   : > { %v3008_v3 = vmul.f32 0.03125, %v3006_v6 }
 0x884   : > { %v3009_v4 = vsub.f32 %v3001_v57, %v3008_v3 }
 0x885   : > { %v3381_v27 = vpop.permute.xlu0 %3380 }
 0x886   : > { %v3010_v5 = vmul.f32 %v3009_v4, %v3009_v4 }
 0x888   : > { %v3011_v7 = vsel %vm1738_vm2, %v3010_v5, 0.0 }
 0x889   : > { %3012 = vadd.xlane.f32.xlu1 %v3011_v7  ;;  %v3387_v29 = vpop.permute.xlu0 %3386 }
 0x88a   : > { %v3398_v34 = vcombine.low %v3162_v12, %v3387_v29  ;;  %v3399_v35 = vcombine.high %v3162_v12, %v3387_v29 }
 0x88c   : > { %v3406_v43 = vrot.slane %v3398_v34, %v7734_v33  ;;  %v3413_v44 = vrot.slane %v3399_v35, %v7734_v33 }
 0x88d   : > { %v3393_v31 = vpop.permute.xlu0 %3392 }
 0x88e   : > { %v3414_v36 = vcombine.low %v3381_v27, %v3393_v31  ;;  %v3415_v37 = vcombine.high %v3381_v27, %v3393_v31 }
 0x890   : > { %v3422_v47 = vrot.slane %v3414_v36, %v7734_v33  ;;  %v3429_v48 = vrot.slane %v3415_v37, %v7734_v33  ;;  %v6095_v36 = vld [vmem:[%s8533_s22] sm:$0xff]  }
 0x892   : > { %v3430_v53 = vcombine.low %v3406_v43, %v3422_v47  ;;  %v3431_v54 = vcombine.high %v3406_v43, %v3422_v47  ;;  %v3446_v45 = vcombine.low %v3413_v44, %v3429_v48  ;;  %v3447_v55 = vcombine.high %v3413_v44, %v3429_v48 }
 0x894   : > { %v3438_v59 = vrot.slane %v3430_v53, %v7736_v40  ;;  %v3445_v60 = vrot.slane %v3431_v54, %v7736_v40  ;;  %v3454_v61 = vrot.slane %v3446_v45, %v7736_v40  ;;  %v3461_v62 = vrot.slane %v3447_v55, %v7736_v40 }
 0x896   : > { %v5575_v5 = vcombine.high %v3438_v59, %v3445_v60  ;;  %v3550_v7 = vcombine.low %v3454_v61, %v3461_v62  ;;  %v5576_v8 = vcombine.high %v3454_v61, %v3461_v62  ;;  %v5569_v62 = vld [vmem:[%s8535_s4] ss:$0 sm:$0xff]  ;;  %s6558_s4 = scalar_lea.vmem %s8193_s1, 512 }
 0x897   : > { %p6559_p11 = scmp.ne.s32.totalorder %s8193_s1, %s6558_s4 }
 0x898   : > { %v3549_v14 = vrot.slane %v5575_v5, %v7734_v33  ;;  %v3565_v16 = vrot.slane %v5576_v8, %v7734_v33 }
 0x899   : > { %p6560_p9 = pnand %p6559_p11, %p8551_p5 }
 0x89a   : > { %3382 = vrot.lane.b32.xlu1 %v3165_v15, %s6843_s20 }
 0x89b   : > { %p6561_p6 = pneg %p6560_p9 }
 0x89e   : > { %3388 = vrot.lane.b32.xlu1 %v3165_v15, %s6844_s11 }
 0x8a2   : > { %3394 = vrot.lane.b32.xlu1 %v3165_v15, %s6842_s24 }
 0x912   : > { %v3013_v17 = vpop.xlane.xlu1 %3012 }
 0x913   : > { %v3014_v18 = vmul.f32 0.03125, %v3013_v17 }
 0x915   : > { %v3015_v19 = vadd.f32 1e-05, %v3014_v18 }
 0x916   : > { %v3383_v28 = vpop.permute.xlu1 %3382 }
 0x917   : > { %6120 = vrsqrt.f32 %v3015_v19 }
 0x91a   : > { %v3389_v30 = vpop.permute.xlu1 %3388 }
 0x91b   : > { %v3466_v38 = vcombine.low %v3165_v15, %v3389_v30  ;;  %v3467_v39 = vcombine.high %v3165_v15, %v3389_v30  ;;  %v3557_v15 = vrot.slane %v3550_v7, %v7734_v33 }
 0x91d   : > { %v3474_v49 = vrot.slane %v3466_v38, %v7734_v33  ;;  %v3481_v50 = vrot.slane %v3467_v39, %v7734_v33 }
 0x91e   : > { %v3395_v32 = vpop.permute.xlu1 %3394 }
 0x91f   : > { %v3482_v41 = vcombine.low %v3383_v28, %v3395_v32  ;;  %v3483_v42 = vcombine.high %v3383_v28, %v3395_v32  ;;  %v3583_v28 = vcombine.high %v3557_v15, %v3565_v16 }
 0x921   : > { %v3490_v51 = vrot.slane %v3482_v41, %v7734_v33  ;;  %v3497_v52 = vrot.slane %v3483_v42, %v7734_v33  ;;  %v3597_v38 = vrot.slane %v3583_v28, %v7736_v40 }
 0x923   : > { %v3498_v46 = vcombine.low %v3474_v49, %v3490_v51  ;;  %v3499_v56 = vcombine.high %v3474_v49, %v3490_v51  ;;  %v3514_v57 = vcombine.low %v3481_v50, %v3497_v52  ;;  %v3515_v58 = vcombine.high %v3481_v50, %v3497_v52 }
 0x924   : > { %v6121_v20 = vpop.eup %6120 }
 0x925   : > { %v3017_v22 = vmul.f32 %v6121_v20, %v3009_v4  ;;  %v3506_v63 = vrot.slane %v3498_v46, %v7736_v40  ;;  %v3513_v0 = vrot.slane %v3499_v56, %v7736_v40  ;;  %v3522_v6 = vrot.slane %v3514_v57, %v7736_v40  ;;  %v5561_v56 = vld [vmem:[%s8534_s17] ss:$0 sm:$0xff] }
 0x926   : > { %v3529_v3 = vrot.slane %v3515_v58, %v7736_v40  ;;  %v3534_v4 = vcombine.low %v3438_v59, %v3445_v60 }
 0x927   : > { %v3024_v24 = vmul.f32 %v5559_v21, %v3017_v22  ;;  %v3602_v9 = vcombine.low %v3506_v63, %v3513_v0  ;;  %v5577_v10 = vcombine.high %v3506_v63, %v3513_v0  ;;  %v6094_v21 = vld [vmem:[%s8532_s15 + $0x8] sm:$0xff]  }
 0x928   : > { %v3618_v11 = vcombine.low %v3522_v6, %v3529_v3  ;;  %v5578_v12 = vcombine.high %v3522_v6, %v3529_v3  ;;  %v3541_v13 = vrot.slane %v3534_v4, %v7734_v33 }
 0x929   : > { %v7925_v25 = vadd.f32 %v5560_v23, %v3024_v24  ;;  %v3609_v17 = vrot.slane %v3602_v9, %v7734_v33  ;;  %v3617_v18 = vrot.slane %v5577_v10, %v7734_v33  ;;  %v3582_v23 = vcombine.low %v3557_v15, %v3565_v16 }
 0x92a   : > { %v3625_v19 = vrot.slane %v3618_v11, %v7734_v33  ;;  %v3633_v20 = vrot.slane %v5578_v12, %v7734_v33  ;;  %v3566_v22 = vcombine.low %v3541_v13, %v3549_v14  ;;  %v3567_v27 = vcombine.high %v3541_v13, %v3549_v14 }
 0x92b   : > { %v3032_v26 = vpack.c.bf16 %v7925_v25, %v7925_v25  ;;  %v3634_v24 = vcombine.low %v3609_v17, %v3617_v18  ;;  %v3635_v29 = vcombine.high %v3609_v17, %v3617_v18  ;;  %v3590_v32 = vrot.slane %v3582_v23, %v7736_v40 }
 0x92c   : > { %v3651_v30 = vcombine.high %v3625_v19, %v3633_v20  ;;  %v3574_v31 = vrot.slane %v3566_v22, %v7736_v40  ;;  %v3581_v37 = vrot.slane %v3567_v27, %v7736_v40 }
 0x92d   : > { %5783 = vmatmul.mubr.msk.bf16.vlgmr.msra.gmra.mxu0 %vm1738_vm2, %v3032_v26  ;;  %v3650_v26 = vcombine.low %v3625_v19, %v3633_v20  ;;  %v3642_v34 = vrot.slane %v3634_v24, %v7736_v40  ;;  %v3649_v39 = vrot.slane %v3635_v29, %v7736_v40 }
 0x92e   : > { %5798 = vmatprep.mubr.msk.bf16.mxu0 %vm6841_vm1, %v6840_v2  ;;  %5795 = vmatpush3.bf16.msra.mxu0 %v6094_v21  ;;  %v3665_v41 = vrot.slane %v3651_v30, %v7736_v40  ;;  %v3598_v42 = vcombine.low %v3574_v31, %v3590_v32  ;;  %v3599_v44 = vcombine.high %v3574_v31, %v3590_v32 }
 0x92f   : > { %5796 = vmatprep.subr.bf16.mxu0 %v6840_v2  ;;  %v3658_v35 = vrot.slane %v3650_v26, %v7736_v40  ;;  %v3600_v48 = vcombine.low %v3581_v37, %v3597_v38  ;;  %v3601_v50 = vcombine.high %v3581_v37, %v3597_v38 }
 0x930   : > { %v3668_v49 = vcombine.low %v3649_v39, %v3665_v41  ;;  %v3669_v51 = vcombine.high %v3649_v39, %v3665_v41 }
 0x931   : > { %v3666_v43 = vcombine.low %v3642_v34, %v3658_v35  ;;  %v3667_v47 = vcombine.high %v3642_v34, %v3658_v35 }
 0x932   : > { %5797 = vmatpush3.bf16.msra.mxu0 %v6095_v36  ;;  %v7970_v54 = vpack.c.bf16 %v3668_v49, %v3600_v48  ;;  %v7972_v45 = vpack.c.bf16 %v3669_v51, %v3601_v50 }
 0x933   : > { %5808 = vmatprep.subr.bf16.mxu0 %v6840_v2  ;;  %v3966_v52 = vpack.c.bf16 %v3666_v43, %v3598_v42  ;;  %v3967_v53 = vpack.c.bf16 %v3667_v47, %v3599_v44 }
 0x934   : > { %v4066_v51 = vsel %vm2355_vm3, %v7970_v54, 0 }
 0x935   : > { %5799 = vmatmul.mubr.msk.bf16.vlgmr.msra.gmra.mxu0 %vm1738_vm2, %v7897_v1  ;;  %v3974_v55 = vsel %vm2355_vm3, %v3966_v52, 0  ;;  %v4020_v46 = vsel %vm2355_vm3, %v3967_v53, 0  ;;  %v4112_v52 = vsel %vm2355_vm3, %v7972_v45, 0 }
 0x936   : > { %5803 = vmatpush3.bf16.xpose.msra.mxu1 %v3974_v55  ;;  %5809 = vmatpush3.bf16.xpose.msra.mxu0 %v4020_v46 }
 0x937   : > { %5810 = vmatprep.mubr.msk.bf16.mxu0 %vm6841_vm1, %v6840_v2  ;;  %5814 = vmatprep.subr.bf16.mxu1 %v6840_v2 }
 0x938   : > { %5820 = vmatprep.subr.bf16.mxu0 %v6840_v2 }
 0x9ed   : > { %v3093_v57 = vpop.f32.mrf.mxu0 }
 0x9ee   : > { %v3094_v58 = vadd.f32 %v5561_v56, %v3093_v57 }
 0x9ef   : > { %v5784_v59 = vpop.f32.mrf.mxu0 }
 0x9f0   : > { %v3099_v1 = vmul.f32 0.35355338, %v3094_v58 }
 0x9f1   : > { %v3096_v60 = vpop.f32.mrf.mxu0 }
 0x9f2   : > { %3236 = vrot.lane.b32.xlu1 %v3099_v1, %s6844_s11  ;;  %3233 = vrot.lane.b32.xlu0 %v3099_v1, %s6843_s20 }
 0x9f3   : > { %v5785_v61 = vpop.f32.mrf.mxu0 }
 0x9f5   : > { %v3225_v63 = vpop.f32.mrf.mxu0 }
 0x9f6   : > { %3239 = vrot.lane.b32.xlu0 %v3099_v1, %s6842_s24  ;;  %v7989_v0 = vadd.f32 %v5569_v62, %v3225_v63 }
 0x9f7   : > { %v5800_v6 = vpop.f32.mrf.mxu0 }
 0x9f9   : > { %v3228_v3 = vpop.f32.mrf.mxu0 }
 0x9fa   : > { %3672 = vrot.lane.b32.xlu0 %v7989_v0, %s6843_s20  ;;  %v7993_v4 = vadd.f32 %v5569_v62, %v3228_v3 }
 0x9fb   : > { %v5801_v5 = vpop.f32.mrf.mxu0 }
 0x9fc   : > { %3674 = vrot.lane.b32.xlu1 %v7993_v4, %s6843_s20 }
 0xa64   : > { %v3237_v7 = vpop.permute.xlu1 %3236  ;;  %v3234_v8 = vpop.permute.xlu0 %3233 }
 0xa65   : > { %v3242_v9 = vcombine.low %v3099_v1, %v3237_v7  ;;  %v3243_v10 = vcombine.high %v3099_v1, %v3237_v7 }
 0xa67   : > { %v3250_v14 = vrot.slane %v3242_v9, %v7734_v33  ;;  %v3257_v15 = vrot.slane %v3243_v10, %v7734_v33 }
 0xa68   : > { %v3240_v11 = vpop.permute.xlu0 %3239 }
 0xa69   : > { %v3258_v12 = vcombine.low %v3234_v8, %v3240_v11  ;;  %v3259_v13 = vcombine.high %v3234_v8, %v3240_v11 }
 0xa6b   : > { %v3266_v16 = vrot.slane %v3258_v12, %v7734_v33  ;;  %v3273_v17 = vrot.slane %v3259_v13, %v7734_v33 }
 0xa6d   : > { %v3274_v18 = vcombine.low %v3250_v14, %v3266_v16  ;;  %v3275_v19 = vcombine.high %v3250_v14, %v3266_v16  ;;  %v3290_v20 = vcombine.low %v3257_v15, %v3273_v17  ;;  %v3291_v21 = vcombine.high %v3257_v15, %v3273_v17  ;;  %v3673_v14 = vpop.permute.xlu0 %3672 }
 0xa6e   : > { %v3675_v15 = vpop.permute.xlu1 %3674 }
 0xa6f   : > { %v3282_v22 = vrot.slane %v3274_v18, %v7736_v40  ;;  %v3289_v23 = vrot.slane %v3275_v19, %v7736_v40  ;;  %v3298_v24 = vrot.slane %v3290_v20, %v7736_v40  ;;  %v3305_v26 = vrot.slane %v3291_v21, %v7736_v40 }
 0xa71   : > { %v3310_v27 = vcombine.low %v3282_v22, %v3289_v23  ;;  %v5573_v28 = vcombine.high %v3282_v22, %v3289_v23  ;;  %v3326_v29 = vcombine.low %v3298_v24, %v3305_v26  ;;  %v5574_v30 = vcombine.high %v3298_v24, %v3305_v26 }
 0xa73   : > { %v3317_v31 = vrot.slane %v3310_v27, %v7734_v33  ;;  %v3325_v32 = vrot.slane %v5573_v28, %v7734_v33  ;;  %v3333_v34 = vrot.slane %v3326_v29, %v7734_v33  ;;  %v3341_v35 = vrot.slane %v5574_v30, %v7734_v33 }
 0xa75   : > { %v3342_v36 = vcombine.low %v3317_v31, %v3325_v32  ;;  %v3358_v37 = vcombine.low %v3333_v34, %v3341_v35  ;;  %v3343_v38 = vcombine.high %v3317_v31, %v3325_v32  ;;  %v3359_v39 = vcombine.high %v3333_v34, %v3341_v35 }
 0xa77   : > { %v3350_v41 = vrot.slane %v3342_v36, %v7736_v40  ;;  %v3366_v42 = vrot.slane %v3358_v37, %v7736_v40  ;;  %v3357_v49 = vrot.slane %v3343_v38, %v7736_v40  ;;  %v3373_v50 = vrot.slane %v3359_v39, %v7736_v40 }
 0xa79   : > { %v3374_v43 = vcombine.low %v3350_v41, %v3366_v42  ;;  %v3375_v44 = vcombine.high %v3350_v41, %v3366_v42  ;;  %v3376_v53 = vcombine.low %v3357_v49, %v3373_v50  ;;  %v3377_v55 = vcombine.high %v3357_v49, %v3373_v50 }
 0xa7b   : > { %v3962_v47 = vpack.c.bf16 %v3374_v43, %v3374_v43  ;;  %v3963_v48 = vpack.c.bf16 %v3375_v44, %v3375_v44  ;;  %v3964_v46 = vpack.c.bf16 %v3376_v53, %v3376_v53  ;;  %v3965_v56 = vpack.c.bf16 %v3377_v55, %v3377_v55 }
 0xa7d   : > { %5805 = vmatmul.mubr.msk.bf16.vlgmr.msra.gmra.mxu1 %vm2355_vm3, %v3962_v47  ;;  %5811 = vmatmul.mubr.msk.bf16.vlgmr.msra.gmra.mxu0 %vm2355_vm3, %v3963_v48 }
 0xa7e   : > { %5815 = vmatpush3.bf16.xpose.msra.mxu1 %v4066_v51  ;;  %5821 = vmatpush3.bf16.xpose.msra.mxu0 %v4112_v52 }
 0xa7f   : > { %5816 = vmatprep.mubr.msk.bf16.mxu1 %vm6841_vm1, %v6840_v2  ;;  %5822 = vmatprep.mubr.msk.bf16.mxu0 %vm6841_vm1, %v6840_v2 }
 0xa80   : > { %5826 = vmatprep.subr.bf16.mxu1 %v6840_v2  ;;  %5832 = vmatprep.subr.bf16.mxu0 %v6840_v2 }
 0xa85   : > { %5817 = vmatmul.mubr.msk.bf16.vlgmr.msra.gmra.mxu1 %vm2355_vm3, %v3964_v46  ;;  %5823 = vmatmul.mubr.msk.bf16.vlgmr.msra.gmra.mxu0 %vm2355_vm3, %v3965_v56 }
 0xa86   : > { %5828 = vmatprep.mubr.msk.bf16.mxu1 %vm6841_vm1, %v6840_v2  ;;  %5834 = vmatprep.mubr.msk.bf16.mxu0 %vm6841_vm1, %v6840_v2 }
 0xb3d   : > { %v4010_v54 = vpop.f32.mrf.mxu1  ;;  %v4056_v45 = vpop.f32.mrf.mxu0 }
 0xb3e   : > { %v4154_v57 = vsel %vm2930_vm5, %v4010_v54, -inf  ;;  %v4157_v58 = vsel %vm2930_vm5, %v4056_v45, -inf }
 0xb3f   : > { %v5806_v59 = vpop.f32.mrf.mxu1  ;;  %4155 = vmax.xlane.f32.xlu1 %v4154_v57  ;;  %4158 = vmax.xlane.f32.xlu0 %v4157_v58  ;;  %v5812_v1 = vpop.f32.mrf.mxu0 }
 0xb41   : > { %v4013_v60 = vpop.f32.mrf.mxu1  ;;  %v4059_v61 = vpop.f32.mrf.mxu0 }
 0xb43   : > { %v5807_v62 = vpop.f32.mrf.mxu1  ;;  %v5813_v63 = vpop.f32.mrf.mxu0 }
 0xb45   : > { %v4102_v6 = vpop.f32.mrf.mxu1  ;;  %v4148_v3 = vpop.f32.mrf.mxu0 }
 0xb46   : > { %v4160_v5 = vsel %vm2930_vm5, %v4102_v6, -inf  ;;  %v4163_v7 = vsel %vm2930_vm5, %v4148_v3, -inf }
 0xb47   : > { %v5818_v8 = vpop.f32.mrf.mxu1  ;;  %4161 = vmax.xlane.f32.xlu0 %v4160_v5  ;;  %4164 = vmax.xlane.f32.xlu1 %v4163_v7  ;;  %v5824_v9 = vpop.f32.mrf.mxu0 }
 0xb49   : > { %v4105_v10 = vpop.f32.mrf.mxu1  ;;  %v4151_v11 = vpop.f32.mrf.mxu0 }
 0xb4b   : > { %v5819_v12 = vpop.f32.mrf.mxu1  ;;  %v5825_v13 = vpop.f32.mrf.mxu0 }
 0xb58   : > { %3678 = vrot.lane.b32.xlu1 %v7989_v0, %s6844_s11 }
 0xb5d   : > { %3680 = vrot.lane.b32.xlu0 %v7993_v4, %s6844_s11  ;;  %s8538_s11 = scalar_lea.vmem [#allocation22], %s8519_s18 }
 0xbc8   : > { %v4156_v16 = vpop.xlane.xlu1 %4155  ;;  %v4159_v17 = vpop.xlane.xlu0 %4158 }
 0xbc9   : > { %v4166_v18 = vsub.f32 %v4010_v54, %v4156_v16  ;;  %v4167_v19 = vsub.f32 %v4056_v45, %v4159_v17 }
 0xbcb   : > { %v4170_v20 = vmul.f32 1.442695, %v4166_v18  ;;  %v4172_v21 = vmul.f32 1.442695, %v4167_v19 }
 0xbcd   : > { %6122 = vpow2.f32 %v4170_v20 }
 0xbce   : > { %6124 = vpow2.f32 %v4172_v21 }
 0xbd0   : > { %v4165_v27 = vpop.xlane.xlu1 %4164  ;;  %v4162_v28 = vpop.xlane.xlu0 %4161 }
 0xbd1   : > { %v4169_v29 = vsub.f32 %v4148_v3, %v4165_v27  ;;  %v4168_v30 = vsub.f32 %v4102_v6, %v4162_v28 }
 0xbd3   : > { %v4176_v31 = vmul.f32 1.442695, %v4169_v29  ;;  %v4174_v32 = vmul.f32 1.442695, %v4168_v30 }
 0xbd4   : > { %v3681_v38 = vpop.permute.xlu0 %3680  ;;  %v3679_v39 = vpop.permute.xlu1 %3678 }
 0xbd5   : > { %6126 = vpow2.f32 %v4176_v31  ;;  %v3758_v43 = vcombine.low %v7993_v4, %v3681_v38  ;;  %v3759_v44 = vcombine.high %v7993_v4, %v3681_v38  ;;  %v3690_v47 = vcombine.low %v7989_v0, %v3679_v39 }
 0xbd6   : > { %6128 = vpow2.f32 %v4174_v32  ;;  %v3691_v48 = vcombine.high %v7989_v0, %v3679_v39 }
 0xbd7   : > { %v3766_v46 = vrot.slane %v3758_v43, %v7734_v33  ;;  %v3773_v56 = vrot.slane %v3759_v44, %v7734_v33 }
 0xbd8   : > { %v3705_v57 = vrot.slane %v3691_v48, %v7734_v33 }
 0xbda   : > { %v8039_v22 = vpop.eup %6122 }
 0xbdb   : > { %v8041_v23 = vpop.eup %6124  ;;  %v4178_v24 = vsel %vm2930_vm5, %v8039_v22, 0.0 }
 0xbdc   : > { %4179 = vadd.xlane.f32.xlu0 %v4178_v24  ;;  %v4181_v26 = vsel %vm2930_vm5, %v8041_v23, 0.0 }
 0xbdd   : > { %4182 = vadd.xlane.f32.xlu1 %v4181_v26 }
 0xbe2   : > { %v8051_v34 = vpop.eup %6126 }
 0xbe3   : > { %v8053_v35 = vpop.eup %6128  ;;  %v4187_v36 = vsel %vm2930_vm5, %v8051_v34, 0.0 }
 0xbe4   : > { %v4184_v37 = vsel %vm2930_vm5, %v8053_v35, 0.0 }
 0xbee   : > { %3684 = vrot.lane.b32.xlu1 %v7989_v0, %s6842_s24 }
 0xbf2   : > { %3686 = vrot.lane.b32.xlu0 %v7993_v4, %s6842_s24  ;;  %v3698_v4 = vrot.slane %v3690_v47, %v7734_v33  ;;  %s8536_s24 = scalar_lea.vmem [#allocation20], %s8516_s21 }
 0xbf3   : > { %s8537_s20 = smov %s8536_s24 }
 0xc11   : > { %4188 = vadd.xlane.f32.xlu0 %v4187_v36 }
 0xc12   : > { %4185 = vadd.xlane.f32.xlu1 %v4184_v37 }
 0xc65   : > { %v4180_v41 = vpop.xlane.xlu0 %4179 }
 0xc66   : > { %6130 = vrcp.f32 %v4180_v41  ;;  %v4183_v42 = vpop.xlane.xlu1 %4182 }
 0xc67   : > { %6132 = vrcp.f32 %v4183_v42 }
 0xc69   : > { %v3687_v49 = vpop.permute.xlu0 %3686 }
 0xc6a   : > { %v3774_v50 = vcombine.low %v3675_v15, %v3687_v49  ;;  %v3775_v51 = vcombine.high %v3675_v15, %v3687_v49  ;;  %v3685_v52 = vpop.permute.xlu1 %3684 }
 0xc6b   : > { %v3706_v53 = vcombine.low %v3673_v14, %v3685_v52  ;;  %v3707_v55 = vcombine.high %v3673_v14, %v3685_v52 }
 0xc6c   : > { %v3782_v54 = vrot.slane %v3774_v50, %v7734_v33  ;;  %v3789_v45 = vrot.slane %v3775_v51, %v7734_v33 }
 0xc6d   : > { %v3714_v0 = vrot.slane %v3706_v53, %v7734_v33  ;;  %v3721_v58 = vrot.slane %v3707_v55, %v7734_v33 }
 0xc6e   : > { %v3790_v59 = vcombine.low %v3766_v46, %v3782_v54  ;;  %v3791_v1 = vcombine.high %v3766_v46, %v3782_v54  ;;  %v3806_v60 = vcombine.low %v3773_v56, %v3789_v45  ;;  %v3807_v61 = vcombine.high %v3773_v56, %v3789_v45 }
 0xc6f   : > { %v3722_v62 = vcombine.low %v3698_v4, %v3714_v0  ;;  %v3723_v63 = vcombine.high %v3698_v4, %v3714_v0  ;;  %v3738_v6 = vcombine.low %v3705_v57, %v3721_v58  ;;  %v3739_v3 = vcombine.high %v3705_v57, %v3721_v58 }
 0xc70   : > { %v3798_v5 = vrot.slane %v3790_v59, %v7736_v40  ;;  %v3805_v7 = vrot.slane %v3791_v1, %v7736_v40  ;;  %v3814_v8 = vrot.slane %v3806_v60, %v7736_v40  ;;  %v3821_v9 = vrot.slane %v3807_v61, %v7736_v40 }
 0xc71   : > { %v3730_v10 = vrot.slane %v3722_v62, %v7736_v40  ;;  %v3737_v11 = vrot.slane %v3723_v63, %v7736_v40  ;;  %v3746_v12 = vrot.slane %v3738_v6, %v7736_v40  ;;  %v3753_v13 = vrot.slane %v3739_v3, %v7736_v40 }
 0xc72   : > { %v3894_v14 = vcombine.low %v3798_v5, %v3805_v7  ;;  %v5581_v15 = vcombine.high %v3798_v5, %v3805_v7  ;;  %v3910_v16 = vcombine.low %v3814_v8, %v3821_v9  ;;  %v5582_v17 = vcombine.high %v3814_v8, %v3821_v9 }
 0xc73   : > { %v6131_v18 = vpop.eup %6130  ;;  %v3826_v19 = vcombine.low %v3730_v10, %v3737_v11  ;;  %v5579_v20 = vcombine.high %v3730_v10, %v3737_v11  ;;  %v3842_v21 = vcombine.low %v3746_v12, %v3753_v13  ;;  %v5580_v24 = vcombine.high %v3746_v12, %v3753_v13 }
 0xc74   : > { %v6133_v26 = vpop.eup %6132  ;;  %v3901_v27 = vrot.slane %v3894_v14, %v7734_v33  ;;  %v3909_v28 = vrot.slane %v5581_v15, %v7734_v33  ;;  %v3917_v29 = vrot.slane %v3910_v16, %v7734_v33  ;;  %v3925_v30 = vrot.slane %v5582_v17, %v7734_v33 }
 0xc75   : > { %v3833_v31 = vrot.slane %v3826_v19, %v7734_v33  ;;  %v3841_v32 = vrot.slane %v5579_v20, %v7734_v33  ;;  %v3849_v36 = vrot.slane %v3842_v21, %v7734_v33  ;;  %v3857_v37 = vrot.slane %v5580_v24, %v7734_v33 }
 0xc76   : > { %v3926_v38 = vcombine.low %v3901_v27, %v3909_v28  ;;  %v3942_v39 = vcombine.low %v3917_v29, %v3925_v30  ;;  %v4194_v41 = vmul.f32 %v6131_v18, %v8039_v22  ;;  %v4195_v42 = vmul.f32 %v6133_v26, %v8041_v23 }
 0xc77   : > { %v3858_v43 = vcombine.low %v3833_v31, %v3841_v32  ;;  %v3874_v44 = vcombine.low %v3849_v36, %v3857_v37  ;;  %v3859_v47 = vcombine.high %v3833_v31, %v3841_v32  ;;  %v3875_v48 = vcombine.high %v3849_v36, %v3857_v37 }
 0xc78   : > { %v3934_v49 = vrot.slane %v3926_v38, %v7736_v40  ;;  %v3950_v50 = vrot.slane %v3942_v39, %v7736_v40  ;;  %4198 = vst.msk [vmem:[%s7685_s12] sm:$0xff] %vm2930_vm5, %v4194_v41  ;;  %4199 = vst.msk [vmem:[%s7685_s12 + $0x8] sm:$0xff] %vm2930_vm5, %v4195_v42  ;;  %v3927_v46 = vcombine.high %v3901_v27, %v3909_v28 }
 0xc79   : > { %v3866_v51 = vrot.slane %v3858_v43, %v7736_v40  ;;  %v3882_v52 = vrot.slane %v3874_v44, %v7736_v40  ;;  %v3873_v22 = vrot.slane %v3859_v47, %v7736_v40  ;;  %v3889_v23 = vrot.slane %v3875_v48, %v7736_v40 }
 0xc7a   : > { %v3958_v53 = vcombine.low %v3934_v49, %v3950_v50  ;;  %v3959_v55 = vcombine.high %v3934_v49, %v3950_v50  ;;  %v3943_v56 = vcombine.high %v3917_v29, %v3925_v30  ;;  %v3941_v4 = vrot.slane %v3927_v46, %v7736_v40  ;;  %v6096_v49 = vld [vmem:[%s8536_s24 + $0x8] sm:$0xff]   ;;  %s6562_s24 = sshll.u32 %s6850_s3, 4  ;;  %s6563_s24 = int_to_ptr.vmem [resolvable:$false] %s6562_s24 }
 0xc7b   : > { %v3890_v54 = vcombine.low %v3866_v51, %v3882_v52  ;;  %v3891_v45 = vcombine.high %v3866_v51, %v3882_v52  ;;  %v3892_v59 = vcombine.low %v3873_v22, %v3889_v23  ;;  %v3893_v1 = vcombine.high %v3873_v22, %v3889_v23  ;;  %p6565_p10 = scmp.lt.s32.totalorder %s8193_s1, %s6563_s24 }
 0xc7c   : > { %v3957_v57 = vrot.slane %v3943_v56, %v7736_v40  ;;  %v4202_v62 = vpack.c.bf16 %v4194_v41, %v4194_v41  ;;  %v4203_v63 = vpack.c.bf16 %v4195_v42, %v4195_v42 }
 0xc7d   : > { %v4206_v0 = vpack.c.bf16 %v3958_v53, %v3890_v54  ;;  %v4207_v58 = vpack.c.bf16 %v3959_v55, %v3891_v45 }
 0xc7e   : > { %v3960_v60 = vcombine.low %v3941_v4, %v3957_v57  ;;  %v3961_v61 = vcombine.high %v3941_v4, %v3957_v57  ;;  %v6097_v57 = vld [vmem:[%s8537_s20] sm:$0xff]   ;;  %s6564_s20 = scalar_lea.vmem %s6563_s24, 1024 }
 0xc7f   : > { %5827 = vmatpush3.bf16.msra.mxu1 %v4206_v0  ;;  %5833 = vmatpush3.bf16.msra.mxu0 %v4207_v58  ;;  %p6566_p3 = scmp.lt.s32.totalorder %s6564_s20, %s6558_s4 }
 0xc80   : > { %5838 = vmatprep.subr.bf16.mxu1 %v6840_v2  ;;  %5844 = vmatprep.subr.bf16.mxu0 %v6840_v2  ;;  %v4208_v6 = vpack.c.bf16 %v3960_v60, %v3892_v59  ;;  %v4209_v3 = vpack.c.bf16 %v3961_v61, %v3893_v1 }
 0xc81   : > { %p6567_p1 = por %p6566_p3, %p6565_p10 }
 0xc82   : > { %5829 = vmatmul.mubr.msk.bf16.vlgmr.msra.gmra.mxu1 %vm2930_vm5, %v4202_v62  ;;  %5835 = vmatmul.mubr.msk.bf16.vlgmr.msra.gmra.mxu0 %vm2930_vm5, %v4203_v63 }
 0xc83   : > { %5839 = vmatpush3.bf16.msra.mxu1 %v4208_v6  ;;  %5845 = vmatpush3.bf16.msra.mxu0 %v4209_v3  ;;  %p6568_p4 = pnand %p6567_p1, %p6561_p6 }
 0xc84   : > { %5840 = vmatprep.mubr.msk.bf16.mxu1 %vm6841_vm1, %v6840_v2  ;;  %5846 = vmatprep.mubr.msk.bf16.mxu0 %vm6841_vm1, %v6840_v2 }
 0xc85   : > { %5850 = vmatprep.subr.bf16.mxu1 %v6840_v2  ;;  %5858 = vmatprep.subr.bf16.mxu0 %v6840_v2 }
 0xc9a   : > { %v4189_v5 = vpop.xlane.xlu0 %4188 }
 0xc9b   : > { %6134 = vrcp.f32 %v4189_v5  ;;  %v4186_v7 = vpop.xlane.xlu1 %4185 }
 0xc9c   : > { %6136 = vrcp.f32 %v4186_v7 }
 0xca8   : > { %v6135_v8 = vpop.eup %6134 }
 0xca9   : > { %v6137_v9 = vpop.eup %6136  ;;  %v4197_v10 = vmul.f32 %v6135_v8, %v8051_v34 }
 0xcaa   : > { %v4196_v11 = vmul.f32 %v6137_v9, %v8053_v35 }
 0xcab   : > { %4201 = vst.msk [vmem:[%s7685_s12 + $0x18] sm:$0xff] %vm2930_vm5, %v4197_v10  ;;  %v4205_v12 = vpack.c.bf16 %v4197_v10, %v4197_v10 }
 0xcac   : > { %4200 = vst.msk [vmem:[%s7685_s12 + $0x10] sm:$0xff] %vm2930_vm5, %v4196_v11  ;;  %v4204_v13 = vpack.c.bf16 %v4196_v11, %v4196_v11 }
 0xcad   : > { %5847 = vmatmul.mubr.msk.bf16.vlgmr.msra.gmra.mxu0 %vm2930_vm5, %v4205_v12 }
 0xcae   : > { %5841 = vmatmul.mubr.msk.bf16.vlgmr.msra.gmra.mxu1 %vm2930_vm5, %v4204_v13  ;;  %5862 = vmatprep.mubr.msk.bf16.mxu0 %vm6841_vm1, %v6840_v2  ;;  %v5593_v13 = vld [vmem:[%s8538_s11] ss:$0 sm:$0xff] }
 0xcaf   : > { %5854 = vmatprep.mubr.msk.bf16.mxu1 %vm6841_vm1, %v6840_v2  ;;  %5851 = vmatpush3.bf16.msra.mxu1 %v6096_v49 }
 0xcb0   : > { %5852 = vmatprep.subr.bf16.mxu1 %v6840_v2 }
 0xcb3   : > { %5853 = vmatpush3.bf16.msra.mxu1 %v6097_v57 }
 0xcb4   : > { %5866 = vmatprep.subr.bf16.mxu1 %v6840_v2 }
 0xd42   : > { %v4247_v14 = vpop.f32.mrf.mxu1  ;;  %v4290_v34 = vpop.f32.mrf.mxu0 }
 0xd44   : > { %v5830_v15 = vpop.f32.mrf.mxu1  ;;  %v5836_v35 = vpop.f32.mrf.mxu0 }
 0xd46   : > { %v4250_v16 = vpop.f32.mrf.mxu1  ;;  %v4293_v17 = vpop.f32.mrf.mxu0 }
 0xd48   : > { %v5831_v18 = vpop.f32.mrf.mxu1  ;;  %v5837_v19 = vpop.f32.mrf.mxu0 }
 0xd6d   : > { %v4376_v20 = vpop.f32.mrf.mxu0 }
 0xd6e   : > { %v4333_v21 = vpop.f32.mrf.mxu1  ;;  %v4398_v24 = vcombine.low %v4290_v34, %v4376_v20  ;;  %v4399_v26 = vcombine.high %v4290_v34, %v4376_v20 }
 0xd6f   : > { %v4382_v27 = vcombine.low %v4247_v14, %v4333_v21  ;;  %v4383_v28 = vcombine.high %v4247_v14, %v4333_v21  ;;  %v5848_v29 = vpop.f32.mrf.mxu0 }
 0xd70   : > { %v4406_v30 = vrot.slane %v4398_v24, %v7734_v33  ;;  %v4413_v31 = vrot.slane %v4399_v26, %v7734_v33  ;;  %v5842_v32 = vpop.f32.mrf.mxu1  ;;  %v6101_v29 = vld [vmem:[%s7665_s7 + $0x10] sm:$0xff]  }
 0xd71   : > { %v4390_v36 = vrot.slane %v4382_v27, %v7734_v33  ;;  %v4397_v37 = vrot.slane %v4383_v28, %v7734_v33  ;;  %v4379_v38 = vpop.f32.mrf.mxu0  ;;  %v6100_v28 = vld [vmem:[%s7665_s7 + $0x18] sm:$0xff]  }
 0xd72   : > { %v4336_v39 = vpop.f32.mrf.mxu1 }
 0xd73   : > { %v4414_v41 = vcombine.low %v4390_v36, %v4406_v30  ;;  %v4415_v42 = vcombine.high %v4390_v36, %v4406_v30  ;;  %v4430_v43 = vcombine.low %v4397_v37, %v4413_v31  ;;  %v4431_v44 = vcombine.high %v4397_v37, %v4413_v31  ;;  %v5849_v47 = vpop.f32.mrf.mxu0  ;;  %v5598_v39 = vld [vmem:[%s1696_s13] ss:$0 sm:$0xff]  ;;  %s8545_s13 = sld [smem:[#allocation81_spill]] }
 0xd74   : > { %v5843_v48 = vpop.f32.mrf.mxu1  ;;  %v6103_v47 = vld [vmem:[%s7665_s7] sm:$0xff]  }
 0xd75   : > { %v4422_v50 = vrot.slane %v4414_v41, %v7736_v40  ;;  %v4429_v51 = vrot.slane %v4415_v42, %v7736_v40  ;;  %v4438_v52 = vrot.slane %v4430_v43, %v7736_v40  ;;  %v4445_v22 = vrot.slane %v4431_v44, %v7736_v40  ;;  %v6102_v44 = vld [vmem:[%s7665_s7 + $0x8] sm:$0xff]   ;;  %v5599_v48 = vld [vmem:[%s8544_s9] ss:$0 sm:$0xff]  ;;  %s8547_s7 = sld [smem:[#allocation72_spill]] }
 0xd77   : > { %v4450_v23 = vcombine.low %v4422_v50, %v4429_v51  ;;  %v5591_v53 = vcombine.high %v4422_v50, %v4429_v51  ;;  %v4466_v55 = vcombine.low %v4438_v52, %v4445_v22  ;;  %v5592_v46 = vcombine.high %v4438_v52, %v4445_v22 }
 0xd79   : > { %v4457_v56 = vrot.slane %v4450_v23, %v7734_v33  ;;  %v4465_v54 = vrot.slane %v5591_v53, %v7734_v33  ;;  %v4473_v45 = vrot.slane %v4466_v55, %v7734_v33  ;;  %v4481_v4 = vrot.slane %v5592_v46, %v7734_v33  ;;  %v5603_v55 = vld [vmem:[%s1687_s28] ss:$0 sm:$0xff]  ;;  %s5615_s28 = sshll.u32 %s8545_s13, 2 }
 0xd7a   : > { %s8191_s5 = sadd.s32 %s5616_s10, %s5615_s28 }
 0xd7b   : > { %v4483_v0 = vcombine.high %v4457_v56, %v4465_v54  ;;  %v4499_v58 = vcombine.high %v4473_v45, %v4481_v4  ;;  %v4482_v59 = vcombine.low %v4457_v56, %v4465_v54  ;;  %v4498_v1 = vcombine.low %v4473_v45, %v4481_v4  ;;  %s8548_s25 = smov %s8547_s7  ;;  %s5617_s15 = sshll.u32 %s8191_s5, 7 }
 0xd7c   : > { %s8199_s22 = scalar_lea.hbm %s8547_s7, %s5617_s15 }
 0xd7d   : > { %v4497_v60 = vrot.slane %v4483_v0, %v7736_v40  ;;  %v4513_v61 = vrot.slane %v4499_v58, %v7736_v40  ;;  %v4490_v62 = vrot.slane %v4482_v59, %v7736_v40  ;;  %v4506_v63 = vrot.slane %v4498_v1, %v7736_v40 }
 0xd7f   : > { %v4516_v6 = vcombine.low %v4497_v60, %v4513_v61  ;;  %v4515_v33 = vcombine.high %v4490_v62, %v4506_v63  ;;  %v4514_v3 = vcombine.low %v4490_v62, %v4506_v63  ;;  %v4517_v5 = vcombine.high %v4497_v60, %v4513_v61 }
 0xd81   : > { %4523 = vrot.lane.b32.xlu1 %v4516_v6, %s6847_s6  ;;  %4519 = vrot.lane.b32.xlu0 %v4515_v33, %s6848_s0  ;;  %s8539_s6 = scalar_lea.vmem [#allocation23], %s8516_s21  ;;  %s8542_s21 = scalar_lea.vmem [#allocation26], %s8519_s18 }
 0xd82   : > { %v6098_v27 = vld [vmem:[%s8539_s6 + $0x8] sm:$0xff]   ;;  %v5597_v37 = vld [vmem:[%s8542_s21] ss:$0 sm:$0xff]  ;;  %s8549_s18 = sld [smem:[#allocation98_spill]] }
 0xd83   : > { %5859 = vmatpush3.bf16.msra.mxu0 %v6098_v27 }
 0xd84   : > { %5860 = vmatprep.subr.bf16.mxu0 %v6840_v2 }
 0xd85   : > { %4527 = vrot.lane.b32.xlu1 %v4517_v5, %s6849_s14  ;;  %s8540_s14 = smov %s8539_s6 }
 0xd88   : > { %s4819_s17 = scalar_lea.sflag [#allocation30], %s8549_s18 }
 0xdf3   : > { %v4524_v7 = vpop.permute.xlu1 %4523  ;;  %v4520_v8 = vpop.permute.xlu0 %4519 }
 0xdf4   : > { %v4530_v9 = vsel %vm2355_vm3, %v4514_v3, %v4520_v8 }
 0xdf5   : > { %v4531_v11 = vsel %vm2930_vm5, %v4530_v9, %v4524_v7 }
 0xdf7   : > { %v4528_v10 = vpop.permute.xlu1 %4527 }
 0xdf8   : > { %v4532_v40 = vsel %vm2932_vm6, %v4531_v11, %v4528_v10 }
 0xdf9   : > { %v4533_v12 = vpack.c.bf16 %v4532_v40, %v4532_v40 }
 0xdfb   : > { %5855 = vmatmul.mubr.msk.bf16.vlgmr.msra.gmra.mxu1 %vm1738_vm2, %v4533_v12 }
 0xdfc   : > { %5874 = vmatprep.mubr.msk.bf16.mxu1 %vm6841_vm1, %v6840_v2  ;;  %5867 = vmatpush3.bf16.msra.mxu1 %v6100_v28 }
 0xdfd   : > { %5868 = vmatprep.subr.bf16.mxu1 %v6840_v2 }
 0xe00   : > { %5869 = vmatpush3.bf16.msra.mxu1 %v6101_v29 }
 0xe01   : > { %5870 = vmatprep.subr.bf16.mxu1 %v6840_v2 }
 0xe04   : > { %5871 = vmatpush3.bf16.msra.mxu1 %v6102_v44 }
 0xe05   : > { %5872 = vmatprep.subr.bf16.mxu1 %v6840_v2 }
 0xe08   : > { %5873 = vmatpush3.bf16.msra.mxu1 %v6103_v47 }
 0xebb   : > { %v4594_v14 = vpop.f32.mrf.mxu1 }
 0xebc   : > { %v4595_v34 = vadd.f32 %v5593_v13, %v4594_v14 }
 0xebd   : > { %v5856_v15 = vpop.f32.mrf.mxu1 }
 0xebe   : > { %v4600_v35 = vadd.f32 %v4595_v34, %v7925_v25  ;;  %v6099_v25 = vld [vmem:[%s8540_s14] sm:$0xff]  }
 0xebf   : > { %v4597_v16 = vpop.f32.mrf.mxu1  ;;  %5861 = vmatpush3.bf16.msra.mxu0 %v6099_v25 }
 0xec0   : > { %v4603_v17 = vsel %vm1738_vm2, %v4600_v35, 0.0 }
 0xec1   : > { %4604 = vadd.xlane.f32.xlu0 %v4603_v17  ;;  %v5857_v18 = vpop.f32.mrf.mxu1 }
 0xf4a   : > { %v4605_v19 = vpop.xlane.xlu0 %4604 }
 0xf4b   : > { %v4606_v20 = vmul.f32 0.03125, %v4605_v19 }
 0xf4d   : > { %v4607_v21 = vsub.f32 %v4600_v35, %v4606_v20 }
 0xf4f   : > { %v4608_v24 = vmul.f32 %v4607_v21, %v4607_v21 }
 0xf51   : > { %v4609_v26 = vsel %vm1738_vm2, %v4608_v24, 0.0 }
 0xf52   : > { %4610 = vadd.xlane.f32.xlu1 %v4609_v26 }
 0xfdb   : > { %v4611_v30 = vpop.xlane.xlu1 %4610 }
 0xfdc   : > { %v4612_v31 = vmul.f32 0.03125, %v4611_v30 }
 0xfde   : > { %v4613_v32 = vadd.f32 1e-05, %v4612_v31 }
 0xfe0   : > { %6138 = vrsqrt.f32 %v4613_v32 }
 0xfed   : > { %v6139_v36 = vpop.eup %6138 }
 0xfee   : > { %v4615_v38 = vmul.f32 %v6139_v36, %v4607_v21 }
 0xff0   : > { %v4622_v41 = vmul.f32 %v5597_v37, %v4615_v38 }
 0xff2   : > { %v4629_v42 = vadd.f32 %v5598_v39, %v4622_v41 }
 0xff4   : > { %v4630_v43 = vpack.c.bf16 %v4629_v42, %v4629_v42 }
 0xff6   : > { %5863 = vmatmul.mubr.msk.bf16.vlgmr.msra.gmra.mxu0 %vm1738_vm2, %v4630_v43 }
0x10b6   : > { %v4691_v49 = vpop.f32.mrf.mxu0 }
0x10b7   : > { %v4692_v50 = vadd.f32 %v5599_v48, %v4691_v49 }
0x10b8   : > { %v5864_v51 = vpop.f32.mrf.mxu0 }
0x10b9   : > { %v4697_v52 = vmax.f32 %v4692_v50, 0.0 }
0x10ba   : > { %v4694_v22 = vpop.f32.mrf.mxu0 }
0x10bb   : > { %v4698_v23 = vpack.c.bf16 %v4697_v52, %v4697_v52 }
0x10bc   : > { %v5865_v53 = vpop.f32.mrf.mxu0 }
0x10bd   : > { %5875 = vmatmul.mubr.msk.bf16.vlgmr.msra.gmra.mxu1 %vm4738_vm7, %v4698_v23 }
0x117d   : > { %v4776_v46 = vpop.f32.mrf.mxu1 }
0x117e   : > { %v4777_v2 = vadd.f32 %v5603_v55, %v4776_v46 }
0x117f   : > { %v5876_v56 = vpop.f32.mrf.mxu1 }
0x1180   : > { %v4782_v54 = vadd.f32 %v4777_v2, %v4595_v34 }
0x1181   : > { %v4779_v45 = vpop.f32.mrf.mxu1 }
0x1182   : > { %v4785_v4 = vsel %vm1738_vm2, %v4782_v54, 0.0 }
0x1183   : > { %4786 = vadd.xlane.f32.xlu0 %v4785_v4  ;;  %v5877_v57 = vpop.f32.mrf.mxu1 }
0x120c   : > { %v4787_v0 = vpop.xlane.xlu0 %4786 }
0x120d   : > { %v4788_v58 = vmul.f32 0.03125, %v4787_v0 }
0x120f   : > { %v8183_v59 = vsub.f32 %v4782_v54, %v4788_v58 }
0x1211   : > { %v4790_v1 = vmul.f32 %v8183_v59, %v8183_v59 }
0x1213   : > { %v4791_v60 = vsel %vm1738_vm2, %v4790_v1, 0.0 }
0x1214   : > { %4792 = vadd.xlane.f32.xlu0 %v4791_v60 }
0x1215   : > { %6571 = shalt.err (!%p6568_p4)
}
0x1216   : > { %s6572_s11 = scalar_lea.hbm %s8199_s22, 512  ;;  %s6576_s6 = scalar_lea.hbm %s8548_s25, 2048 }
0x1217   : > { %p6573_p0 = scmp.ne.s32.totalorder %s8199_s22, %s6572_s11  ;;  %p6577_p13 = scmp.lt.s32.totalorder %s8199_s22, %s8548_s25 }
0x1218   : > { %p6578_p8 = scmp.lt.s32.totalorder %s6576_s6, %s6572_s11 }
0x1219   : > { %p6574_p12 = pnand %p6573_p0, %p8551_p5 }
0x121a   : > { %p6579_p2 = por %p6578_p8, %p6577_p13 }
0x121b   : > { %p6575_p7 = pneg %p6574_p12 }
0x121d   : > { %p6580_p11 = pnand %p6579_p2, %p6575_p7 }
0x121f   : > { %6583 = shalt.err (!%p6580_p11)
}
0x1220   : > { %s6851_s14 = smov 128   ;;  %s8552_s8 = sld [smem:[#allocation73_spill]] }
0x1221   : > { %5911 = dma.vmem_to_hbm [thread:$0]  (%p8551_p5), %s8193_s1, 512, %s8199_s22, %s4819_s17, %s6851_s14, %s6851_s14, %s6848_s0  }
0x1222   : > { %s4870_s27 = sshll.u32 %s7685_s12, 4  ;;  %s6852_s13 = smov [#allocation31]   ;;  %s4871_s27 = int_to_ptr.vmem [resolvable:$true] %s4870_s27 }
0x1223   : > { %s6584_s9 = scalar_lea.vmem %s4871_s27, 512  ;;  %s6588_s7 = sshll.u32 %s6852_s13, 4  ;;  %s6589_s7 = int_to_ptr.vmem [resolvable:$false] %s6588_s7 }
0x1224   : > { %p6585_p9 = scmp.ne.s32.totalorder %s4871_s27, %s6584_s9  ;;  %s6590_s28 = scalar_lea.vmem %s6589_s7, 1024 }
0x1225   : > { %p6591_p3 = scmp.lt.s32.totalorder %s4871_s27, %s6589_s7  ;;  %p6592_p1 = scmp.lt.s32.totalorder %s6590_s28, %s6584_s9 }
0x1226   : > { %s8226_s21 = scalar_lea.hbm %s8552_s8, %s5617_s15  ;;  %p6586_p6 = pnand %p6585_p9, %p8551_p5 }
0x1227   : > { %p6593_p4 = por %p6592_p1, %p6591_p3 }
0x1228   : > { %p6587_p10 = pneg %p6586_p6 }
0x122a   : > { %p6594_p0 = pnand %p6593_p4, %p6587_p10 }
0x122c   : > { %6597 = shalt.err (!%p6594_p0)
}
0x122d   : > { %s6598_s12 = scalar_lea.hbm %s8226_s21, 512  ;;  %s6602_s10 = scalar_lea.hbm %s8552_s8, 2048 }
0x122e   : > { %p6599_p12 = scmp.ne.s32.totalorder %s8226_s21, %s6598_s12  ;;  %p6603_p8 = scmp.lt.s32.totalorder %s8226_s21, %s8552_s8 }
0x122f   : > { %p6604_p2 = scmp.lt.s32.totalorder %s6602_s10, %s6598_s12 }
0x1230   : > { %p6600_p7 = pnand %p6599_p12, %p8551_p5 }
0x1231   : > { %p6605_p11 = por %p6604_p2, %p6603_p8 }
0x1232   : > { %p6601_p13 = pneg %p6600_p7 }
0x1234   : > { %p6606_p9 = pnand %p6605_p11, %p6601_p13 }
0x1236   : > { %6609 = shalt.err (!%p6606_p9)
}
0x1237   : > { %s8555_s15 = sld [smem:[#allocation71_spill]]  ;;  %v5609_v33 = vld [vmem:[%s1699_s23] ss:$0 sm:$0xff]  ;;  %s5614_s18 = sshll.u32 %s8546_s2, 7 }
0x1238   : > { %5912 = dma.vmem_to_hbm [thread:$0]  (%p8551_p5), %s4871_s27, 512, %s8226_s21, %s4819_s17, %s6851_s14, %s6851_s14, %s6848_s0  }
0x1239   : > { %s8557_s19 = sld [smem:[#allocation92_spill]]  ;;  %v5610_v5 = vld [vmem:[%s1702_s29] ss:$0 sm:$0xff]  ;;  %s4837_s22 = sshll.u32 %s7681_s26, 4  ;;  %s4838_s22 = int_to_ptr.vmem [resolvable:$true] %s4837_s22 }
0x123a   : > { %s4814_s0 = scalar_lea.sflag [#allocation4], %s7568_s16  ;;  %s6610_s17 = scalar_lea.vmem %s4838_s22, 128 }
0x123b   : > { %p6611_p5 = scmp.ne.s32.totalorder %s4838_s22, %s6610_s17  ;;  %s6853_s24 = smov [#allocation28]  }
0x123c   : > { %s6614_s23 = sshll.u32 %s6853_s24, 4  ;;  %s6615_s23 = int_to_ptr.vmem [resolvable:$false] %s6614_s23 }
0x123d   : > { %s8556_s4 = smov %s8555_s15  ;;  %s4835_s3 = scalar_lea.hbm %s8555_s15, %s5614_s18 }
0x123e   : > { %s6616_s20 = scalar_lea.vmem %s6615_s23, 256  ;;  %p6617_p1 = scmp.lt.s32.totalorder %s4838_s22, %s6615_s23 }
0x123f   : > { %p8558_p6 = scmp.ne.s32.totalorder %s8557_s19, 0  ;;  %p6618_p4 = scmp.lt.s32.totalorder %s6616_s20, %s6610_s17 }
0x1241   : > { %p6612_p10 = pnand %p6611_p5, %p8558_p6  ;;  %p6619_p0 = por %p6618_p4, %p6617_p1 }
0x1243   : > { %p6613_p3 = pneg %p6612_p10 }
0x1245   : > { %p6620_p12 = pnand %p6619_p0, %p6613_p3 }
0x129d   : > { %v4793_v61 = vpop.xlane.xlu0 %4792 }
0x129e   : > { %v4794_v62 = vmul.f32 0.03125, %v4793_v61 }
0x12a0   : > { %v4795_v63 = vadd.f32 1e-05, %v4794_v62 }
0x12a2   : > { %6140 = vrsqrt.f32 %v4795_v63 }
0x12af   : > { %v6141_v6 = vpop.eup %6140 }
0x12b0   : > { %v4797_v3 = vmul.f32 %v6141_v6, %v8183_v59 }
0x12b2   : > { %v4804_v7 = vmul.f32 %v5609_v33, %v4797_v3 }
0x12b4   : > { %v4811_v8 = vadd.f32 %v5610_v5, %v4804_v7 }
0x12b6   : > { %4812 = vst.msk [vmem:[%s7681_s26] sm:$0xff] %vm1738_vm2, %v4811_v8 }
0x12b7   : > { %6623 = shalt.err (!%p6620_p12)
}
0x12b8   : > { %s6624_s30 = scalar_lea.hbm %s4835_s3, 128  ;;  %s6628_s29 = scalar_lea.hbm %s8556_s4, 256 }
0x12b9   : > { %p6625_p7 = scmp.ne.s32.totalorder %s4835_s3, %s6624_s30  ;;  %p6629_p2 = scmp.lt.s32.totalorder %s4835_s3, %s8556_s4 }
0x12ba   : > { %p6630_p11 = scmp.lt.s32.totalorder %s6628_s29, %s6624_s30 }
0x12bb   : > { %p6626_p13 = pnand %p6625_p7, %p8558_p6 }
0x12bc   : > { %p6631_p9 = por %p6630_p11, %p6629_p2 }
0x12bd   : > { %p6627_p8 = pneg %p6626_p13 }
0x12bf   : > { %p6632_p5 = pnand %p6631_p9, %p6627_p8 }
0x12c1   : > { %6635 = shalt.err (!%p6632_p5)
}
0x12c2   : > { %5910 = dma.vmem_to_hbm [thread:$0]  (%p8558_p6), %s4838_s22, 128, %s4835_s3, %s4814_s0  }
0x12c3 PF: > { %s8559_s16 = sld [smem:[#allocation85_spill]] }
0x12c4   : > { %s8560_s26 = sld [smem:[#allocation78_spill]] }
0x12c5   : > { %s8561_s2 = sld [smem:[#allocation93_spill]] }
0x12c9   : > { %p5926_p10 = scmp.ge.s32.totalorder %s8559_s16, 2 }
0x12ca   : > { %s4885_s11 = sand.u32 1, %s8560_s26  }
0x12cb   : > { %p8562_p3 = scmp.ne.s32.totalorder %s8561_s2, 0  ;;  %s4886_s6 = scalar_lea.sflag [#allocation4], %s4885_s11 }
0x12cd   : > { %p5917_p1 = pnand %p5926_p10, %p8562_p3 }
0x12cf   : > { %p5918_p4 = pneg %p5917_p1 }
0x12d1   : > { %6729 = dma.done.wait (%p5918_p4), %s4886_s6, 128  }
0x12d2   : > { %6731 = vsyncadd (%p5918_p4), %s4886_s6, 4294967168  ;;  %s8563_s14 = sadd.s32 4294967294, %s8559_s16   ;;  %s8564_s21 = sld [smem:[#allocation96_spill]] }
0x12d3   : > { %s4894_s27 = sand.u32 1, %s8563_s14  }
0x12d4   : > { %s4895_s9 = scalar_lea.sflag [#allocation30], %s4894_s27 }
0x12d8   : > { %p8565_p0 = scmp.ne.s32.totalorder %s8564_s21, 0 }
0x12da   : > { %p5920_p12 = pnand %p5926_p10, %p8565_p0 }
0x12dc   : > { %p5921_p7 = pneg %p5920_p12 }
0x12de   : > { %6733 = dma.done.wait (%p5921_p7), %s4895_s9, 1024  }
0x12df   : > { %6735 = vsyncadd (%p5921_p7), %s4895_s9, 4294966272  ;;  %s105_s13 = sadd.s32 1, %s8559_s16   ;;  %s8567_s0 = sld [smem:[#allocation74_spill]] }
0x12e0   : > { %p8276_p6 = scmp.ge.s32.totalorder %s105_s13, 6   ;;  %s8568_s15 = sld [smem:[#allocation75_spill]] }
0x12e1   : > { %s8569_s16 = sld [smem:[#allocation94_spill]] }
0x12e2   : > { %s8570_s18 = sld [smem:[#allocation76_spill]] }
0x12e3   : > { %s8571_s22 = sld [smem:[#allocation77_spill]] }
0x12e4   : > { %s8572_s23 = sld [smem:[#allocation90_spill]] }
0x12e5   : > { %s8573_s26 = sld [smem:[#allocation79_spill]] }
0x12e6   : > { %s8574_s28 = sld [smem:[#allocation80_spill]] }
0x12e7   : > { %s8575_s1 = sld [smem:[#allocation91_spill]] }
0x12e8   : > { %s8576_s2 = sld [smem:[#allocation83_spill]] }
0x12e9   : > { %s8577_s12 = sld [smem:[#allocation84_spill]] }
0x12ea   : > { %s8578_s10 = sld [smem:[#allocation86_spill]] }
0x12eb   : > { %s8579_s11 = sld [smem:[#allocation88_spill]]  ;;  %104 = sbr.rel (!%p8276_p6) target bundleno = 96 (0x60), region = 460 }
0x12ef   : > { %s8581_s7 = smov %s8577_s12 }
0x12f0   :  { %4909 = vsyncpa [#allocation3], 1 }
0x12f1   :  { %4911 = vsyncpa [#allocation3 + $0x1], 1 }
0x12f2   :  { %4912 = vsyncpa [#allocation6], 1 }
0x12f3   :  { %4914 = vsyncpa [#allocation6 + $0x1], 1 }
0x12f4   :  { %4915 = vsyncpa [#allocation9], 1 }
0x12f5   :  { %4917 = vsyncpa [#allocation9 + $0x1], 1 }
0x12f6   :  { %4918 = vsyncpa [#allocation12], 1 }
0x12f7   :  { %4920 = vsyncpa [#allocation12 + $0x1], 1 }
0x12f8   :  { %4921 = vsyncpa [#allocation15], 1 }
0x12f9   :  { %4923 = vsyncpa [#allocation15 + $0x1], 1 }
0x12fa   :  { %4924 = vsyncpa [#allocation18], 1 }
0x12fb   :  { %4926 = vsyncpa [#allocation18 + $0x1], 1 }
0x12fc   :  { %4927 = vsyncpa [#allocation21], 1 }
0x12fd   :  { %4929 = vsyncpa [#allocation21 + $0x1], 1 }
0x12fe   :  { %4930 = vsyncpa [#allocation24], 1 }
0x12ff   :  { %4932 = vsyncpa [#allocation24 + $0x1], 1 }
0x1300   :  { %4933 = vsyncpa [#allocation27], 1 }
0x1301   :  { %4935 = vsyncpa [#allocation27 + $0x1], 1 }
0x1302   :  { %4936 = vsyncpa [#allocation4], 1 }
0x1303   :  { %4938 = vsyncpa [#allocation4 + $0x1], 1 }
0x1304   :  { %4939 = vsyncpa [#allocation30], 1 }
0x1305   :  { %4941 = vsyncpa [#allocation30 + $0x1], 1 }

</bundles_post_ra>
